<compile_context>
chip_gen: v7x
topology: tpu7x:2x2x1
jax: 0.10.0
libtpu: 0.0.40
codegen_flags: <defaults>
</compile_context>

<pallas_src>
import jax
import jax.numpy as jnp
import numpy as np
from jax.experimental import pallas as pl
from jax.experimental.pallas import tpu as pltpu


PADDED_IN = 16   # fc1 contraction dim padded from 11 -> 16 (sublane-aligned)
WIDTH = 128      # all post-fc1 activations / weights are padded to 128 lanes


# ----------------------------------------------------------------------------
# Pallas kernel: one batch tile per grid step, all weights VMEM-resident.
# ----------------------------------------------------------------------------
def poker_nn_kernel(
    x_ref,
    w1_ref, b1_ref,        # fc1 (+ bn1 folded), K padded 11 -> 16
    w2_ref, b2_ref,        # res1_fc1 (+ res1_bn1 folded)
    w3_ref, b3_ref,        # res1_fc2 (+ res1_bn2 folded)
    wd_ref, bd_ref,        # res2_downsample, lanes padded 64 -> 128
    w4_ref, b4_ref,        # res2_fc1 (+ res2_bn1 folded), lanes padded -> 128
    w5_ref, b5_ref,        # res2_fc2 (+ res2_bn2 folded), padded -> [128,128]
    w6_ref, b6_ref,        # fc_final (+ bn_final folded), padded -> [128,128]
    wh_ref, bh_ref,        # fused action+bet heads, padded -> [128,128]
    out_ref,               # [TB,128]: lanes 0-2 softmax, lane 3 sigmoid, rest 0
):
    def linear(h, w_ref, b_ref):
        # bf16 x bf16 -> f32 accumulate on the MXU; bias add in f32.
        return jnp.dot(h.astype(jnp.bfloat16), w_ref[...],
                       preferred_element_type=jnp.float32) + b_ref[...]

    x = x_ref[...]

    # stem: relu(bn1(fc1(x)))
    h = jax.nn.relu(linear(x, w1_ref, b1_ref))

    # residual block 1 (128 -> 128); dropout is identity in eval mode
    identity = h
    h = jax.nn.relu(linear(h, w2_ref, b2_ref))
    h = linear(h, w3_ref, b3_ref)
    h = jax.nn.relu(h + identity)

    # residual block 2 (logically 128 -> 64, kept 128-lane via zero padding so
    # there are no intra-vreg lane slices anywhere in the kernel)
    identity = linear(h, wd_ref, bd_ref)        # lanes 64:128 are exactly 0
    h = jax.nn.relu(linear(h, w4_ref, b4_ref))  # lanes 64:128 are exactly 0
    h = linear(h, w5_ref, b5_ref)
    h = jax.nn.relu(h + identity)

    # final shared trunk (64 -> 32, padded to 128 lanes)
    h = jax.nn.relu(linear(h, w6_ref, b6_ref))  # lanes 32:128 are exactly 0

    # fused heads -> lane-dense [TB,128]
    heads = linear(h, wh_ref, bh_ref)           # lanes 4:128 are exactly 0
    lane = jax.lax.broadcasted_iota(jnp.int32, heads.shape, 1)
    action_mask = lane < 3
    bet_mask = lane == 3

    # one full-width exp shared by softmax (lanes 0-2) and sigmoid (lane 3):
    #   lanes < 3 : exp(logit - m)        -> softmax numerator
    #   lane == 3 : exp(-logit)           -> sigmoid = 1 / (1 + exp(-logit))
    #   lanes >= 4: heads == 0 -> exp(0)  -> masked away (no inf/nan path)
    m = jnp.max(jnp.where(action_mask, heads, -jnp.inf), axis=-1, keepdims=True)
    z = jnp.where(action_mask, heads - m, -heads)
    e = jnp.exp(z)

    sum_e = jnp.sum(jnp.where(action_mask, e, 0.0), axis=-1, keepdims=True)
    inv_sum = pl.reciprocal(sum_e, approx=True)
    inv_sum = inv_sum * (2.0 - sum_e * inv_sum)      # Newton step: rows sum to 1

    d = 1.0 + e
    inv_d = pl.reciprocal(d, approx=True)
    inv_d = inv_d * (2.0 - d * inv_d)                # Newton step

    out_ref[...] = jnp.where(action_mask, e * inv_sum,
                             jnp.where(bet_mask, inv_d, 0.0))


# ----------------------------------------------------------------------------
# Parameter construction (deterministic) + BN folding / padding (plain JAX).
# ----------------------------------------------------------------------------
def _fold_bn(w, b, gamma, beta, mean, var, eps=1e-5):
    """Fold eval-mode BatchNorm1d into the preceding Linear (w: [in,out])."""
    scale = gamma / jnp.sqrt(var + eps)
    return w * scale[None, :], b * scale + (beta - mean * scale)


def make_params(key, input_size=11):
    dims = {
        "fc1": (input_size, 128), "res1_fc1": (128, 128), "res1_fc2": (128, 128),
        "res2_fc1": (128, 64), "res2_fc2": (64, 64), "res2_downsample": (128, 64),
        "fc_final": (64, 32), "action_head": (32, 3), "bet_head": (32, 1),
    }
    bn_dims = {"bn1": 128, "res1_bn1": 128, "res1_bn2": 128,
               "res2_bn1": 64, "res2_bn2": 64, "bn_final": 32}

    p = {}
    for name, (fan_in, fan_out) in dims.items():
        key, k1, k2 = jax.random.split(key, 3)
        bound = 1.0 / np.sqrt(fan_in)
        p[name + "_w"] = jax.random.uniform(k1, (fan_in, fan_out), jnp.float32,
                                            -bound, bound)
        p[name + "_b"] = jax.random.uniform(k2, (fan_out,), jnp.float32,
                                            -bound, bound)
    for name, n in bn_dims.items():
        key, k1, k2, k3, k4 = jax.random.split(key, 5)
        p[name + "_gamma"] = 1.0 + 0.1 * jax.random.normal(k1, (n,), jnp.float32)
        p[name + "_beta"] = 0.1 * jax.random.normal(k2, (n,), jnp.float32)
        p[name + "_mean"] = 0.1 * jax.random.normal(k3, (n,), jnp.float32)
        p[name + "_var"] = jnp.abs(jax.random.normal(k4, (n,), jnp.float32)) + 0.5
    return p


def fold_params(p, input_size=11, padded_input=PADDED_IN,
                compute_dtype=jnp.bfloat16):
    """Fold BN into linears, zero-pad everything to 128 lanes, cast to bf16."""
    def bn(name):
        return (p[name + "_gamma"], p[name + "_beta"],
                p[name + "_mean"], p[name + "_var"])

    w1, b1 = _fold_bn(p["fc1_w"], p["fc1_b"], *bn("bn1"))
    w1 = jnp.pad(w1, ((0, padded_input - input_size), (0, 0)))   # K: 11 -> 16

    w2, b2 = _fold_bn(p["res1_fc1_w"], p["res1_fc1_b"], *bn("res1_bn1"))
    w3, b3 = _fold_bn(p["res1_fc2_w"], p["res1_fc2_b"], *bn("res1_bn2"))

    # res2 branch, every output padded to 128 lanes (zero MACs are free here)
    wd = jnp.pad(p["res2_downsample_w"], ((0, 0), (0, 64)))
    bd = jnp.pad(p["res2_downsample_b"], (0, 64))

    w4, b4 = _fold_bn(p["res2_fc1_w"], p["res2_fc1_b"], *bn("res2_bn1"))
    w4 = jnp.pad(w4, ((0, 0), (0, 64)))
    b4 = jnp.pad(b4, (0, 64))

    w5, b5 = _fold_bn(p["res2_fc2_w"], p["res2_fc2_b"], *bn("res2_bn2"))
    w5 = jnp.pad(w5, ((0, 64), (0, 64)))
    b5 = jnp.pad(b5, (0, 64))

    w6, b6 = _fold_bn(p["fc_final_w"], p["fc_final_b"], *bn("bn_final"))
    w6 = jnp.pad(w6, ((0, 64), (0, 96)))
    b6 = jnp.pad(b6, (0, 96))

    # fused action (lanes 0-2) + bet (lane 3) heads, padded to [128,128]
    wh = jnp.zeros((WIDTH, WIDTH), jnp.float32)
    wh = wh.at[:32, :3].set(p["action_head_w"]).at[:32, 3:4].set(p["bet_head_w"])
    bh = jnp.zeros((WIDTH,), jnp.float32)
    bh = bh.at[:3].set(p["action_head_b"]).at[3].set(p["bet_head_b"][0])

    pairs = [(w1, b1), (w2, b2), (w3, b3), (wd, bd), (w4, b4), (w5, b5),
             (w6, b6), (wh, bh)]
    flat = []
    for w, b in pairs:
        flat.append(w.astype(compute_dtype))           # bf16 MXU operands
        flat.append(b.reshape(1, -1).astype(jnp.float32))  # f32 bias rows
    return flat


# ----------------------------------------------------------------------------
# Wrapper: batch-tiled pallas_call with resident weights.
# ----------------------------------------------------------------------------
def _choose_tb(batch, max_tb=1024, target_tiles=2):
    """Large tiles (amortize ~0.35us/step) but keep >= target_tiles for v7x."""
    tb = -(-batch // target_tiles)      # ceil(batch / target_tiles)
    tb = -(-tb // 8) * 8                # round up to sublane multiple of 8
    return max(8, min(max_tb, tb))


def poker_nn_forward(x, flat_params, *, tb=None, max_tb=1024, target_tiles=2):
    batch, feat = x.shape
    padded_in = flat_params[0].shape[0]
    if tb is None:
        tb = _choose_tb(batch, max_tb=max_tb, target_tiles=target_tiles)

    n_tiles = pl.cdiv(batch, tb)
    batch_p = n_tiles * tb
    # single pad covering both the feature (11 -> 16) and batch remainder
    if batch_p != batch or feat != padded_in:
        x = jnp.pad(x, ((0, batch_p - batch), (0, padded_in - feat)))

    in_specs = [pl.BlockSpec((tb, padded_in), lambda i: (i, 0))]
    # weights/biases: constant index map -> VMEM-resident, no re-DMA per step
    in_specs += [pl.BlockSpec(p.shape, lambda i: (0, 0)) for p in flat_params]

    weight_bytes = sum(int(np.prod(p.shape)) * p.dtype.itemsize
                       for p in flat_params)
    vmem_bytes = int(2 * weight_bytes            # double-buffered params
                     + 2 * tb * padded_in * 4    # x tiles
                     + 2 * tb * WIDTH * 4        # out tiles
                     + 10 * tb * WIDTH * 4       # live f32 activations
                     + (2 << 20))                # headroom
    vmem_bytes = min(max(vmem_bytes, 32 << 20), 60 << 20)

    flops_per_row = 2 * (padded_in * WIDTH + 6 * WIDTH * WIDTH)
    cost = pl.CostEstimate(
        flops=int(batch_p) * flops_per_row,
        transcendentals=int(batch_p) * (2 * WIDTH + 1),
        bytes_accessed=int(batch_p) * (padded_in + WIDTH) * 4 + weight_bytes,
    )

    out = pl.pallas_call(
        poker_nn_kernel,
        out_shape=jax.ShapeDtypeStruct((batch_p, WIDTH), jnp.float32),
        grid=(n_tiles,),
        in_specs=in_specs,
        out_specs=pl.BlockSpec((tb, WIDTH), lambda i: (i, 0)),
        compiler_params=pltpu.CompilerParams(
            dimension_semantics=("parallel",),
            vmem_limit_bytes=vmem_bytes),
        cost_estimate=cost,
    )(x, *flat_params)

    head = out[:batch, :4]            # single read-back of the useful lanes
    return head[:, :3], head[:, 3:4]


# ----------------------------------------------------------------------------
# Pure-JAX f32 reference (mirrors the PyTorch eval-mode forward, unfused).
# ----------------------------------------------------------------------------
def reference_forward(x, p, eps=1e-5):
    def lin(h, name):
        return h @ p[name + "_w"] + p[name + "_b"]

    def bn(h, name):
        inv = 1.0 / jnp.sqrt(p[name + "_var"] + eps)
        return (h - p[name + "_mean"]) * inv * p[name + "_gamma"] + p[name + "_beta"]

    h = jax.nn.relu(bn(lin(x, "fc1"), "bn1"))
    idn = h
    h = jax.nn.relu(bn(lin(h, "res1_fc1"), "res1_bn1"))
    h = bn(lin(h, "res1_fc2"), "res1_bn2")
    h = jax.nn.relu(h + idn)
    idn = lin(h, "res2_downsample")
    h = jax.nn.relu(bn(lin(h, "res2_fc1"), "res2_bn1"))
    h = bn(lin(h, "res2_fc2"), "res2_bn2")
    h = jax.nn.relu(h + idn)
    h = jax.nn.relu(bn(lin(h, "fc_final"), "bn_final"))
    action = jax.nn.softmax(lin(h, "action_head"), axis=1)
    bet = jax.nn.sigmoid(lin(h, "bet_head"))
    return action, bet


if __name__ == "__main__":
    key = jax.random.PRNGKey(0)
    key, pkey, xkey = jax.random.split(key, 3)

    input_size = 11
    batch = 500            # auto tb -> 256-row tiles, grid=(2,) (2 TCs on v7x)

    params = make_params(pkey, input_size=input_size)
    flat_params = fold_params(params, input_size=input_size)
    x = jax.random.normal(xkey, (batch, input_size), dtype=jnp.float32)

    fwd = jax.jit(lambda xx: poker_nn_forward(xx, flat_params))
    action, bet = fwd(x)
    jax.block_until_ready((action, bet))

    # sanity check against the pure-JAX f32 reference; tolerances account for
    # the bf16 matmul operands (f32 accumulate) used on the MXU path.
    ref_action, ref_bet = reference_forward(x, params)
    np.testing.assert_allclose(np.asarray(action), np.asarray(ref_action),
                               rtol=2e-2, atol=2e-2)
    np.testing.assert_allclose(np.asarray(bet), np.asarray(ref_bet),
                               rtol=2e-2, atol=2e-2)
    # Newton-refined reciprocal keeps the softmax normalized tightly.
    assert np.allclose(np.asarray(action).sum(axis=1), 1.0, atol=1e-3)
    assert action.shape == (batch, 3) and bet.shape == (batch, 1)

    print("KERNEL_OK")
</pallas_src>

<mosaic_0001>
module attributes {stable_mosaic.version = 11 : i64} {
  func.func @poker_nn_kernel(%arg0: i32, %arg1: memref<256x16xf32, #tpu.memory_space<vmem>>, %arg2: memref<16x128xbf16, #tpu.memory_space<vmem>>, %arg3: memref<1x128xf32, #tpu.memory_space<vmem>>, %arg4: memref<128x128xbf16, #tpu.memory_space<vmem>>, %arg5: memref<1x128xf32, #tpu.memory_space<vmem>>, %arg6: memref<128x128xbf16, #tpu.memory_space<vmem>>, %arg7: memref<1x128xf32, #tpu.memory_space<vmem>>, %arg8: memref<128x128xbf16, #tpu.memory_space<vmem>>, %arg9: memref<1x128xf32, #tpu.memory_space<vmem>>, %arg10: memref<128x128xbf16, #tpu.memory_space<vmem>>, %arg11: memref<1x128xf32, #tpu.memory_space<vmem>>, %arg12: memref<128x128xbf16, #tpu.memory_space<vmem>>, %arg13: memref<1x128xf32, #tpu.memory_space<vmem>>, %arg14: memref<128x128xbf16, #tpu.memory_space<vmem>>, %arg15: memref<1x128xf32, #tpu.memory_space<vmem>>, %arg16: memref<128x128xbf16, #tpu.memory_space<vmem>>, %arg17: memref<1x128xf32, #tpu.memory_space<vmem>>, %arg18: memref<256x128xf32, #tpu.memory_space<vmem>>) attributes {dimension_semantics = [#tpu.dimension_semantics<parallel>], iteration_bounds = array<i64: 2>, scalar_prefetch = 0 : i64, scratch_operands = 0 : i64, tpu.core_type = #tpu.core_type<tc>, window_params = [{transform_indices = @transform_0, window_bounds = array<i64: 256, 16>}, {pipeline_mode = #tpu.pipeline_mode<synchronous>, transform_indices = @transform_1, window_bounds = array<i64: 16, 128>}, {pipeline_mode = #tpu.pipeline_mode<synchronous>, transform_indices = @transform_2, window_bounds = array<i64: 1, 128>}, {pipeline_mode = #tpu.pipeline_mode<synchronous>, transform_indices = @transform_3, window_bounds = array<i64: 128, 128>}, {pipeline_mode = #tpu.pipeline_mode<synchronous>, transform_indices = @transform_4, window_bounds = array<i64: 1, 128>}, {pipeline_mode = #tpu.pipeline_mode<synchronous>, transform_indices = @transform_5, window_bounds = array<i64: 128, 128>}, {pipeline_mode = #tpu.pipeline_mode<synchronous>, transform_indices = @transform_6, window_bounds = array<i64: 1, 128>}, {pipeline_mode = #tpu.pipeline_mode<synchronous>, transform_indices = @transform_7, window_bounds = array<i64: 128, 128>}, {pipeline_mode = #tpu.pipeline_mode<synchronous>, transform_indices = @transform_8, window_bounds = array<i64: 1, 128>}, {pipeline_mode = #tpu.pipeline_mode<synchronous>, transform_indices = @transform_9, window_bounds = array<i64: 128, 128>}, {pipeline_mode = #tpu.pipeline_mode<synchronous>, transform_indices = @transform_10, window_bounds = array<i64: 1, 128>}, {pipeline_mode = #tpu.pipeline_mode<synchronous>, transform_indices = @transform_11, window_bounds = array<i64: 128, 128>}, {pipeline_mode = #tpu.pipeline_mode<synchronous>, transform_indices = @transform_12, window_bounds = array<i64: 1, 128>}, {pipeline_mode = #tpu.pipeline_mode<synchronous>, transform_indices = @transform_13, window_bounds = array<i64: 128, 128>}, {pipeline_mode = #tpu.pipeline_mode<synchronous>, transform_indices = @transform_14, window_bounds = array<i64: 1, 128>}, {pipeline_mode = #tpu.pipeline_mode<synchronous>, transform_indices = @transform_15, window_bounds = array<i64: 128, 128>}, {pipeline_mode = #tpu.pipeline_mode<synchronous>, transform_indices = @transform_16, window_bounds = array<i64: 1, 128>}, {transform_indices = @transform_17, window_bounds = array<i64: 256, 128>}]} {
    %c0 = arith.constant 0 : index
    %c0_0 = arith.constant 0 : index
    %0 = vector.load %arg1[%c0, %c0_0] : memref<256x16xf32, #tpu.memory_space<vmem>>, vector<256x16xf32>
    %1 = arith.truncf %0 : vector<256x16xf32> to vector<256x16xbf16>
    %c0_1 = arith.constant 0 : index
    %c0_2 = arith.constant 0 : index
    %2 = vector.load %arg2[%c0_1, %c0_2] : memref<16x128xbf16, #tpu.memory_space<vmem>>, vector<16x128xbf16>
    %cst = arith.constant dense<0.000000e+00> : vector<256x128xf32>
    %3 = tpu.matmul %1, %2, %cst {dimension_numbers = #tpu.dot_dimension_numbers<[1], [0], [0], [1], [0, 0, 1, 1], [], []>} : vector<256x16xbf16>, vector<16x128xbf16>, vector<256x128xf32> -> vector<256x128xf32>
    %c0_3 = arith.constant 0 : index
    %c0_4 = arith.constant 0 : index
    %4 = vector.load %arg3[%c0_3, %c0_4] : memref<1x128xf32, #tpu.memory_space<vmem>>, vector<1x128xf32>
    %5 = vector.broadcast %4 : vector<1x128xf32> to vector<256x128xf32>
    %6 = arith.addf %3, %5 : vector<256x128xf32>
    %cst_5 = arith.constant 0.000000e+00 : f32
    %7 = vector.broadcast %cst_5 : f32 to vector<256x128xf32>
    %8 = arith.maximumf %6, %7 : vector<256x128xf32>
    %9 = arith.truncf %8 : vector<256x128xf32> to vector<256x128xbf16>
    %c0_6 = arith.constant 0 : index
    %c0_7 = arith.constant 0 : index
    %10 = vector.load %arg4[%c0_6, %c0_7] : memref<128x128xbf16, #tpu.memory_space<vmem>>, vector<128x128xbf16>
    %cst_8 = arith.constant dense<0.000000e+00> : vector<256x128xf32>
    %11 = tpu.matmul %9, %10, %cst_8 {dimension_numbers = #tpu.dot_dimension_numbers<[1], [0], [0], [1], [0, 0, 1, 1], [], []>} : vector<256x128xbf16>, vector<128x128xbf16>, vector<256x128xf32> -> vector<256x128xf32>
    %c0_9 = arith.constant 0 : index
    %c0_10 = arith.constant 0 : index
    %12 = vector.load %arg5[%c0_9, %c0_10] : memref<1x128xf32, #tpu.memory_space<vmem>>, vector<1x128xf32>
    %13 = vector.broadcast %12 : vector<1x128xf32> to vector<256x128xf32>
    %14 = arith.addf %11, %13 : vector<256x128xf32>
    %cst_11 = arith.constant 0.000000e+00 : f32
    %15 = vector.broadcast %cst_11 : f32 to vector<256x128xf32>
    %16 = arith.maximumf %14, %15 : vector<256x128xf32>
    %17 = arith.truncf %16 : vector<256x128xf32> to vector<256x128xbf16>
    %c0_12 = arith.constant 0 : index
    %c0_13 = arith.constant 0 : index
    %18 = vector.load %arg6[%c0_12, %c0_13] : memref<128x128xbf16, #tpu.memory_space<vmem>>, vector<128x128xbf16>
    %cst_14 = arith.constant dense<0.000000e+00> : vector<256x128xf32>
    %19 = tpu.matmul %17, %18, %cst_14 {dimension_numbers = #tpu.dot_dimension_numbers<[1], [0], [0], [1], [0, 0, 1, 1], [], []>} : vector<256x128xbf16>, vector<128x128xbf16>, vector<256x128xf32> -> vector<256x128xf32>
    %c0_15 = arith.constant 0 : index
    %c0_16 = arith.constant 0 : index
    %20 = vector.load %arg7[%c0_15, %c0_16] : memref<1x128xf32, #tpu.memory_space<vmem>>, vector<1x128xf32>
    %21 = vector.broadcast %20 : vector<1x128xf32> to vector<256x128xf32>
    %22 = arith.addf %19, %21 : vector<256x128xf32>
    %23 = arith.addf %22, %8 : vector<256x128xf32>
    %cst_17 = arith.constant 0.000000e+00 : f32
    %24 = vector.broadcast %cst_17 : f32 to vector<256x128xf32>
    %25 = arith.maximumf %23, %24 : vector<256x128xf32>
    %26 = arith.truncf %25 : vector<256x128xf32> to vector<256x128xbf16>
    %c0_18 = arith.constant 0 : index
    %c0_19 = arith.constant 0 : index
    %27 = vector.load %arg8[%c0_18, %c0_19] : memref<128x128xbf16, #tpu.memory_space<vmem>>, vector<128x128xbf16>
    %cst_20 = arith.constant dense<0.000000e+00> : vector<256x128xf32>
    %28 = tpu.matmul %26, %27, %cst_20 {dimension_numbers = #tpu.dot_dimension_numbers<[1], [0], [0], [1], [0, 0, 1, 1], [], []>} : vector<256x128xbf16>, vector<128x128xbf16>, vector<256x128xf32> -> vector<256x128xf32>
    %c0_21 = arith.constant 0 : index
    %c0_22 = arith.constant 0 : index
    %29 = vector.load %arg9[%c0_21, %c0_22] : memref<1x128xf32, #tpu.memory_space<vmem>>, vector<1x128xf32>
    %30 = vector.broadcast %29 : vector<1x128xf32> to vector<256x128xf32>
    %31 = arith.addf %28, %30 : vector<256x128xf32>
    %32 = arith.truncf %25 : vector<256x128xf32> to vector<256x128xbf16>
    %c0_23 = arith.constant 0 : index
    %c0_24 = arith.constant 0 : index
    %33 = vector.load %arg10[%c0_23, %c0_24] : memref<128x128xbf16, #tpu.memory_space<vmem>>, vector<128x128xbf16>
    %cst_25 = arith.constant dense<0.000000e+00> : vector<256x128xf32>
    %34 = tpu.matmul %32, %33, %cst_25 {dimension_numbers = #tpu.dot_dimension_numbers<[1], [0], [0], [1], [0, 0, 1, 1], [], []>} : vector<256x128xbf16>, vector<128x128xbf16>, vector<256x128xf32> -> vector<256x128xf32>
    %c0_26 = arith.constant 0 : index
    %c0_27 = arith.constant 0 : index
    %35 = vector.load %arg11[%c0_26, %c0_27] : memref<1x128xf32, #tpu.memory_space<vmem>>, vector<1x128xf32>
    %36 = vector.broadcast %35 : vector<1x128xf32> to vector<256x128xf32>
    %37 = arith.addf %34, %36 : vector<256x128xf32>
    %cst_28 = arith.constant 0.000000e+00 : f32
    %38 = vector.broadcast %cst_28 : f32 to vector<256x128xf32>
    %39 = arith.maximumf %37, %38 : vector<256x128xf32>
    %40 = arith.truncf %39 : vector<256x128xf32> to vector<256x128xbf16>
    %c0_29 = arith.constant 0 : index
    %c0_30 = arith.constant 0 : index
    %41 = vector.load %arg12[%c0_29, %c0_30] : memref<128x128xbf16, #tpu.memory_space<vmem>>, vector<128x128xbf16>
    %cst_31 = arith.constant dense<0.000000e+00> : vector<256x128xf32>
    %42 = tpu.matmul %40, %41, %cst_31 {dimension_numbers = #tpu.dot_dimension_numbers<[1], [0], [0], [1], [0, 0, 1, 1], [], []>} : vector<256x128xbf16>, vector<128x128xbf16>, vector<256x128xf32> -> vector<256x128xf32>
    %c0_32 = arith.constant 0 : index
    %c0_33 = arith.constant 0 : index
    %43 = vector.load %arg13[%c0_32, %c0_33] : memref<1x128xf32, #tpu.memory_space<vmem>>, vector<1x128xf32>
    %44 = vector.broadcast %43 : vector<1x128xf32> to vector<256x128xf32>
    %45 = arith.addf %42, %44 : vector<256x128xf32>
    %46 = arith.addf %45, %31 : vector<256x128xf32>
    %cst_34 = arith.constant 0.000000e+00 : f32
    %47 = vector.broadcast %cst_34 : f32 to vector<256x128xf32>
    %48 = arith.maximumf %46, %47 : vector<256x128xf32>
    %49 = arith.truncf %48 : vector<256x128xf32> to vector<256x128xbf16>
    %c0_35 = arith.constant 0 : index
    %c0_36 = arith.constant 0 : index
    %50 = vector.load %arg14[%c0_35, %c0_36] : memref<128x128xbf16, #tpu.memory_space<vmem>>, vector<128x128xbf16>
    %cst_37 = arith.constant dense<0.000000e+00> : vector<256x128xf32>
    %51 = tpu.matmul %49, %50, %cst_37 {dimension_numbers = #tpu.dot_dimension_numbers<[1], [0], [0], [1], [0, 0, 1, 1], [], []>} : vector<256x128xbf16>, vector<128x128xbf16>, vector<256x128xf32> -> vector<256x128xf32>
    %c0_38 = arith.constant 0 : index
    %c0_39 = arith.constant 0 : index
    %52 = vector.load %arg15[%c0_38, %c0_39] : memref<1x128xf32, #tpu.memory_space<vmem>>, vector<1x128xf32>
    %53 = vector.broadcast %52 : vector<1x128xf32> to vector<256x128xf32>
    %54 = arith.addf %51, %53 : vector<256x128xf32>
    %cst_40 = arith.constant 0.000000e+00 : f32
    %55 = vector.broadcast %cst_40 : f32 to vector<256x128xf32>
    %56 = arith.maximumf %54, %55 : vector<256x128xf32>
    %57 = arith.truncf %56 : vector<256x128xf32> to vector<256x128xbf16>
    %c0_41 = arith.constant 0 : index
    %c0_42 = arith.constant 0 : index
    %58 = vector.load %arg16[%c0_41, %c0_42] : memref<128x128xbf16, #tpu.memory_space<vmem>>, vector<128x128xbf16>
    %cst_43 = arith.constant dense<0.000000e+00> : vector<256x128xf32>
    %59 = tpu.matmul %57, %58, %cst_43 {dimension_numbers = #tpu.dot_dimension_numbers<[1], [0], [0], [1], [0, 0, 1, 1], [], []>} : vector<256x128xbf16>, vector<128x128xbf16>, vector<256x128xf32> -> vector<256x128xf32>
    %c0_44 = arith.constant 0 : index
    %c0_45 = arith.constant 0 : index
    %60 = vector.load %arg17[%c0_44, %c0_45] : memref<1x128xf32, #tpu.memory_space<vmem>>, vector<1x128xf32>
    %61 = vector.broadcast %60 : vector<1x128xf32> to vector<256x128xf32>
    %62 = arith.addf %59, %61 : vector<256x128xf32>
    %63 = tpu.iota {dimensions = array<i32: 1>} : vector<256x128xi32>
    %c3_i32 = arith.constant 3 : i32
    %64 = vector.broadcast %c3_i32 : i32 to vector<256x128xi32>
    %65 = arith.cmpi slt, %63, %64 : vector<256x128xi32>
    %c3_i32_46 = arith.constant 3 : i32
    %66 = vector.broadcast %c3_i32_46 : i32 to vector<256x128xi32>
    %67 = arith.cmpi eq, %63, %66 : vector<256x128xi32>
    %cst_47 = arith.constant 0xFF800000 : f32
    %68 = vector.broadcast %cst_47 : f32 to vector<256x128xf32>
    %69 = arith.select %65, %62, %68 : vector<256x128xi1>, vector<256x128xf32>
    %cst_48 = arith.constant dense<0xFF800000> : vector<256xf32>
    %70 = vector.multi_reduction <maximumf>, %69, %cst_48 [1] : vector<256x128xf32> to vector<256xf32>
    %71 = vector.shape_cast %70 : vector<256xf32> to vector<256x1xf32>
    %72 = vector.broadcast %71 : vector<256x1xf32> to vector<256x128xf32>
    %73 = arith.subf %62, %72 : vector<256x128xf32>
    %cst_49 = arith.constant 0.000000e+00 : f32
    %74 = vector.broadcast %cst_49 : f32 to vector<256x128xf32>
    %75 = arith.subf %74, %62 : vector<256x128xf32>
    %76 = arith.select %65, %73, %75 : vector<256x128xi1>, vector<256x128xf32>
    %77 = math.exp %76 : vector<256x128xf32>
    %cst_50 = arith.constant 0.000000e+00 : f32
    %78 = vector.broadcast %cst_50 : f32 to vector<256x128xf32>
    %79 = arith.select %65, %77, %78 : vector<256x128xi1>, vector<256x128xf32>
    %cst_51 = arith.constant dense<0.000000e+00> : vector<256xf32>
    %80 = vector.multi_reduction <add>, %79, %cst_51 [1] : vector<256x128xf32> to vector<256xf32>
    %81 = vector.shape_cast %80 : vector<256xf32> to vector<256x1xf32>
    %82 = tpu.reciprocal %81 {approx = true} : vector<256x1xf32> -> vector<256x1xf32>
    %83 = arith.mulf %81, %82 : vector<256x1xf32>
    %cst_52 = arith.constant 2.000000e+00 : f32
    %84 = vector.broadcast %cst_52 : f32 to vector<256x1xf32>
    %85 = arith.subf %84, %83 : vector<256x1xf32>
    %86 = arith.mulf %82, %85 : vector<256x1xf32>
    %cst_53 = arith.constant 1.000000e+00 : f32
    %87 = vector.broadcast %cst_53 : f32 to vector<256x128xf32>
    %88 = arith.addf %87, %77 : vector<256x128xf32>
    %89 = tpu.reciprocal %88 {approx = true} : vector<256x128xf32> -> vector<256x128xf32>
    %90 = arith.mulf %88, %89 : vector<256x128xf32>
    %cst_54 = arith.constant 2.000000e+00 : f32
    %91 = vector.broadcast %cst_54 : f32 to vector<256x128xf32>
    %92 = arith.subf %91, %90 : vector<256x128xf32>
    %93 = arith.mulf %89, %92 : vector<256x128xf32>
    %94 = vector.broadcast %86 : vector<256x1xf32> to vector<256x128xf32>
    %95 = arith.mulf %77, %94 : vector<256x128xf32>
    %cst_55 = arith.constant 0.000000e+00 : f32
    %96 = vector.broadcast %cst_55 : f32 to vector<256x128xf32>
    %97 = arith.select %67, %93, %96 : vector<256x128xi1>, vector<256x128xf32>
    %98 = arith.select %65, %95, %97 : vector<256x128xi1>, vector<256x128xf32>
    %c0_56 = arith.constant 0 : index
    %c0_57 = arith.constant 0 : index
    %99 = vector.load %arg18[%c0_56, %c0_57] : memref<256x128xf32, #tpu.memory_space<vmem>>, vector<256x128xf32>
    tpu.vector_store %arg18[%c0_56, %c0_57], %98 {strides = array<i32>} : memref<256x128xf32, #tpu.memory_space<vmem>>, vector<256x128xf32>,
    return
  }
  func.func @transform_0(%arg0: i32) -> (i32, i32) {
    %c0_i32 = arith.constant 0 : i32
    %c0_i32_0 = arith.constant 0 : i32
    return %arg0, %c0_i32 : i32, i32
  }
  func.func @transform_1(%arg0: i32) -> (i32, i32) {
    %c0_i32 = arith.constant 0 : i32
    %c0_i32_0 = arith.constant 0 : i32
    %c0_i32_1 = arith.constant 0 : i32
    return %c0_i32, %c0_i32_0 : i32, i32
  }
  func.func @transform_2(%arg0: i32) -> (i32, i32) {
    %c0_i32 = arith.constant 0 : i32
    %c0_i32_0 = arith.constant 0 : i32
    %c0_i32_1 = arith.constant 0 : i32
    return %c0_i32, %c0_i32_0 : i32, i32
  }
  func.func @transform_3(%arg0: i32) -> (i32, i32) {
    %c0_i32 = arith.constant 0 : i32
    %c0_i32_0 = arith.constant 0 : i32
    %c0_i32_1 = arith.constant 0 : i32
    return %c0_i32, %c0_i32_0 : i32, i32
  }
  func.func @transform_4(%arg0: i32) -> (i32, i32) {
    %c0_i32 = arith.constant 0 : i32
    %c0_i32_0 = arith.constant 0 : i32
    %c0_i32_1 = arith.constant 0 : i32
    return %c0_i32, %c0_i32_0 : i32, i32
  }
  func.func @transform_5(%arg0: i32) -> (i32, i32) {
    %c0_i32 = arith.constant 0 : i32
    %c0_i32_0 = arith.constant 0 : i32
    %c0_i32_1 = arith.constant 0 : i32
    return %c0_i32, %c0_i32_0 : i32, i32
  }
  func.func @transform_6(%arg0: i32) -> (i32, i32) {
    %c0_i32 = arith.constant 0 : i32
    %c0_i32_0 = arith.constant 0 : i32
    %c0_i32_1 = arith.constant 0 : i32
    return %c0_i32, %c0_i32_0 : i32, i32
  }
  func.func @transform_7(%arg0: i32) -> (i32, i32) {
    %c0_i32 = arith.constant 0 : i32
    %c0_i32_0 = arith.constant 0 : i32
    %c0_i32_1 = arith.constant 0 : i32
    return %c0_i32, %c0_i32_0 : i32, i32
  }
  func.func @transform_8(%arg0: i32) -> (i32, i32) {
    %c0_i32 = arith.constant 0 : i32
    %c0_i32_0 = arith.constant 0 : i32
    %c0_i32_1 = arith.constant 0 : i32
    return %c0_i32, %c0_i32_0 : i32, i32
  }
  func.func @transform_9(%arg0: i32) -> (i32, i32) {
    %c0_i32 = arith.constant 0 : i32
    %c0_i32_0 = arith.constant 0 : i32
    %c0_i32_1 = arith.constant 0 : i32
    return %c0_i32, %c0_i32_0 : i32, i32
  }
  func.func @transform_10(%arg0: i32) -> (i32, i32) {
    %c0_i32 = arith.constant 0 : i32
    %c0_i32_0 = arith.constant 0 : i32
    %c0_i32_1 = arith.constant 0 : i32
    return %c0_i32, %c0_i32_0 : i32, i32
  }
  func.func @transform_11(%arg0: i32) -> (i32, i32) {
    %c0_i32 = arith.constant 0 : i32
    %c0_i32_0 = arith.constant 0 : i32
    %c0_i32_1 = arith.constant 0 : i32
    return %c0_i32, %c0_i32_0 : i32, i32
  }
  func.func @transform_12(%arg0: i32) -> (i32, i32) {
    %c0_i32 = arith.constant 0 : i32
    %c0_i32_0 = arith.constant 0 : i32
    %c0_i32_1 = arith.constant 0 : i32
    return %c0_i32, %c0_i32_0 : i32, i32
  }
  func.func @transform_13(%arg0: i32) -> (i32, i32) {
    %c0_i32 = arith.constant 0 : i32
    %c0_i32_0 = arith.constant 0 : i32
    %c0_i32_1 = arith.constant 0 : i32
    return %c0_i32, %c0_i32_0 : i32, i32
  }
  func.func @transform_14(%arg0: i32) -> (i32, i32) {
    %c0_i32 = arith.constant 0 : i32
    %c0_i32_0 = arith.constant 0 : i32
    %c0_i32_1 = arith.constant 0 : i32
    return %c0_i32, %c0_i32_0 : i32, i32
  }
  func.func @transform_15(%arg0: i32) -> (i32, i32) {
    %c0_i32 = arith.constant 0 : i32
    %c0_i32_0 = arith.constant 0 : i32
    %c0_i32_1 = arith.constant 0 : i32
    return %c0_i32, %c0_i32_0 : i32, i32
  }
  func.func @transform_16(%arg0: i32) -> (i32, i32) {
    %c0_i32 = arith.constant 0 : i32
    %c0_i32_0 = arith.constant 0 : i32
    %c0_i32_1 = arith.constant 0 : i32
    return %c0_i32, %c0_i32_0 : i32, i32
  }
  func.func @transform_17(%arg0: i32) -> (i32, i32) {
    %c0_i32 = arith.constant 0 : i32
    %c0_i32_0 = arith.constant 0 : i32
    return %arg0, %c0_i32 : i32, i32
  }
}

</mosaic_0001>

<bundles_post_ra>
// kernel: _lambda_.1
= control target key start
LH: loop header
LB: loop body
LE: loop exit
PB: predicated region body
PF: predicated region fallthrough
CT: control target
= control target key end

     0   :  { %s4744_s24 = smov 0   ;;  %s6526_s0 = inlined_call_operand.vmem [shape: f32[512,16], index: 0, kind: input, shape index: {}]   ;;  %s6527_s1 = inlined_call_operand.vmem [shape: bf16[16,128], index: 1, kind: input, shape index: {}]   ;;  %s6528_s2 = inlined_call_operand.vmem [shape: f32[1,128], index: 2, kind: input, shape index: {}]   ;;  %s6529_s3 = inlined_call_operand.vmem [shape: bf16[128,128], index: 3, kind: input, shape index: {}]   ;;  %s6530_s4 = inlined_call_operand.vmem [shape: f32[1,128], index: 4, kind: input, shape index: {}]   ;;  %s6531_s5 = inlined_call_operand.vmem [shape: bf16[128,128], index: 5, kind: input, shape index: {}]   ;;  %s6532_s6 = inlined_call_operand.vmem [shape: f32[1,128], index: 6, kind: input, shape index: {}]   ;;  %s6533_s7 = inlined_call_operand.vmem [shape: bf16[128,128], index: 7, kind: input, shape index: {}]   ;;  %s6534_s8 = inlined_call_operand.vmem [shape: f32[1,128], index: 8, kind: input, shape index: {}]   ;;  %s6535_s9 = inlined_call_operand.vmem [shape: bf16[128,128], index: 9, kind: input, shape index: {}]   ;;  %s6536_s10 = inlined_call_operand.vmem [shape: f32[1,128], index: 10, kind: input, shape index: {}]   ;;  %s6537_s11 = inlined_call_operand.vmem [shape: bf16[128,128], index: 11, kind: input, shape index: {}]   ;;  %s6538_s12 = inlined_call_operand.vmem [shape: f32[1,128], index: 12, kind: input, shape index: {}]   ;;  %s6539_s13 = inlined_call_operand.vmem [shape: bf16[128,128], index: 13, kind: input, shape index: {}]   ;;  %s6540_s14 = inlined_call_operand.vmem [shape: f32[1,128], index: 14, kind: input, shape index: {}]   ;;  %s6541_s15 = inlined_call_operand.vmem [shape: bf16[128,128], index: 15, kind: input, shape index: {}]   ;;  %s6542_s16 = inlined_call_operand.vmem [shape: f32[1,128], index: 16, kind: input, shape index: {}]   ;;  %s6543_s17 = inlined_call_operand.vmem [shape: f32[512,128], index: 17, kind: output, shape index: {}]  }
   0x1   :  { %6592 = sst [smem:[#allocation32_spill]] %s6526_s0 }
   0x2   :  { %6593 = sst [smem:[#allocation33_spill]] %s6527_s1 }
   0x3 LB: > { %s3630_s25 = sadd.s32 4294967295, %s4652_s24   ;;  %p3634_p0 = scmp.ge.s32.totalorder %s4652_s24, 1  ;;  %s4652_s24 = sphi %s4744_s24, %s27_s24  }
   0x4   : > { %p488_p1 = scmp.lt.s32.totalorder %s4652_s24, 3 }
   0x6   : > { %p489_p2 = pnand %p3634_p0, %p488_p1 }
   0x8   : > { %492 = sbr.rel (%p489_p2) target bundleno = 1962 (0x7aa), region = 88 }
   0xf   : > { %s6594_s28 = sld [smem:[#allocation33_spill]]  ;;  %s3635_s29 = sshll.u32 %s3630_s25, 5  ;;  %v4398_v1 = vld [vmem:[%s6529_s3] sm:$0xff]   ;;  %v4399_v2 = vld [vmem:[%s6529_s3 + $0x8] sm:$0xff]   ;;  %v4400_v3 = vld [vmem:[%s6529_s3 + $0x10] sm:$0xff]   ;;  %vm616_vm0 = vcmask 130048  }
  0x10   : > { %p541_p3 = scmp.lt.s32.totalorder %s3635_s29, 63  ;;  %3941 = vmatprep.subr.bf16.mxu1 %v4398_v1  ;;  %s6595_s22 = sld [smem:[#allocation32_spill]]  ;;  %v4401_v13 = vld [vmem:[%s6529_s3 + $0x18] sm:$0xff]   ;;  %v4402_v18 = vld [vmem:[%s6529_s3 + $0x20] sm:$0xff]   ;;  %v4403_v21 = vld [vmem:[%s6529_s3 + $0x28] sm:$0xff]  }
  0x11   : > { %3942 = vmatpush3.bf16.msra.mxu1 %v4398_v1  ;;  %v4404_v55 = vld [vmem:[%s6529_s3 + $0x30] sm:$0xff]   ;;  %v4405_v56 = vld [vmem:[%s6529_s3 + $0x38] sm:$0xff]   ;;  %v4406_v57 = vld [vmem:[%s6531_s5] sm:$0xff]  }
  0x12   : > { %s6677_s29 = smov (!%p541_p3, %s3635_s29), 63  ;;  %3943 = vmatprep.subr.bf16.mxu1 %v4399_v2  ;;  %v4407_v58 = vld [vmem:[%s6531_s5 + $0x8] sm:$0xff]   ;;  %v4408_v59 = vld [vmem:[%s6531_s5 + $0x10] sm:$0xff]   ;;  %v4409_v60 = vld [vmem:[%s6531_s5 + $0x18] sm:$0xff]  }
  0x13   : > { %s3636_s1 = sshll.u32 %s6677_s29, 3  ;;  %v4410_v61 = vld [vmem:[%s6531_s5 + $0x20] sm:$0xff]   ;;  %v4411_v62 = vld [vmem:[%s6531_s5 + $0x28] sm:$0xff]   ;;  %v4412_v63 = vld [vmem:[%s6531_s5 + $0x30] sm:$0xff]  }
  0x14   : > { %s6140_s18 = scalar_lea.vmem %s6543_s17, %s3636_s1 }
  0x15   : > { %v4397_v0 = vld [vmem:[%s6594_s28] sm:$0xff]   ;;  %3944 = vmatpush3.bf16.msra.mxu1 %v4399_v2 }
  0x16   : > { %3907 = vmatprep.subr.bf16.mxu0 %v4397_v0  ;;  %s4769_s23 = scalar_lea.vmem %s6595_s22, %s3636_s1  ;;  %3945 = vmatprep.subr.bf16.mxu1 %v4400_v3 }
  0x17   : > { %3908 = vmatpush3.bf16.msra.mxu0 %v4397_v0  ;;  %v553_v4 = vld [vmem:[%s4769_s23] sm:$0xff]  ;;  %v554_v5 = vld [vmem:[%s4769_s23 + $0x8] sm:$0xff]  ;;  %v555_v6 = vld [vmem:[%s4769_s23 + $0x10] sm:$0xff] }
  0x18   : > { %v585_v7 = vpack.c.bf16 %v554_v5, %v553_v4  ;;  %v556_v8 = vld [vmem:[%s4769_s23 + $0x18] sm:$0xff]  ;;  %v557_v9 = vld [vmem:[%s4769_s23 + $0x20] sm:$0xff]  ;;  %v558_v10 = vld [vmem:[%s4769_s23 + $0x28] sm:$0xff]  ;;  %3989 = vmatprep.subr.bf16.mxu0 %v4406_v57 }
  0x19   : > { %v586_v11 = vpack.c.bf16 %v556_v8, %v555_v6  ;;  %v587_v12 = vpack.c.bf16 %v558_v10, %v557_v9  ;;  %v559_v14 = vld [vmem:[%s4769_s23 + $0x30] sm:$0xff]  ;;  %v560_v15 = vld [vmem:[%s4769_s23 + $0x38] sm:$0xff]  ;;  %v561_v16 = vld [vmem:[%s4769_s23 + $0x40] sm:$0xff]  ;;  %3946 = vmatpush3.bf16.msra.mxu1 %v4400_v3 }
  0x1a   : > { %3909 = vmatprep.mubr.msk.bf16.mxu0 %vm616_vm0, %v585_v7  ;;  %v562_v17 = vld [vmem:[%s4769_s23 + $0x48] sm:$0xff]  ;;  %3947 = vmatprep.subr.bf16.mxu1 %v4401_v13  ;;  %v588_v19 = vpack.c.bf16 %v560_v15, %v559_v14  ;;  %v563_v22 = vld [vmem:[%s4769_s23 + $0x50] sm:$0xff]  ;;  %v564_v23 = vld [vmem:[%s4769_s23 + $0x58] sm:$0xff] }
  0x1b   : > { %3910 = vmatmul.mubr.msk.bf16.vlgmr.msra.gmra.mrb[0].mxu0 %vm616_vm0, %v586_v11  ;;  %v589_v20 = vpack.c.bf16 %v562_v17, %v561_v16  ;;  %v565_v24 = vld [vmem:[%s4769_s23 + $0x60] sm:$0xff]  ;;  %v566_v25 = vld [vmem:[%s4769_s23 + $0x68] sm:$0xff]  ;;  %v590_v26 = vpack.c.bf16 %v564_v23, %v563_v22  ;;  %v567_v28 = vld [vmem:[%s4769_s23 + $0x70] sm:$0xff] }
  0x1c   : > { %3913 = vmatprep.mubr.msk.bf16.mxu0 %vm616_vm0, %v587_v12  ;;  %v591_v27 = vpack.c.bf16 %v566_v25, %v565_v24  ;;  %v568_v29 = vld [vmem:[%s4769_s23 + $0x78] sm:$0xff]  ;;  %v569_v30 = vld [vmem:[%s4769_s23 + $0x80] sm:$0xff]  ;;  %v570_v31 = vld [vmem:[%s4769_s23 + $0x88] sm:$0xff]  ;;  %3990 = vmatpush3.bf16.msra.mxu0 %v4406_v57 }
  0x1d   : > { %3948 = vmatpush3.bf16.msra.mxu1 %v4401_v13  ;;  %v592_v32 = vpack.c.bf16 %v568_v29, %v567_v28  ;;  %v593_v33 = vpack.c.bf16 %v570_v31, %v569_v30  ;;  %v571_v34 = vld [vmem:[%s4769_s23 + $0x90] sm:$0xff]  ;;  %v572_v35 = vld [vmem:[%s4769_s23 + $0x98] sm:$0xff]  ;;  %v573_v36 = vld [vmem:[%s4769_s23 + $0xa0] sm:$0xff]  ;;  %3991 = vmatprep.subr.bf16.mxu0 %v4407_v58 }
  0x1e   : > { %3949 = vmatprep.subr.bf16.mxu1 %v4402_v18  ;;  %v574_v37 = vld [vmem:[%s4769_s23 + $0xa8] sm:$0xff]  ;;  %v594_v38 = vpack.c.bf16 %v572_v35, %v571_v34  ;;  %v575_v40 = vld [vmem:[%s4769_s23 + $0xb0] sm:$0xff]  ;;  %v576_v41 = vld [vmem:[%s4769_s23 + $0xb8] sm:$0xff] }
  0x1f   : > { %v595_v39 = vpack.c.bf16 %v574_v37, %v573_v36  ;;  %v577_v42 = vld [vmem:[%s4769_s23 + $0xc0] sm:$0xff]  ;;  %v578_v43 = vld [vmem:[%s4769_s23 + $0xc8] sm:$0xff]  ;;  %v596_v44 = vpack.c.bf16 %v576_v41, %v575_v40  ;;  %v579_v46 = vld [vmem:[%s4769_s23 + $0xd0] sm:$0xff] }
  0x20   : > { %v597_v45 = vpack.c.bf16 %v578_v43, %v577_v42  ;;  %v580_v47 = vld [vmem:[%s4769_s23 + $0xd8] sm:$0xff]  ;;  %v581_v48 = vld [vmem:[%s4769_s23 + $0xe0] sm:$0xff]  ;;  %v582_v49 = vld [vmem:[%s4769_s23 + $0xe8] sm:$0xff]  ;;  %3992 = vmatpush3.bf16.msra.mxu0 %v4407_v58 }
  0x21   : > { %3950 = vmatpush3.bf16.msra.mxu1 %v4402_v18  ;;  %v598_v50 = vpack.c.bf16 %v580_v47, %v579_v46  ;;  %v599_v51 = vpack.c.bf16 %v582_v49, %v581_v48  ;;  %v583_v52 = vld [vmem:[%s4769_s23 + $0xf0] sm:$0xff]  ;;  %v584_v53 = vld [vmem:[%s4769_s23 + $0xf8] sm:$0xff]  ;;  %3993 = vmatprep.subr.bf16.mxu0 %v4408_v59  ;;  %v4861_v0 = vld [vmem:[%s6528_s2] ss:$0 sm:$0xff] }
  0x22   : > { %3951 = vmatprep.subr.bf16.mxu1 %v4403_v21  ;;  %v600_v54 = vpack.c.bf16 %v584_v53, %v583_v52 }
  0x23   : > { %3914 = vmatmul.mubr.msk.bf16.gmra.mrb[4].mxu0 %vm616_vm0, %v588_v19 }
  0x24   : > { %3917 = vmatprep.mubr.msk.bf16.mxu0 %vm616_vm0, %v589_v20  ;;  %3994 = vmatpush3.bf16.msra.mxu0 %v4408_v59 }
  0x25   : > { %3952 = vmatpush3.bf16.msra.mxu1 %v4403_v21  ;;  %3995 = vmatprep.subr.bf16.mxu0 %v4409_v60 }
  0x26   : > { %3953 = vmatprep.subr.bf16.mxu1 %v4404_v55 }
  0x28   : > { %3996 = vmatpush3.bf16.msra.mxu0 %v4409_v60 }
  0x29   : > { %3954 = vmatpush3.bf16.msra.mxu1 %v4404_v55  ;;  %3997 = vmatprep.subr.bf16.mxu0 %v4410_v61 }
  0x2a   : > { %3955 = vmatprep.subr.bf16.mxu1 %v4405_v56 }
  0x2b   : > { %3918 = vmatmul.mubr.msk.bf16.gmra.mrb[8].mxu0 %vm616_vm0, %v590_v26 }
  0x2c   : > { %3921 = vmatprep.mubr.msk.bf16.mxu0 %vm616_vm0, %v591_v27  ;;  %3998 = vmatpush3.bf16.msra.mxu0 %v4410_v61 }
  0x2d   : > { %3956 = vmatpush3.bf16.msra.mxu1 %v4405_v56  ;;  %3999 = vmatprep.subr.bf16.mxu0 %v4411_v62 }
  0x30   : > { %4000 = vmatpush3.bf16.msra.mxu0 %v4411_v62 }
  0x31   : > { %4001 = vmatprep.subr.bf16.mxu0 %v4412_v63 }
  0x33   : > { %3922 = vmatmul.mubr.msk.bf16.gmra.mrb[12].mxu0 %vm616_vm0, %v592_v32 }
  0x34   : > { %3925 = vmatprep.mubr.msk.bf16.mxu0 %vm616_vm0, %v593_v33  ;;  %4002 = vmatpush3.bf16.msra.mxu0 %v4412_v63 }
  0x3b   : > { %3926 = vmatmul.mubr.msk.bf16.gmra.mrb[16].mxu0 %vm616_vm0, %v594_v38 }
  0x3c   : > { %3929 = vmatprep.mubr.msk.bf16.mxu0 %vm616_vm0, %v595_v39 }
  0x43   : > { %3930 = vmatmul.mubr.msk.bf16.gmra.mrb[20].mxu0 %vm616_vm0, %v596_v44 }
  0x44   : > { %3933 = vmatprep.mubr.msk.bf16.mxu0 %vm616_vm0, %v597_v45 }
  0x4b   : > { %3934 = vmatmul.mubr.msk.bf16.gmra.mrb[24].mxu0 %vm616_vm0, %v598_v50 }
  0x4c   : > { %3937 = vmatprep.mubr.msk.bf16.mxu0 %vm616_vm0, %v599_v51 }
  0x53   : > { %3938 = vmatmul.mubr.msk.bf16.gmra.mrb[28].mxu0 %vm616_vm0, %v600_v54 }
  0xee   : > { %v3911_v1 = vpop.f32.mrb[0].mxu0 }
  0xef   : > { %v699_v2 = vpop.f32.mrb[1].mxu0  ;;  %v4867_v5 = vadd.f32 %v3911_v1, %v4861_v0 }
  0xf0   : > { %v4864_v3 = vadd.f32 %v4861_v0, %v699_v2  ;;  %v3912_v4 = vpop.f32.mrb[2].mxu0 }
  0xf1   : > { %v4870_v6 = vadd.f32 %v3912_v4, %v4861_v0  ;;  %v702_v7 = vpop.f32.mrb[3].mxu0  ;;  %v828_v12 = vmax.f32 %v4867_v5, 0.0 }
  0xf2   : > { %v4873_v8 = vadd.f32 %v4861_v0, %v702_v7  ;;  %v826_v10 = vmax.f32 %v4864_v3, 0.0 }
  0xf3   : > { %v829_v9 = vmax.f32 %v4870_v6, 0.0 }
  0xf4   : > { %v827_v11 = vmax.f32 %v4873_v8, 0.0 }
  0xf5   : > { %v859_v15 = vpack.c.bf16 %v829_v9, %v828_v12 }
  0xf6   : > { %v3915_v13 = vpop.f32.mrb[4].mxu0  ;;  %v858_v14 = vpack.c.bf16 %v827_v11, %v826_v10 }
  0xf7   : > { %v4888_v16 = vadd.f32 %v3915_v13, %v4861_v0  ;;  %v715_v17 = vpop.f32.mrb[5].mxu0 }
  0xf8   : > { %v4891_v18 = vadd.f32 %v4861_v0, %v715_v17  ;;  %v3916_v19 = vpop.f32.mrb[6].mxu0  ;;  %3957 = vmatprep.mubr.bf16.mxu1 %v858_v14 }
  0xf9   : > { %v4894_v20 = vadd.f32 %v3916_v19, %v4861_v0  ;;  %v718_v21 = vpop.f32.mrb[7].mxu0  ;;  %3958 = vmatmul.mubr.bf16.vlgmr.msra.gmra.mrb[0].mxu1 %v859_v15  ;;  %v832_v23 = vmax.f32 %v4888_v16, 0.0 }
  0xfa   : > { %v4897_v22 = vadd.f32 %v4861_v0, %v718_v21  ;;  %v830_v25 = vmax.f32 %v4891_v18, 0.0  ;;  %v4432_v18 = vld [vmem:[%s6537_s11 + $0x10] sm:$0xff]  }
  0xfb   : > { %v833_v24 = vmax.f32 %v4894_v20, 0.0 }
  0xfc   : > { %v831_v26 = vmax.f32 %v4897_v22, 0.0 }
  0xfd   : > { %v861_v29 = vpack.c.bf16 %v833_v24, %v832_v23 }
  0xfe   : > { %v860_v27 = vpack.c.bf16 %v831_v26, %v830_v25  ;;  %v3919_v28 = vpop.f32.mrb[8].mxu0 }
  0xff   : > { %v4912_v30 = vadd.f32 %v3919_v28, %v4861_v0  ;;  %v731_v31 = vpop.f32.mrb[9].mxu0 }
 0x100   : > { %v4915_v32 = vadd.f32 %v4861_v0, %v731_v31  ;;  %v3920_v33 = vpop.f32.mrb[10].mxu0  ;;  %3961 = vmatprep.mubr.bf16.mxu1 %v860_v27 }
 0x101   : > { %v4918_v34 = vadd.f32 %v3920_v33, %v4861_v0  ;;  %v734_v35 = vpop.f32.mrb[11].mxu0  ;;  %3962 = vmatmul.mubr.bf16.gmra.mrb[4].mxu1 %v861_v29  ;;  %v836_v37 = vmax.f32 %v4912_v30, 0.0 }
 0x102   : > { %v4921_v36 = vadd.f32 %v4861_v0, %v734_v35  ;;  %v834_v39 = vmax.f32 %v4915_v32, 0.0  ;;  %v4434_v32 = vld [vmem:[%s6537_s11 + $0x20] sm:$0xff]  }
 0x103   : > { %v837_v38 = vmax.f32 %v4918_v34, 0.0 }
 0x104   : > { %v835_v40 = vmax.f32 %v4921_v36, 0.0 }
 0x105   : > { %v863_v43 = vpack.c.bf16 %v837_v38, %v836_v37 }
 0x106   : > { %v862_v41 = vpack.c.bf16 %v835_v40, %v834_v39  ;;  %v3923_v42 = vpop.f32.mrb[12].mxu0 }
 0x107   : > { %v4936_v44 = vadd.f32 %v3923_v42, %v4861_v0  ;;  %v747_v45 = vpop.f32.mrb[13].mxu0 }
 0x108   : > { %v4939_v46 = vadd.f32 %v4861_v0, %v747_v45  ;;  %v3924_v47 = vpop.f32.mrb[14].mxu0  ;;  %3965 = vmatprep.mubr.bf16.mxu1 %v862_v41 }
 0x109   : > { %v4942_v48 = vadd.f32 %v3924_v47, %v4861_v0  ;;  %v750_v49 = vpop.f32.mrb[15].mxu0  ;;  %3966 = vmatmul.mubr.bf16.gmra.mrb[8].mxu1 %v863_v43  ;;  %v6563_v51 = vmax.f32 %v4936_v44, 0.0 }
 0x10a   : > { %v4945_v50 = vadd.f32 %v4861_v0, %v750_v49  ;;  %v6562_v53 = vmax.f32 %v4939_v46, 0.0 }
 0x10b   : > { %v6561_v52 = vmax.f32 %v4942_v48, 0.0 }
 0x10c   : > { %v6560_v54 = vmax.f32 %v4945_v50, 0.0 }
 0x10d   : > { %v865_v57 = vpack.c.bf16 %v6561_v52, %v6563_v51 }
 0x10e   : > { %v864_v55 = vpack.c.bf16 %v6560_v54, %v6562_v53  ;;  %v3927_v56 = vpop.f32.mrb[16].mxu0 }
 0x10f   : > { %v4960_v58 = vadd.f32 %v3927_v56, %v4861_v0  ;;  %v763_v59 = vpop.f32.mrb[17].mxu0 }
 0x110   : > { %v4963_v60 = vadd.f32 %v4861_v0, %v763_v59  ;;  %v3928_v61 = vpop.f32.mrb[18].mxu0  ;;  %3969 = vmatprep.mubr.bf16.mxu1 %v864_v55 }
 0x111   : > { %v4966_v62 = vadd.f32 %v3928_v61, %v4861_v0  ;;  %v766_v63 = vpop.f32.mrb[19].mxu0  ;;  %3970 = vmatmul.mubr.bf16.gmra.mrb[12].mxu1 %v865_v57  ;;  %v6559_v2 = vmax.f32 %v4960_v58, 0.0 }
 0x112   : > { %v4969_v1 = vadd.f32 %v4861_v0, %v766_v63  ;;  %v6558_v7 = vmax.f32 %v4963_v60, 0.0 }
 0x113   : > { %v6557_v4 = vmax.f32 %v4966_v62, 0.0 }
 0x114   : > { %v6556_v13 = vmax.f32 %v4969_v1, 0.0 }
 0x115   : > { %v867_v17 = vpack.c.bf16 %v6557_v4, %v6559_v2 }
 0x116   : > { %v866_v14 = vpack.c.bf16 %v6556_v13, %v6558_v7  ;;  %v3931_v15 = vpop.f32.mrb[20].mxu0 }
 0x117   : > { %v4984_v19 = vadd.f32 %v3931_v15, %v4861_v0  ;;  %v779_v21 = vpop.f32.mrb[21].mxu0 }
 0x118   : > { %v4987_v27 = vadd.f32 %v4861_v0, %v779_v21  ;;  %v3932_v28 = vpop.f32.mrb[22].mxu0  ;;  %3973 = vmatprep.mubr.bf16.mxu1 %v866_v14 }
 0x119   : > { %v4990_v29 = vadd.f32 %v3932_v28, %v4861_v0  ;;  %v782_v31 = vpop.f32.mrb[23].mxu0  ;;  %3974 = vmatmul.mubr.bf16.gmra.mrb[16].mxu1 %v867_v17  ;;  %v6555_v35 = vmax.f32 %v4984_v19, 0.0 }
 0x11a   : > { %v4993_v33 = vadd.f32 %v4861_v0, %v782_v31  ;;  %v6554_v42 = vmax.f32 %v4987_v27, 0.0 }
 0x11b   : > { %v6545_v41 = vmax.f32 %v4990_v29, 0.0 }
 0x11c   : > { %v6544_v43 = vmax.f32 %v4993_v33, 0.0 }
 0x11d   : > { %v869_v49 = vpack.c.bf16 %v6545_v41, %v6555_v35 }
 0x11e   : > { %v868_v45 = vpack.c.bf16 %v6544_v43, %v6554_v42  ;;  %v3935_v47 = vpop.f32.mrb[24].mxu0 }
 0x11f   : > { %v5008_v55 = vadd.f32 %v3935_v47, %v4861_v0  ;;  %v795_v56 = vpop.f32.mrb[25].mxu0 }
 0x120   : > { %v5011_v57 = vadd.f32 %v4861_v0, %v795_v56  ;;  %v3936_v59 = vpop.f32.mrb[26].mxu0  ;;  %3977 = vmatprep.mubr.bf16.mxu1 %v868_v45 }
 0x121   : > { %v5014_v61 = vadd.f32 %v3936_v59, %v4861_v0  ;;  %v798_v63 = vpop.f32.mrb[27].mxu0  ;;  %3978 = vmatmul.mubr.bf16.gmra.mrb[20].mxu1 %v869_v49  ;;  %v6549_v15 = vmax.f32 %v5008_v55, 0.0 }
 0x122   : > { %v5017_v14 = vadd.f32 %v4861_v0, %v798_v63  ;;  %v6547_v21 = vmax.f32 %v5011_v57, 0.0 }
 0x123   : > { %v6548_v17 = vmax.f32 %v5014_v61, 0.0 }
 0x124   : > { %v6546_v28 = vmax.f32 %v5017_v14, 0.0 }
 0x125   : > { %v871_v47 = vpack.c.bf16 %v6548_v17, %v6549_v15 }
 0x126   : > { %v870_v31 = vpack.c.bf16 %v6546_v28, %v6547_v21  ;;  %v3939_v45 = vpop.f32.mrb[28].mxu0 }
 0x127   : > { %v5032_v49 = vadd.f32 %v3939_v45, %v4861_v0  ;;  %v811_v56 = vpop.f32.mrb[29].mxu0 }
 0x128   : > { %v5035_v59 = vadd.f32 %v4861_v0, %v811_v56  ;;  %v3940_v63 = vpop.f32.mrb[30].mxu0  ;;  %3981 = vmatprep.mubr.bf16.mxu1 %v870_v31  ;;  %v4419_v56 = vld [vmem:[%s6533_s7] sm:$0xff]  }
 0x129   : > { %v5038_v43 = vadd.f32 %v3940_v63, %v4861_v0  ;;  %v814_v41 = vpop.f32.mrb[31].mxu0  ;;  %3982 = vmatmul.mubr.bf16.gmra.mrb[24].mxu1 %v871_v47  ;;  %v6553_v21 = vmax.f32 %v5032_v49, 0.0  ;;  %v4420_v63 = vld [vmem:[%s6533_s7 + $0x8] sm:$0xff]   ;;  %4037 = vmatprep.subr.bf16.mxu1 %v4419_v56 }
 0x12a   : > { %v5041_v28 = vadd.f32 %v4861_v0, %v814_v41  ;;  %v6552_v45 = vmax.f32 %v5035_v59, 0.0  ;;  %v4413_v0 = vld [vmem:[%s6531_s5 + $0x38] sm:$0xff]   ;;  %v4414_v41 = vld [vmem:[%s6535_s9] sm:$0xff]   ;;  %4038 = vmatpush3.bf16.msra.mxu1 %v4419_v56 }
 0x12b   : > { %v6551_v17 = vmax.f32 %v5038_v43, 0.0  ;;  %4003 = vmatprep.subr.bf16.mxu0 %v4413_v0  ;;  %4039 = vmatprep.subr.bf16.mxu1 %v4420_v63  ;;  %v5079_v56 = vld [vmem:[%s6530_s4] ss:$0 sm:$0xff] }
 0x12c   : > { %v6550_v15 = vmax.f32 %v5041_v28, 0.0  ;;  %4004 = vmatpush3.bf16.msra.mxu0 %v4413_v0  ;;  %v4425_v0 = vld [vmem:[%s6533_s7 + $0x20] sm:$0xff]  }
 0x12d   : > { %v873_v47 = vpack.c.bf16 %v6551_v17, %v6553_v21  ;;  %4085 = vmatprep.subr.bf16.mxu0 %v4414_v41 }
 0x12e   : > { %v872_v31 = vpack.c.bf16 %v6550_v15, %v6552_v45  ;;  %4040 = vmatpush3.bf16.msra.mxu1 %v4420_v63 }
 0x130   : > { %3985 = vmatprep.mubr.bf16.mxu1 %v872_v31  ;;  %v4422_v31 = vld [vmem:[%s6533_s7 + $0x10] sm:$0xff]  }
 0x131   : > { %3986 = vmatmul.mubr.bf16.gmra.mrb[28].mxu1 %v873_v47  ;;  %4041 = vmatprep.subr.bf16.mxu1 %v4422_v31  ;;  %v4423_v47 = vld [vmem:[%s6533_s7 + $0x18] sm:$0xff]  }
 0x132   : > { %4042 = vmatpush3.bf16.msra.mxu1 %v4422_v31 }
 0x133   : > { %4043 = vmatprep.subr.bf16.mxu1 %v4423_v47 }
 0x136   : > { %4044 = vmatpush3.bf16.msra.mxu1 %v4423_v47 }
 0x137   : > { %4045 = vmatprep.subr.bf16.mxu1 %v4425_v0 }
 0x13a   : > { %4046 = vmatpush3.bf16.msra.mxu1 %v4425_v0 }
 0x1cc   : > { %v3959_v63 = vpop.f32.mrb[0].mxu1 }
 0x1cd   : > { %v988_v15 = vadd.f32 %v3959_v63, %v5079_v56  ;;  %v979_v17 = vpop.f32.mrb[1].mxu1 }
 0x1ce   : > { %v980_v45 = vadd.f32 %v5079_v56, %v979_v17  ;;  %v3960_v31 = vpop.f32.mrb[2].mxu1  ;;  %v4415_v17 = vld [vmem:[%s6535_s9 + $0x8] sm:$0xff]  }
 0x1cf   : > { %v991_v21 = vadd.f32 %v3960_v31, %v5079_v56  ;;  %v982_v42 = vpop.f32.mrb[3].mxu1  ;;  %v1108_v47 = vmax.f32 %v988_v15, 0.0 }
 0x1d0   : > { %v983_v35 = vadd.f32 %v5079_v56, %v982_v42  ;;  %v1106_v0 = vmax.f32 %v980_v45, 0.0 }
 0x1d1   : > { %v1109_v13 = vmax.f32 %v991_v21, 0.0 }
 0x1d2   : > { %v1107_v4 = vmax.f32 %v983_v35, 0.0 }
 0x1d3   : > { %v1139_v7 = vpack.c.bf16 %v1109_v13, %v1108_v47 }
 0x1d4   : > { %v1138_v2 = vpack.c.bf16 %v1107_v4, %v1106_v0  ;;  %v3963_v54 = vpop.f32.mrb[4].mxu1 }
 0x1d5   : > { %v1004_v52 = vadd.f32 %v3963_v54, %v5079_v56  ;;  %v995_v53 = vpop.f32.mrb[5].mxu1  ;;  %v4416_v54 = vld [vmem:[%s6535_s9 + $0x10] sm:$0xff]  }
 0x1d6   : > { %v996_v63 = vadd.f32 %v5079_v56, %v995_v53  ;;  %v3964_v31 = vpop.f32.mrb[6].mxu1  ;;  %4005 = vmatprep.mubr.bf16.mxu0 %v1138_v2 }
 0x1d7   : > { %v1007_v42 = vadd.f32 %v3964_v31, %v5079_v56  ;;  %v998_v15 = vpop.f32.mrb[7].mxu1  ;;  %4006 = vmatmul.mubr.bf16.vlgmr.msra.gmra.mrb[32].mxu0 %v1139_v7  ;;  %v1112_v4 = vmax.f32 %v1004_v52, 0.0  ;;  %v4417_v52 = vld [vmem:[%s6535_s9 + $0x18] sm:$0xff]  }
 0x1d8   : > { %v999_v35 = vadd.f32 %v5079_v56, %v998_v15  ;;  %4086 = vmatpush3.bf16.msra.mxu0 %v4414_v41  ;;  %v1110_v21 = vmax.f32 %v996_v63, 0.0 }
 0x1d9   : > { %v1113_v13 = vmax.f32 %v1007_v42, 0.0  ;;  %4087 = vmatprep.subr.bf16.mxu0 %v4415_v17 }
 0x1da   : > { %v1111_v45 = vmax.f32 %v999_v35, 0.0 }
 0x1db   : > { %v1141_v47 = vpack.c.bf16 %v1113_v13, %v1112_v4  ;;  %v4418_v4 = vld [vmem:[%s6535_s9 + $0x20] sm:$0xff]  }
 0x1dc   : > { %v1140_v53 = vpack.c.bf16 %v1111_v45, %v1110_v21  ;;  %v3967_v0 = vpop.f32.mrb[8].mxu1  ;;  %4088 = vmatpush3.bf16.msra.mxu0 %v4415_v17 }
 0x1dd   : > { %v1020_v2 = vadd.f32 %v3967_v0, %v5079_v56  ;;  %v1011_v31 = vpop.f32.mrb[9].mxu1  ;;  %4089 = vmatprep.subr.bf16.mxu0 %v4416_v54 }
 0x1de   : > { %v1012_v7 = vadd.f32 %v5079_v56, %v1011_v31  ;;  %v3968_v41 = vpop.f32.mrb[10].mxu1  ;;  %4009 = vmatprep.mubr.bf16.mxu0 %v1140_v53 }
 0x1df   : > { %v1023_v42 = vadd.f32 %v3968_v41, %v5079_v56  ;;  %v1014_v63 = vpop.f32.mrb[11].mxu1  ;;  %4010 = vmatmul.mubr.bf16.gmra.mrb[36].mxu0 %v1141_v47  ;;  %v1116_v17 = vmax.f32 %v1020_v2, 0.0 }
 0x1e0   : > { %v1015_v15 = vadd.f32 %v5079_v56, %v1014_v63  ;;  %4090 = vmatpush3.bf16.msra.mxu0 %v4416_v54  ;;  %v1114_v13 = vmax.f32 %v1012_v7, 0.0  ;;  %v4421_v54 = vld [vmem:[%s6535_s9 + $0x28] sm:$0xff]  }
 0x1e1   : > { %v1117_v35 = vmax.f32 %v1023_v42, 0.0  ;;  %4091 = vmatprep.subr.bf16.mxu0 %v4417_v52 }
 0x1e2   : > { %v1115_v21 = vmax.f32 %v1015_v15, 0.0 }
 0x1e3   : > { %v1143_v45 = vpack.c.bf16 %v1117_v35, %v1116_v17  ;;  %v4424_v17 = vld [vmem:[%s6535_s9 + $0x30] sm:$0xff]  }
 0x1e4   : > { %v1142_v0 = vpack.c.bf16 %v1115_v21, %v1114_v13  ;;  %v3971_v31 = vpop.f32.mrb[12].mxu1  ;;  %4092 = vmatpush3.bf16.msra.mxu0 %v4417_v52 }
 0x1e5   : > { %v1036_v53 = vadd.f32 %v3971_v31, %v5079_v56  ;;  %v1027_v41 = vpop.f32.mrb[13].mxu1  ;;  %4093 = vmatprep.subr.bf16.mxu0 %v4418_v4 }
 0x1e6   : > { %v1028_v47 = vadd.f32 %v5079_v56, %v1027_v41  ;;  %v3972_v2 = vpop.f32.mrb[14].mxu1  ;;  %4013 = vmatprep.mubr.bf16.mxu0 %v1142_v0 }
 0x1e7   : > { %v1039_v42 = vadd.f32 %v3972_v2, %v5079_v56  ;;  %v1030_v7 = vpop.f32.mrb[15].mxu1  ;;  %4014 = vmatmul.mubr.bf16.gmra.mrb[40].mxu0 %v1143_v45  ;;  %v1120_v52 = vmax.f32 %v1036_v53, 0.0 }
 0x1e8   : > { %v1031_v63 = vadd.f32 %v5079_v56, %v1030_v7  ;;  %4094 = vmatpush3.bf16.msra.mxu0 %v4418_v4  ;;  %v1118_v35 = vmax.f32 %v1028_v47, 0.0 }
 0x1e9   : > { %v1121_v15 = vmax.f32 %v1039_v42, 0.0  ;;  %4095 = vmatprep.subr.bf16.mxu0 %v4421_v54 }
 0x1ea   : > { %v1119_v13 = vmax.f32 %v1031_v63, 0.0 }
 0x1eb   : > { %v1145_v21 = vpack.c.bf16 %v1121_v15, %v1120_v52 }
 0x1ec   : > { %v1144_v31 = vpack.c.bf16 %v1119_v13, %v1118_v35  ;;  %v3975_v41 = vpop.f32.mrb[16].mxu1  ;;  %4096 = vmatpush3.bf16.msra.mxu0 %v4421_v54 }
 0x1ed   : > { %v1052_v0 = vadd.f32 %v3975_v41, %v5079_v56  ;;  %v1043_v2 = vpop.f32.mrb[17].mxu1  ;;  %4097 = vmatprep.subr.bf16.mxu0 %v4424_v17 }
 0x1ee   : > { %v1044_v45 = vadd.f32 %v5079_v56, %v1043_v2  ;;  %v3976_v4 = vpop.f32.mrb[18].mxu1  ;;  %4017 = vmatprep.mubr.bf16.mxu0 %v1144_v31 }
 0x1ef   : > { %v1055_v53 = vadd.f32 %v3976_v4, %v5079_v56  ;;  %v1046_v42 = vpop.f32.mrb[19].mxu1  ;;  %4018 = vmatmul.mubr.bf16.gmra.mrb[44].mxu0 %v1145_v21  ;;  %v1124_v47 = vmax.f32 %v1052_v0, 0.0 }
 0x1f0   : > { %v1047_v7 = vadd.f32 %v5079_v56, %v1046_v42  ;;  %4098 = vmatpush3.bf16.msra.mxu0 %v4424_v17  ;;  %v1122_v52 = vmax.f32 %v1044_v45, 0.0 }
 0x1f1   : > { %v1125_v63 = vmax.f32 %v1055_v53, 0.0 }
 0x1f2   : > { %v1123_v15 = vmax.f32 %v1047_v7, 0.0 }
 0x1f3   : > { %v1147_v54 = vpack.c.bf16 %v1125_v63, %v1124_v47 }
 0x1f4   : > { %v1146_v35 = vpack.c.bf16 %v1123_v15, %v1122_v52  ;;  %v3979_v13 = vpop.f32.mrb[20].mxu1 }
 0x1f5   : > { %v1068_v41 = vadd.f32 %v3979_v13, %v5079_v56  ;;  %v1059_v51 = vpop.f32.mrb[21].mxu1 }
 0x1f6   : > { %v1060_v2 = vadd.f32 %v5079_v56, %v1059_v51  ;;  %v3980_v31 = vpop.f32.mrb[22].mxu1  ;;  %4021 = vmatprep.mubr.bf16.mxu0 %v1146_v35 }
 0x1f7   : > { %v1071_v4 = vadd.f32 %v3980_v31, %v5079_v56  ;;  %v1062_v21 = vpop.f32.mrb[23].mxu1  ;;  %4022 = vmatmul.mubr.bf16.gmra.mrb[48].mxu0 %v1147_v54  ;;  %v1128_v0 = vmax.f32 %v1068_v41, 0.0 }
 0x1f8   : > { %v1063_v17 = vadd.f32 %v5079_v56, %v1062_v21  ;;  %v1126_v45 = vmax.f32 %v1060_v2, 0.0 }
 0x1f9   : > { %v1129_v53 = vmax.f32 %v1071_v4, 0.0 }
 0x1fa   : > { %v1127_v42 = vmax.f32 %v1063_v17, 0.0 }
 0x1fb   : > { %v1149_v7 = vpack.c.bf16 %v1129_v53, %v1128_v0 }
 0x1fc   : > { %v1148_v47 = vpack.c.bf16 %v1127_v42, %v1126_v45  ;;  %v3983_v63 = vpop.f32.mrb[24].mxu1 }
 0x1fd   : > { %v1084_v52 = vadd.f32 %v3983_v63, %v5079_v56  ;;  %v1075_v15 = vpop.f32.mrb[25].mxu1 }
 0x1fe   : > { %v1076_v51 = vadd.f32 %v5079_v56, %v1075_v15  ;;  %v3984_v13 = vpop.f32.mrb[26].mxu1  ;;  %4025 = vmatprep.mubr.bf16.mxu0 %v1148_v47 }
 0x1ff   : > { %v1087_v35 = vadd.f32 %v3984_v13, %v5079_v56  ;;  %v1078_v31 = vpop.f32.mrb[27].mxu1  ;;  %4026 = vmatmul.mubr.bf16.gmra.mrb[52].mxu0 %v1149_v7  ;;  %v1132_v41 = vmax.f32 %v1084_v52, 0.0 }
 0x200   : > { %v1079_v54 = vadd.f32 %v5079_v56, %v1078_v31  ;;  %v1130_v2 = vmax.f32 %v1076_v51, 0.0 }
 0x201   : > { %v1133_v4 = vmax.f32 %v1087_v35, 0.0 }
 0x202   : > { %v1131_v21 = vmax.f32 %v1079_v54, 0.0 }
 0x203   : > { %v1151_v17 = vpack.c.bf16 %v1133_v4, %v1132_v41  ;;  %v4426_v4 = vld [vmem:[%s6533_s7 + $0x28] sm:$0xff]  }
 0x204   : > { %v1150_v0 = vpack.c.bf16 %v1131_v21, %v1130_v2  ;;  %v3987_v53 = vpop.f32.mrb[28].mxu1  ;;  %4047 = vmatprep.subr.bf16.mxu1 %v4426_v4  ;;  %v4428_v2 = vld [vmem:[%s6533_s7 + $0x30] sm:$0xff]   ;;  %v4429_v21 = vld [vmem:[%s6533_s7 + $0x38] sm:$0xff]  }
 0x205   : > { %v1100_v45 = vadd.f32 %v3987_v53, %v5079_v56  ;;  %v1091_v42 = vpop.f32.mrb[29].mxu1  ;;  %4048 = vmatpush3.bf16.msra.mxu1 %v4426_v4 }
 0x206   : > { %v1092_v63 = vadd.f32 %v5079_v56, %v1091_v42  ;;  %v3988_v15 = vpop.f32.mrb[30].mxu1  ;;  %4029 = vmatprep.mubr.bf16.mxu0 %v1150_v0  ;;  %4049 = vmatprep.subr.bf16.mxu1 %v4428_v2  ;;  %v5149_v0 = vld [vmem:[%s6532_s6] ss:$0 sm:$0xff] }
 0x207   : > { %v1103_v47 = vadd.f32 %v3988_v15, %v5079_v56  ;;  %v1094_v13 = vpop.f32.mrb[31].mxu1  ;;  %4030 = vmatmul.mubr.bf16.gmra.mrb[56].mxu0 %v1151_v17  ;;  %v1136_v52 = vmax.f32 %v1100_v45, 0.0  ;;  %v4430_v17 = vld [vmem:[%s6537_s11] sm:$0xff]  }
 0x208   : > { %v1095_v7 = vadd.f32 %v5079_v56, %v1094_v13  ;;  %v1134_v51 = vmax.f32 %v1092_v63, 0.0  ;;  %v4427_v56 = vld [vmem:[%s6535_s9 + $0x38] sm:$0xff]  }
 0x209   : > { %v1137_v35 = vmax.f32 %v1103_v47, 0.0  ;;  %4050 = vmatpush3.bf16.msra.mxu1 %v4428_v2  ;;  %4099 = vmatprep.subr.bf16.mxu0 %v4427_v56 }
 0x20a   : > { %v1135_v31 = vmax.f32 %v1095_v7, 0.0  ;;  %4051 = vmatprep.subr.bf16.mxu1 %v4429_v21  ;;  %4100 = vmatpush3.bf16.msra.mxu0 %v4427_v56 }
 0x20b   : > { %v1153_v54 = vpack.c.bf16 %v1137_v35, %v1136_v52 }
 0x20c   : > { %v1152_v41 = vpack.c.bf16 %v1135_v31, %v1134_v51 }
 0x20d   : > { %4052 = vmatpush3.bf16.msra.mxu1 %v4429_v21 }
 0x20e   : > { %4033 = vmatprep.mubr.bf16.mxu0 %v1152_v41  ;;  %4133 = vmatprep.subr.bf16.mxu1 %v4430_v17 }
 0x20f   : > { %4034 = vmatmul.mubr.bf16.gmra.mrb[60].mxu0 %v1153_v54 }
 0x2aa   : > { %v4007_v53 = vpop.f32.mrb[32].mxu0 }
 0x2ab   : > { %v1268_v45 = vadd.f32 %v4007_v53, %v5149_v0  ;;  %v1259_v42 = vpop.f32.mrb[33].mxu0 }
 0x2ac   : > { %v1260_v63 = vadd.f32 %v5149_v0, %v1259_v42  ;;  %v4008_v15 = vpop.f32.mrb[34].mxu0 }
 0x2ad   : > { %v1388_v47 = vadd.f32 %v1268_v45, %v828_v12  ;;  %v1271_v13 = vadd.f32 %v4008_v15, %v5149_v0  ;;  %v1262_v7 = vpop.f32.mrb[35].mxu0 }
 0x2ae   : > { %v1386_v52 = vadd.f32 %v1260_v63, %v826_v10  ;;  %v1263_v35 = vadd.f32 %v5149_v0, %v1262_v7 }
 0x2af   : > { %v1389_v51 = vadd.f32 %v1271_v13, %v829_v9  ;;  %v1420_v54 = vmax.f32 %v1388_v47, 0.0 }
 0x2b0   : > { %v1387_v31 = vadd.f32 %v1263_v35, %v827_v11  ;;  %v1418_v4 = vmax.f32 %v1386_v52, 0.0  ;;  %v4431_v11 = vld [vmem:[%s6537_s11 + $0x8] sm:$0xff]  }
 0x2b1   : > { %v1421_v41 = vmax.f32 %v1389_v51, 0.0 }
 0x2b2   : > { %v1419_v2 = vmax.f32 %v1387_v31, 0.0  ;;  %v4011_v5 = vpop.f32.mrb[36].mxu0  ;;  %v4433_v31 = vld [vmem:[%s6537_s11 + $0x18] sm:$0xff]  }
 0x2b3   : > { %v1451_v12 = vpack.c.bf16 %v1421_v41, %v1420_v54  ;;  %v1284_v56 = vadd.f32 %v4011_v5, %v5149_v0  ;;  %v1275_v21 = vpop.f32.mrb[37].mxu0 }
 0x2b4   : > { %v1276_v3 = vadd.f32 %v5149_v0, %v1275_v21  ;;  %v4012_v10 = vpop.f32.mrb[38].mxu0  ;;  %v1450_v53 = vpack.c.bf16 %v1419_v2, %v1418_v4 }
 0x2b5   : > { %v1392_v6 = vadd.f32 %v1284_v56, %v832_v23  ;;  %v1287_v9 = vadd.f32 %v4012_v10, %v5149_v0  ;;  %v1278_v8 = vpop.f32.mrb[39].mxu0 }
 0x2b6   : > { %v1390_v45 = vadd.f32 %v1276_v3, %v830_v25  ;;  %v1279_v42 = vadd.f32 %v5149_v0, %v1278_v8  ;;  %4053 = vmatprep.mubr.bf16.mxu1 %v1450_v53  ;;  %4101 = vmatprep.mubr.bf16.mxu0 %v1450_v53  ;;  %v6597_v8 = vmax.f32 %v4939_v46, 0.0  ;;  %v4436_v46 = vld [vmem:[%s6537_s11 + $0x30] sm:$0xff]  }
 0x2b7   : > { %v1393_v63 = vadd.f32 %v1287_v9, %v833_v24  ;;  %4054 = vmatmul.mubr.bf16.vlgmr.msra.gmra.mrb[32].mxu1 %v1451_v12  ;;  %4102 = vmatmul.mubr.bf16.vlgmr.msra.gmra.mrb[64].mxu0 %v1451_v12  ;;  %v1424_v23 = vmax.f32 %v1392_v6, 0.0  ;;  %v4435_v9 = vld [vmem:[%s6537_s11 + $0x28] sm:$0xff]  }
 0x2b8   : > { %v1391_v16 = vadd.f32 %v1279_v42, %v831_v26  ;;  %4134 = vmatpush3.bf16.msra.mxu1 %v4430_v17  ;;  %v1422_v25 = vmax.f32 %v1390_v45, 0.0  ;;  %v6598_v42 = vmax.f32 %v4942_v48, 0.0 }
 0x2b9   : > { %v1425_v15 = vmax.f32 %v1393_v63, 0.0  ;;  %4135 = vmatprep.subr.bf16.mxu1 %v4431_v11 }
 0x2ba   : > { %v1423_v47 = vmax.f32 %v1391_v16, 0.0  ;;  %v4015_v13 = vpop.f32.mrb[40].mxu0 }
 0x2bb   : > { %v1300_v7 = vadd.f32 %v4015_v13, %v5149_v0  ;;  %v1291_v20 = vpop.f32.mrb[41].mxu0  ;;  %v1453_v24 = vpack.c.bf16 %v1425_v15, %v1424_v23 }
 0x2bc   : > { %v1292_v52 = vadd.f32 %v5149_v0, %v1291_v20  ;;  %v4016_v35 = vpop.f32.mrb[42].mxu0  ;;  %v1452_v22 = vpack.c.bf16 %v1423_v47, %v1422_v25  ;;  %4136 = vmatpush3.bf16.msra.mxu1 %v4431_v11 }
 0x2bd   : > { %v1396_v26 = vadd.f32 %v1300_v7, %v836_v37  ;;  %v1303_v17 = vadd.f32 %v4016_v35, %v5149_v0  ;;  %v1294_v51 = vpop.f32.mrb[43].mxu0  ;;  %4137 = vmatprep.subr.bf16.mxu1 %v4432_v18 }
 0x2be   : > { %v1394_v54 = vadd.f32 %v1292_v52, %v834_v39  ;;  %v1295_v41 = vadd.f32 %v5149_v0, %v1294_v51  ;;  %4057 = vmatprep.mubr.bf16.mxu1 %v1452_v22  ;;  %4105 = vmatprep.mubr.bf16.mxu0 %v1452_v22  ;;  %v6600_v52 = vmax.f32 %v4960_v58, 0.0 }
 0x2bf   : > { %v1397_v4 = vadd.f32 %v1303_v17, %v837_v38  ;;  %4058 = vmatmul.mubr.bf16.gmra.mrb[36].mxu1 %v1453_v24  ;;  %4106 = vmatmul.mubr.bf16.gmra.mrb[68].mxu0 %v1453_v24  ;;  %v1428_v37 = vmax.f32 %v1396_v26, 0.0  ;;  %v6601_v17 = vmax.f32 %v4963_v60, 0.0 }
 0x2c0   : > { %v1395_v30 = vadd.f32 %v1295_v41, %v835_v40  ;;  %4138 = vmatpush3.bf16.msra.mxu1 %v4432_v18  ;;  %v1426_v39 = vmax.f32 %v1394_v54, 0.0  ;;  %v6596_v40 = vmax.f32 %v4936_v44, 0.0  ;;  %v6599_v44 = vmax.f32 %v4945_v50, 0.0 }
 0x2c1   : > { %v1429_v2 = vmax.f32 %v1397_v4, 0.0  ;;  %4139 = vmatprep.subr.bf16.mxu1 %v4433_v31  ;;  %v6602_v54 = vmax.f32 %v4966_v62, 0.0  ;;  %v6603_v4 = vmax.f32 %v4969_v1, 0.0 }
 0x2c2   : > { %v1427_v5 = vmax.f32 %v1395_v30, 0.0  ;;  %v4019_v12 = vpop.f32.mrb[44].mxu0 }
 0x2c3   : > { %v1316_v56 = vadd.f32 %v4019_v12, %v5149_v0  ;;  %v1307_v34 = vpop.f32.mrb[45].mxu0  ;;  %v1455_v38 = vpack.c.bf16 %v1429_v2, %v1428_v37 }
 0x2c4   : > { %v1308_v21 = vadd.f32 %v5149_v0, %v1307_v34  ;;  %v4020_v3 = vpop.f32.mrb[46].mxu0  ;;  %v1454_v36 = vpack.c.bf16 %v1427_v5, %v1426_v39  ;;  %4140 = vmatpush3.bf16.msra.mxu1 %v4433_v31 }
 0x2c5   : > { %v1400_v10 = vadd.f32 %v1316_v56, %v6596_v40  ;;  %v1319_v53 = vadd.f32 %v4020_v3, %v5149_v0  ;;  %v1310_v6 = vpop.f32.mrb[47].mxu0  ;;  %4141 = vmatprep.subr.bf16.mxu1 %v4434_v32 }
 0x2c6   : > { %v1398_v11 = vadd.f32 %v1308_v21, %v6597_v8  ;;  %v1311_v45 = vadd.f32 %v5149_v0, %v1310_v6  ;;  %4061 = vmatprep.mubr.bf16.mxu1 %v1454_v36  ;;  %4109 = vmatprep.mubr.bf16.mxu0 %v1454_v36  ;;  %v6605_v36 = vmax.f32 %v4987_v27, 0.0 }
 0x2c7   : > { %v1401_v63 = vadd.f32 %v1319_v53, %v6598_v42  ;;  %4062 = vmatmul.mubr.bf16.gmra.mrb[40].mxu1 %v1455_v38  ;;  %4110 = vmatmul.mubr.bf16.gmra.mrb[72].mxu0 %v1455_v38  ;;  %v1432_v23 = vmax.f32 %v1400_v10, 0.0  ;;  %v6604_v38 = vmax.f32 %v4984_v19, 0.0  ;;  %v6606_v53 = vmax.f32 %v4990_v29, 0.0 }
 0x2c8   : > { %v1399_v16 = vadd.f32 %v1311_v45, %v6599_v44  ;;  %4142 = vmatpush3.bf16.msra.mxu1 %v4434_v32  ;;  %v1430_v18 = vmax.f32 %v1398_v11, 0.0  ;;  %v6608_v29 = vmax.f32 %v5008_v55, 0.0 }
 0x2c9   : > { %v1433_v15 = vmax.f32 %v1401_v63, 0.0  ;;  %4143 = vmatprep.subr.bf16.mxu1 %v4435_v9 }
 0x2ca   : > { %v1431_v25 = vmax.f32 %v1399_v16, 0.0  ;;  %v4023_v47 = vpop.f32.mrb[48].mxu0 }
 0x2cb   : > { %v1332_v13 = vadd.f32 %v4023_v47, %v5149_v0  ;;  %v1323_v48 = vpop.f32.mrb[49].mxu0  ;;  %v1457_v7 = vpack.c.bf16 %v1433_v15, %v1432_v23  ;;  %v6609_v47 = vmax.f32 %v5011_v57, 0.0 }
 0x2cc   : > { %v1324_v20 = vadd.f32 %v5149_v0, %v1323_v48  ;;  %v4024_v24 = vpop.f32.mrb[50].mxu0  ;;  %v1456_v50 = vpack.c.bf16 %v1431_v25, %v1430_v18  ;;  %4144 = vmatpush3.bf16.msra.mxu1 %v4435_v9  ;;  %v6607_v9 = vmax.f32 %v4993_v33, 0.0 }
 0x2cd   : > { %v1404_v35 = vadd.f32 %v1332_v13, %v6600_v52  ;;  %v1335_v22 = vadd.f32 %v4024_v24, %v5149_v0  ;;  %v1326_v26 = vpop.f32.mrb[51].mxu0  ;;  %4145 = vmatprep.subr.bf16.mxu1 %v4436_v46  ;;  %v6611_v24 = vmax.f32 %v5017_v14, 0.0 }
 0x2ce   : > { %v1402_v51 = vadd.f32 %v1324_v20, %v6601_v17  ;;  %v1327_v31 = vadd.f32 %v5149_v0, %v1326_v26  ;;  %4065 = vmatprep.mubr.bf16.mxu1 %v1456_v50  ;;  %4113 = vmatprep.mubr.bf16.mxu0 %v1456_v50 }
 0x2cf   : > { %v1405_v41 = vadd.f32 %v1335_v22, %v6602_v54  ;;  %4066 = vmatmul.mubr.bf16.gmra.mrb[44].mxu1 %v1457_v7  ;;  %4114 = vmatmul.mubr.bf16.gmra.mrb[76].mxu0 %v1457_v7  ;;  %v1436_v30 = vmax.f32 %v1404_v35, 0.0  ;;  %v6610_v7 = vmax.f32 %v5014_v61, 0.0  ;;  %v6612_v61 = vmax.f32 %v5032_v49, 0.0 }
 0x2d0   : > { %v1403_v58 = vadd.f32 %v1327_v31, %v6603_v4  ;;  %4146 = vmatpush3.bf16.msra.mxu1 %v4436_v46  ;;  %v1434_v2 = vmax.f32 %v1402_v51, 0.0 }
 0x2d1   : > { %v1437_v37 = vmax.f32 %v1405_v41, 0.0 }
 0x2d2   : > { %v1435_v32 = vmax.f32 %v1403_v58, 0.0  ;;  %v4027_v39 = vpop.f32.mrb[52].mxu0 }
 0x2d3   : > { %v1348_v60 = vadd.f32 %v4027_v39, %v5149_v0  ;;  %v1339_v5 = vpop.f32.mrb[53].mxu0  ;;  %v1459_v12 = vpack.c.bf16 %v1437_v37, %v1436_v30  ;;  %v6613_v30 = vmax.f32 %v5035_v59, 0.0  ;;  %v4439_v59 = vld [vmem:[%s6539_s13 + $0x8] sm:$0xff]  }
 0x2d4   : > { %v1340_v56 = vadd.f32 %v5149_v0, %v1339_v5  ;;  %v4028_v34 = vpop.f32.mrb[54].mxu0  ;;  %v1458_v62 = vpack.c.bf16 %v1435_v32, %v1434_v2  ;;  %v6614_v32 = vmax.f32 %v5038_v43, 0.0  ;;  %v4437_v43 = vld [vmem:[%s6537_s11 + $0x38] sm:$0xff]  }
 0x2d5   : > { %v1408_v21 = vadd.f32 %v1348_v60, %v6604_v38  ;;  %v1351_v1 = vadd.f32 %v4028_v34, %v5149_v0  ;;  %v1342_v3 = vpop.f32.mrb[55].mxu0  ;;  %v6615_v60 = vmax.f32 %v5041_v28, 0.0  ;;  %4147 = vmatprep.subr.bf16.mxu1 %v4437_v43  ;;  %v4438_v28 = vld [vmem:[%s6539_s13] sm:$0xff]  }
 0x2d6   : > { %v1406_v40 = vadd.f32 %v1340_v56, %v6605_v36  ;;  %v1343_v10 = vadd.f32 %v5149_v0, %v1342_v3  ;;  %4069 = vmatprep.mubr.bf16.mxu1 %v1458_v62  ;;  %4117 = vmatprep.mubr.bf16.mxu0 %v1458_v62  ;;  %v4443_v3 = vld [vmem:[%s6539_s13 + $0x28] sm:$0xff]   ;;  %v4444_v36 = vld [vmem:[%s6539_s13 + $0x30] sm:$0xff]  }
 0x2d7   : > { %v1409_v6 = vadd.f32 %v1351_v1, %v6606_v53  ;;  %4070 = vmatmul.mubr.bf16.gmra.mrb[48].mxu1 %v1459_v12  ;;  %4118 = vmatmul.mubr.bf16.gmra.mrb[80].mxu0 %v1459_v12  ;;  %v1440_v19 = vmax.f32 %v1408_v21, 0.0  ;;  %v4441_v21 = vld [vmem:[%s6539_s13 + $0x18] sm:$0xff]   ;;  %v4442_v1 = vld [vmem:[%s6539_s13 + $0x20] sm:$0xff]  }
 0x2d8   : > { %v1407_v8 = vadd.f32 %v1343_v10, %v6607_v9  ;;  %v1438_v45 = vmax.f32 %v1406_v40, 0.0  ;;  %4148 = vmatpush3.bf16.msra.mxu1 %v4437_v43  ;;  %4181 = vmatprep.subr.bf16.mxu0 %v4438_v28  ;;  %v5292_v40 = vld [vmem:[%s6536_s10] ss:$0 sm:$0xff] }
 0x2d9   : > { %v1441_v11 = vmax.f32 %v1409_v6, 0.0  ;;  %4182 = vmatpush3.bf16.msra.mxu0 %v4438_v28 }
 0x2da   : > { %v1439_v42 = vmax.f32 %v1407_v8, 0.0  ;;  %v4031_v63 = vpop.f32.mrb[56].mxu0  ;;  %4183 = vmatprep.subr.bf16.mxu0 %v4439_v59 }
 0x2db   : > { %v1364_v27 = vadd.f32 %v4031_v63, %v5149_v0  ;;  %v1355_v44 = vpop.f32.mrb[57].mxu0  ;;  %v1461_v16 = vpack.c.bf16 %v1441_v11, %v1440_v19 }
 0x2dc   : > { %v1356_v23 = vadd.f32 %v5149_v0, %v1355_v44  ;;  %v4032_v15 = vpop.f32.mrb[58].mxu0  ;;  %v1460_v46 = vpack.c.bf16 %v1439_v42, %v1438_v45 }
 0x2dd   : > { %v1412_v18 = vadd.f32 %v1364_v27, %v6608_v29  ;;  %v1367_v25 = vadd.f32 %v4032_v15, %v5149_v0  ;;  %v1358_v33 = vpop.f32.mrb[59].mxu0  ;;  %4184 = vmatpush3.bf16.msra.mxu0 %v4439_v59 }
 0x2de   : > { %v1410_v13 = vadd.f32 %v1356_v23, %v6609_v47  ;;  %v1359_v48 = vadd.f32 %v5149_v0, %v1358_v33  ;;  %4073 = vmatprep.mubr.bf16.mxu1 %v1460_v46  ;;  %4121 = vmatprep.mubr.bf16.mxu0 %v1460_v46 }
 0x2df   : > { %v1413_v20 = vadd.f32 %v1367_v25, %v6610_v7  ;;  %4074 = vmatmul.mubr.bf16.gmra.mrb[52].mxu1 %v1461_v16  ;;  %4122 = vmatmul.mubr.bf16.gmra.mrb[84].mxu0 %v1461_v16  ;;  %v1444_v55 = vmax.f32 %v1412_v18, 0.0 }
 0x2e0   : > { %v1411_v50 = vadd.f32 %v1359_v48, %v6611_v24  ;;  %v1442_v35 = vmax.f32 %v1410_v13, 0.0 }
 0x2e1   : > { %v1445_v52 = vmax.f32 %v1413_v20, 0.0 }
 0x2e2   : > { %v1443_v22 = vmax.f32 %v1411_v50, 0.0  ;;  %v4035_v26 = vpop.f32.mrb[60].mxu0 }
 0x2e3   : > { %v1380_v57 = vadd.f32 %v4035_v26, %v5149_v0  ;;  %v1371_v17 = vpop.f32.mrb[61].mxu0  ;;  %v1463_v51 = vpack.c.bf16 %v1445_v52, %v1444_v55 }
 0x2e4   : > { %v1372_v31 = vadd.f32 %v5149_v0, %v1371_v17  ;;  %v4036_v54 = vpop.f32.mrb[62].mxu0  ;;  %v1462_v41 = vpack.c.bf16 %v1443_v22, %v1442_v35 }
 0x2e5   : > { %v1416_v4 = vadd.f32 %v1380_v57, %v6612_v61  ;;  %v1383_v58 = vadd.f32 %v4036_v54, %v5149_v0  ;;  %v1374_v14 = vpop.f32.mrb[63].mxu0 }
 0x2e6   : > { %v1414_v37 = vadd.f32 %v1372_v31, %v6613_v30  ;;  %v1375_v2 = vadd.f32 %v5149_v0, %v1374_v14  ;;  %4077 = vmatprep.mubr.bf16.mxu1 %v1462_v41  ;;  %4125 = vmatprep.mubr.bf16.mxu0 %v1462_v41  ;;  %v4440_v0 = vld [vmem:[%s6539_s13 + $0x10] sm:$0xff]  }
 0x2e7   : > { %v1417_v39 = vadd.f32 %v1383_v58, %v6614_v32  ;;  %4078 = vmatmul.mubr.bf16.gmra.mrb[56].mxu1 %v1463_v51  ;;  %4126 = vmatmul.mubr.bf16.gmra.mrb[88].mxu0 %v1463_v51  ;;  %v1448_v49 = vmax.f32 %v1416_v4, 0.0 }
 0x2e8   : > { %v1415_v5 = vadd.f32 %v1375_v2, %v6615_v60  ;;  %v1446_v56 = vmax.f32 %v1414_v37, 0.0  ;;  %4185 = vmatprep.subr.bf16.mxu0 %v4440_v0 }
 0x2e9   : > { %v1449_v12 = vmax.f32 %v1417_v39, 0.0  ;;  %4186 = vmatpush3.bf16.msra.mxu0 %v4440_v0 }
 0x2ea   : > { %v1447_v34 = vmax.f32 %v1415_v5, 0.0  ;;  %4187 = vmatprep.subr.bf16.mxu0 %v4441_v21 }
 0x2eb   : > { %v1465_v62 = vpack.c.bf16 %v1449_v12, %v1448_v49 }
 0x2ec   : > { %v1464_v38 = vpack.c.bf16 %v1447_v34, %v1446_v56 }
 0x2ed   : > { %4188 = vmatpush3.bf16.msra.mxu0 %v4441_v21 }
 0x2ee   : > { %4081 = vmatprep.mubr.bf16.mxu1 %v1464_v38  ;;  %4129 = vmatprep.mubr.bf16.mxu0 %v1464_v38 }
 0x2ef   : > { %4082 = vmatmul.mubr.bf16.gmra.mrb[60].mxu1 %v1465_v62  ;;  %4130 = vmatmul.mubr.bf16.gmra.mrb[92].mxu0 %v1465_v62 }
 0x2f0   : > { %4189 = vmatprep.subr.bf16.mxu0 %v4442_v1 }
 0x2f1   : > { %4190 = vmatpush3.bf16.msra.mxu0 %v4442_v1 }
 0x2f2   : > { %4191 = vmatprep.subr.bf16.mxu0 %v4443_v3 }
 0x2f5   : > { %4192 = vmatpush3.bf16.msra.mxu0 %v4443_v3 }
 0x2f6   : > { %4193 = vmatprep.subr.bf16.mxu0 %v4444_v36 }
 0x2f9   : > { %4194 = vmatpush3.bf16.msra.mxu0 %v4444_v36 }
 0x38a   : > { %v4103_v10 = vpop.f32.mrb[64].mxu0 }
 0x38b   : > { %v1812_v53 = vadd.f32 %v4103_v10, %v5292_v40  ;;  %v1803_v6 = vpop.f32.mrb[65].mxu0 }
 0x38c   : > { %v1804_v9 = vadd.f32 %v5292_v40, %v1803_v6  ;;  %v4104_v8 = vpop.f32.mrb[66].mxu0 }
 0x38d   : > { %v1815_v19 = vadd.f32 %v4104_v8, %v5292_v40  ;;  %v1806_v11 = vpop.f32.mrb[67].mxu0  ;;  %v1932_v42 = vmax.f32 %v1812_v53, 0.0 }
 0x38e   : > { %v1807_v45 = vadd.f32 %v5292_v40, %v1806_v11  ;;  %v1930_v27 = vmax.f32 %v1804_v9, 0.0 }
 0x38f   : > { %v1933_v63 = vmax.f32 %v1815_v19, 0.0 }
 0x390   : > { %v1931_v44 = vmax.f32 %v1807_v45, 0.0 }
 0x391   : > { %v1963_v16 = vpack.c.bf16 %v1933_v63, %v1932_v42 }
 0x392   : > { %v1962_v23 = vpack.c.bf16 %v1931_v44, %v1930_v27  ;;  %v4107_v15 = vpop.f32.mrb[68].mxu0 }
 0x393   : > { %v1828_v46 = vadd.f32 %v4107_v15, %v5292_v40  ;;  %v1819_v29 = vpop.f32.mrb[69].mxu0 }
 0x394   : > { %v1820_v18 = vadd.f32 %v5292_v40, %v1819_v29  ;;  %v4108_v25 = vpop.f32.mrb[70].mxu0  ;;  %4149 = vmatprep.mubr.bf16.mxu1 %v1962_v23 }
 0x395   : > { %v1831_v33 = vadd.f32 %v4108_v25, %v5292_v40  ;;  %v1822_v47 = vpop.f32.mrb[71].mxu0  ;;  %4150 = vmatmul.mubr.bf16.vlgmr.msra.gmra.mrb[32].mxu1 %v1963_v16  ;;  %v1936_v48 = vmax.f32 %v1828_v46, 0.0 }
 0x396   : > { %v1823_v13 = vadd.f32 %v5292_v40, %v1822_v47  ;;  %v1934_v20 = vmax.f32 %v1820_v18, 0.0 }
 0x397   : > { %v1937_v7 = vmax.f32 %v1831_v33, 0.0 }
 0x398   : > { %v1935_v24 = vmax.f32 %v1823_v13, 0.0 }
 0x399   : > { %v1965_v50 = vpack.c.bf16 %v1937_v7, %v1936_v48 }
 0x39a   : > { %v1964_v55 = vpack.c.bf16 %v1935_v24, %v1934_v20  ;;  %v4111_v52 = vpop.f32.mrb[72].mxu0 }
 0x39b   : > { %v1844_v35 = vadd.f32 %v4111_v52, %v5292_v40  ;;  %v1835_v22 = vpop.f32.mrb[73].mxu0 }
 0x39c   : > { %v1836_v26 = vadd.f32 %v5292_v40, %v1835_v22  ;;  %v4112_v57 = vpop.f32.mrb[74].mxu0  ;;  %4153 = vmatprep.mubr.bf16.mxu1 %v1964_v55 }
 0x39d   : > { %v1847_v17 = vadd.f32 %v4112_v57, %v5292_v40  ;;  %v1838_v51 = vpop.f32.mrb[75].mxu0  ;;  %4154 = vmatmul.mubr.bf16.gmra.mrb[36].mxu1 %v1965_v50  ;;  %v1940_v54 = vmax.f32 %v1844_v35, 0.0 }
 0x39e   : > { %v1839_v31 = vadd.f32 %v5292_v40, %v1838_v51  ;;  %v1938_v61 = vmax.f32 %v1836_v26, 0.0 }
 0x39f   : > { %v1941_v41 = vmax.f32 %v1847_v17, 0.0 }
 0x3a0   : > { %v1939_v4 = vmax.f32 %v1839_v31, 0.0 }
 0x3a1   : > { %v1967_v58 = vpack.c.bf16 %v1941_v41, %v1940_v54 }
 0x3a2   : > { %v1966_v14 = vpack.c.bf16 %v1939_v4, %v1938_v61  ;;  %v4115_v30 = vpop.f32.mrb[76].mxu0 }
 0x3a3   : > { %v1860_v37 = vadd.f32 %v4115_v30, %v5292_v40  ;;  %v1851_v2 = vpop.f32.mrb[77].mxu0 }
 0x3a4   : > { %v1852_v32 = vadd.f32 %v5292_v40, %v1851_v2  ;;  %v4116_v39 = vpop.f32.mrb[78].mxu0  ;;  %4157 = vmatprep.mubr.bf16.mxu1 %v1966_v14 }
 0x3a5   : > { %v1863_v60 = vadd.f32 %v4116_v39, %v5292_v40  ;;  %v1854_v5 = vpop.f32.mrb[79].mxu0  ;;  %4158 = vmatmul.mubr.bf16.gmra.mrb[40].mxu1 %v1967_v58  ;;  %v1944_v12 = vmax.f32 %v1860_v37, 0.0 }
 0x3a6   : > { %v1855_v49 = vadd.f32 %v5292_v40, %v1854_v5  ;;  %v1942_v34 = vmax.f32 %v1852_v32, 0.0 }
 0x3a7   : > { %v1945_v56 = vmax.f32 %v1863_v60, 0.0 }
 0x3a8   : > { %v1943_v62 = vmax.f32 %v1855_v49, 0.0  ;;  %v4445_v49 = vld [vmem:[%s6539_s13 + $0x38] sm:$0xff]  }
 0x3a9   : > { %v1969_v38 = vpack.c.bf16 %v1945_v56, %v1944_v12  ;;  %4195 = vmatprep.subr.bf16.mxu0 %v4445_v49  ;;  %v4446_v12 = vld [vmem:[%s6541_s15] sm:$0xff]   ;;  %v5338_v56 = vld [vmem:[%s6541_s15 + $0x10] sm:$0xff]  }
 0x3aa   : > { %v1968_v43 = vpack.c.bf16 %v1943_v62, %v1942_v34  ;;  %v4119_v28 = vpop.f32.mrb[80].mxu0  ;;  %4196 = vmatpush3.bf16.msra.mxu0 %v4445_v49  ;;  %4277 = vmatprep.subr.bf16.mxu1 %v4446_v12  ;;  %v5344_v34 = vld [vmem:[%s6541_s15 + $0x18] sm:$0xff]   ;;  %v5351_v62 = vld [vmem:[%s6541_s15 + $0x20] sm:$0xff]  }
 0x3ab   : > { %v1876_v59 = vadd.f32 %v4119_v28, %v5292_v40  ;;  %v1867_v0 = vpop.f32.mrb[81].mxu0  ;;  %4229 = vmatprep.subr.bf16.mxu0 %v4446_v12  ;;  %4285 = vmatpush3.bf16.msra.mxu1 %v4446_v12  ;;  %v3675_v28 = vld [vmem:[%s6534_s8] ss:$0 sm:$0xff] }
 0x3ac   : > { %v1868_v21 = vadd.f32 %v5292_v40, %v1867_v0  ;;  %v4120_v1 = vpop.f32.mrb[82].mxu0  ;;  %4161 = vmatprep.mubr.bf16.mxu1 %v1968_v43  ;;  %v5365_v43 = vld [vmem:[%s6541_s15 + $0x30] sm:$0xff]  }
 0x3ad   : > { %v1879_v3 = vadd.f32 %v4120_v1, %v5292_v40  ;;  %v1870_v36 = vpop.f32.mrb[83].mxu0  ;;  %4162 = vmatmul.mubr.bf16.gmra.mrb[44].mxu1 %v1969_v38  ;;  %v1948_v53 = vmax.f32 %v1876_v59, 0.0  ;;  %v5358_v38 = vld [vmem:[%s6541_s15 + $0x28] sm:$0xff]   ;;  %v3693_v59 = vld [vmem:[%s6538_s12] ss:$0 sm:$0xff] }
 0x3ae   : > { %v1871_v10 = vadd.f32 %v5292_v40, %v1870_v36  ;;  %v1946_v9 = vmax.f32 %v1868_v21, 0.0  ;;  %v5376_v0 = vadd.f32 %v3693_v59, %v3675_v28 }
 0x3af   : > { %v1949_v6 = vmax.f32 %v1879_v3, 0.0 }
 0x3b0   : > { %v1947_v8 = vmax.f32 %v1871_v10, 0.0 }
 0x3b1   : > { %v1971_v19 = vpack.c.bf16 %v1949_v6, %v1948_v53 }
 0x3b2   : > { %v1970_v11 = vpack.c.bf16 %v1947_v8, %v1946_v9  ;;  %v4123_v45 = vpop.f32.mrb[84].mxu0 }
 0x3b3   : > { %v1892_v42 = vadd.f32 %v4123_v45, %v5292_v40  ;;  %v1883_v63 = vpop.f32.mrb[85].mxu0 }
 0x3b4   : > { %v1884_v27 = vadd.f32 %v5292_v40, %v1883_v63  ;;  %v4124_v44 = vpop.f32.mrb[86].mxu0  ;;  %4165 = vmatprep.mubr.bf16.mxu1 %v1970_v11 }
 0x3b5   : > { %v1895_v16 = vadd.f32 %v4124_v44, %v5292_v40  ;;  %v1886_v23 = vpop.f32.mrb[87].mxu0  ;;  %4166 = vmatmul.mubr.bf16.gmra.mrb[48].mxu1 %v1971_v19  ;;  %v1952_v46 = vmax.f32 %v1892_v42, 0.0 }
 0x3b6   : > { %v1887_v15 = vadd.f32 %v5292_v40, %v1886_v23  ;;  %v1950_v18 = vmax.f32 %v1884_v27, 0.0 }
 0x3b7   : > { %v1953_v29 = vmax.f32 %v1895_v16, 0.0 }
 0x3b8   : > { %v1951_v25 = vmax.f32 %v1887_v15, 0.0 }
 0x3b9   : > { %v1973_v33 = vpack.c.bf16 %v1953_v29, %v1952_v46 }
 0x3ba   : > { %v1972_v47 = vpack.c.bf16 %v1951_v25, %v1950_v18  ;;  %v4127_v13 = vpop.f32.mrb[88].mxu0 }
 0x3bb   : > { %v1908_v48 = vadd.f32 %v4127_v13, %v5292_v40  ;;  %v1899_v7 = vpop.f32.mrb[89].mxu0 }
 0x3bc   : > { %v1900_v20 = vadd.f32 %v5292_v40, %v1899_v7  ;;  %v4128_v24 = vpop.f32.mrb[90].mxu0  ;;  %4169 = vmatprep.mubr.bf16.mxu1 %v1972_v47 }
 0x3bd   : > { %v1911_v50 = vadd.f32 %v4128_v24, %v5292_v40  ;;  %v1902_v55 = vpop.f32.mrb[91].mxu0  ;;  %4170 = vmatmul.mubr.bf16.gmra.mrb[52].mxu1 %v1973_v33  ;;  %v1956_v35 = vmax.f32 %v1908_v48, 0.0 }
 0x3be   : > { %v1903_v52 = vadd.f32 %v5292_v40, %v1902_v55  ;;  %v1954_v26 = vmax.f32 %v1900_v20, 0.0 }
 0x3bf   : > { %v1957_v22 = vmax.f32 %v1911_v50, 0.0 }
 0x3c0   : > { %v1955_v57 = vmax.f32 %v1903_v52, 0.0 }
 0x3c1   : > { %v1975_v17 = vpack.c.bf16 %v1957_v22, %v1956_v35 }
 0x3c2   : > { %v1974_v51 = vpack.c.bf16 %v1955_v57, %v1954_v26  ;;  %v4131_v31 = vpop.f32.mrb[92].mxu0 }
 0x3c3   : > { %v1924_v54 = vadd.f32 %v4131_v31, %v5292_v40  ;;  %v1915_v41 = vpop.f32.mrb[93].mxu0 }
 0x3c4   : > { %v1916_v61 = vadd.f32 %v5292_v40, %v1915_v41  ;;  %v4132_v4 = vpop.f32.mrb[94].mxu0  ;;  %4173 = vmatprep.mubr.bf16.mxu1 %v1974_v51 }
 0x3c5   : > { %v1927_v58 = vadd.f32 %v4132_v4, %v5292_v40  ;;  %v1918_v14 = vpop.f32.mrb[95].mxu0  ;;  %4174 = vmatmul.mubr.bf16.gmra.mrb[56].mxu1 %v1975_v17  ;;  %v1960_v37 = vmax.f32 %v1924_v54, 0.0 }
 0x3c6   : > { %v1919_v30 = vadd.f32 %v5292_v40, %v1918_v14  ;;  %v1958_v32 = vmax.f32 %v1916_v61, 0.0  ;;  %v4447_v40 = vld [vmem:[%s6541_s15 + $0x8] sm:$0xff]  }
 0x3c7   : > { %v1961_v2 = vmax.f32 %v1927_v58, 0.0  ;;  %4278 = vmatprep.subr.bf16.mxu1 %v4447_v40 }
 0x3c8   : > { %v1959_v39 = vmax.f32 %v1919_v30, 0.0  ;;  %4286 = vmatpush3.bf16.msra.mxu1 %v4447_v40 }
 0x3c9   : > { %v1977_v60 = vpack.c.bf16 %v1961_v2, %v1960_v37  ;;  %4279 = vmatprep.subr.bf16.mxu1 %v5338_v56 }
 0x3ca   : > { %v1976_v5 = vpack.c.bf16 %v1959_v39, %v1958_v32 }
 0x3cc   : > { %4177 = vmatprep.mubr.bf16.mxu1 %v1976_v5  ;;  %4287 = vmatpush3.bf16.msra.mxu1 %v5338_v56 }
 0x3cd   : > { %4178 = vmatmul.mubr.bf16.gmra.mrb[60].mxu1 %v1977_v60  ;;  %4280 = vmatprep.subr.bf16.mxu1 %v5344_v34 }
 0x3d0   : > { %4288 = vmatpush3.bf16.msra.mxu1 %v5344_v34 }
 0x3d1   : > { %4281 = vmatprep.subr.bf16.mxu1 %v5351_v62 }
 0x3d4   : > { %4289 = vmatpush3.bf16.msra.mxu1 %v5351_v62 }
 0x3d5   : > { %4282 = vmatprep.subr.bf16.mxu1 %v5358_v38 }
 0x3d8   : > { %4290 = vmatpush3.bf16.msra.mxu1 %v5358_v38 }
 0x3d9   : > { %4283 = vmatprep.subr.bf16.mxu1 %v5365_v43 }
 0x3dc   : > { %4291 = vmatpush3.bf16.msra.mxu1 %v5365_v43 }
 0x468   : > { %v4151_v21 = vpop.f32.mrb[32].mxu1 }
 0x469   : > { %v4293_v1 = vadd.f32 %v4151_v21, %v3675_v28  ;;  %v2083_v3 = vpop.f32.mrb[33].mxu1 }
 0x46a   : > { %v4295_v36 = vadd.f32 %v3675_v28, %v2083_v3  ;;  %v4152_v10 = vpop.f32.mrb[34].mxu1 }
 0x46b   : > { %v4294_v53 = vadd.f32 %v4293_v1, %v3693_v59  ;;  %v4298_v6 = vadd.f32 %v5376_v0, %v4152_v10  ;;  %v2086_v9 = vpop.f32.mrb[35].mxu1 }
 0x46c   : > { %v4296_v8 = vadd.f32 %v4295_v36, %v3693_v59  ;;  %v4300_v19 = vadd.f32 %v5376_v0, %v2086_v9 }
 0x46d   : > { %v2244_v11 = vmax.f32 %v4294_v53, 0.0  ;;  %v2245_v45 = vmax.f32 %v4298_v6, 0.0 }
 0x46e   : > { %v2242_v42 = vmax.f32 %v4296_v8, 0.0  ;;  %v2243_v63 = vmax.f32 %v4300_v19, 0.0 }
 0x46f   : > { %v2275_v27 = vpack.c.bf16 %v2245_v45, %v2244_v11 }
 0x470   : > { %v2274_v44 = vpack.c.bf16 %v2243_v63, %v2242_v42  ;;  %v4155_v16 = vpop.f32.mrb[36].mxu1 }
 0x471   : > { %v4302_v23 = vadd.f32 %v5376_v0, %v4155_v16  ;;  %v2099_v15 = vpop.f32.mrb[37].mxu1 }
 0x472   : > { %v4304_v46 = vadd.f32 %v5376_v0, %v2099_v15  ;;  %v4156_v29 = vpop.f32.mrb[38].mxu1  ;;  %4197 = vmatprep.mubr.bf16.mxu0 %v2274_v44 }
 0x473   : > { %v4306_v18 = vadd.f32 %v5376_v0, %v4156_v29  ;;  %v2102_v25 = vpop.f32.mrb[39].mxu1  ;;  %4198 = vmatmul.mubr.bf16.vlgmr.msra.gmra.mrb[96].mxu0 %v2275_v27  ;;  %v2248_v47 = vmax.f32 %v4302_v23, 0.0 }
 0x474   : > { %v4308_v33 = vadd.f32 %v5376_v0, %v2102_v25  ;;  %4230 = vmatpush3.bf16.msra.mxu0 %v4446_v12  ;;  %v2246_v48 = vmax.f32 %v4304_v46, 0.0 }
 0x475   : > { %v2249_v13 = vmax.f32 %v4306_v18, 0.0  ;;  %4231 = vmatprep.subr.bf16.mxu0 %v4447_v40 }
 0x476   : > { %v2247_v7 = vmax.f32 %v4308_v33, 0.0 }
 0x477   : > { %v2277_v20 = vpack.c.bf16 %v2249_v13, %v2248_v47 }
 0x478   : > { %v2276_v24 = vpack.c.bf16 %v2247_v7, %v2246_v48  ;;  %v4159_v50 = vpop.f32.mrb[40].mxu1  ;;  %4232 = vmatpush3.bf16.msra.mxu0 %v4447_v40 }
 0x479   : > { %v4310_v55 = vadd.f32 %v5376_v0, %v4159_v50  ;;  %v2115_v52 = vpop.f32.mrb[41].mxu1  ;;  %4233 = vmatprep.subr.bf16.mxu0 %v5338_v56 }
 0x47a   : > { %v4312_v35 = vadd.f32 %v5376_v0, %v2115_v52  ;;  %v4160_v22 = vpop.f32.mrb[42].mxu1  ;;  %4201 = vmatprep.mubr.bf16.mxu0 %v2276_v24 }
 0x47b   : > { %v4314_v26 = vadd.f32 %v5376_v0, %v4160_v22  ;;  %v2118_v57 = vpop.f32.mrb[43].mxu1  ;;  %4202 = vmatmul.mubr.bf16.gmra.mrb[100].mxu0 %v2277_v20  ;;  %v2252_v51 = vmax.f32 %v4310_v55, 0.0 }
 0x47c   : > { %v4316_v17 = vadd.f32 %v5376_v0, %v2118_v57  ;;  %4234 = vmatpush3.bf16.msra.mxu0 %v5338_v56  ;;  %v2250_v54 = vmax.f32 %v4312_v35, 0.0 }
 0x47d   : > { %v2253_v31 = vmax.f32 %v4314_v26, 0.0  ;;  %4235 = vmatprep.subr.bf16.mxu0 %v5344_v34 }
 0x47e   : > { %v2251_v41 = vmax.f32 %v4316_v17, 0.0 }
 0x47f   : > { %v2279_v61 = vpack.c.bf16 %v2253_v31, %v2252_v51 }
 0x480   : > { %v2278_v4 = vpack.c.bf16 %v2251_v41, %v2250_v54  ;;  %v4163_v58 = vpop.f32.mrb[44].mxu1  ;;  %4236 = vmatpush3.bf16.msra.mxu0 %v5344_v34 }
 0x481   : > { %v4318_v14 = vadd.f32 %v5376_v0, %v4163_v58  ;;  %v2131_v30 = vpop.f32.mrb[45].mxu1  ;;  %4237 = vmatprep.subr.bf16.mxu0 %v5351_v62 }
 0x482   : > { %v4320_v37 = vadd.f32 %v5376_v0, %v2131_v30  ;;  %v4164_v2 = vpop.f32.mrb[46].mxu1  ;;  %4205 = vmatprep.mubr.bf16.mxu0 %v2278_v4 }
 0x483   : > { %v4322_v32 = vadd.f32 %v5376_v0, %v4164_v2  ;;  %v2134_v39 = vpop.f32.mrb[47].mxu1  ;;  %4206 = vmatmul.mubr.bf16.gmra.mrb[104].mxu0 %v2279_v61  ;;  %v2256_v5 = vmax.f32 %v4318_v14, 0.0 }
 0x484   : > { %v4324_v60 = vadd.f32 %v5376_v0, %v2134_v39  ;;  %4238 = vmatpush3.bf16.msra.mxu0 %v5351_v62  ;;  %v2254_v12 = vmax.f32 %v4320_v37, 0.0 }
 0x485   : > { %v2257_v49 = vmax.f32 %v4322_v32, 0.0  ;;  %4239 = vmatprep.subr.bf16.mxu0 %v5358_v38 }
 0x486   : > { %v2255_v40 = vmax.f32 %v4324_v60, 0.0  ;;  %v4453_v60 = vld [vmem:[%s6541_s15 + $0x38] sm:$0xff]  }
 0x487   : > { %v2281_v56 = vpack.c.bf16 %v2257_v49, %v2256_v5  ;;  %4284 = vmatprep.subr.bf16.mxu1 %v4453_v60 }
 0x488   : > { %v2280_v34 = vpack.c.bf16 %v2255_v40, %v2254_v12  ;;  %v4167_v28 = vpop.f32.mrb[48].mxu1  ;;  %4240 = vmatpush3.bf16.msra.mxu0 %v5358_v38  ;;  %4292 = vmatpush3.bf16.msra.mxu1 %v4453_v60 }
 0x489   : > { %v4326_v59 = vadd.f32 %v5376_v0, %v4167_v28  ;;  %v2147_v21 = vpop.f32.mrb[49].mxu1  ;;  %4241 = vmatprep.subr.bf16.mxu0 %v5365_v43 }
 0x48a   : > { %v4328_v1 = vadd.f32 %v5376_v0, %v2147_v21  ;;  %v4168_v3 = vpop.f32.mrb[50].mxu1  ;;  %4209 = vmatprep.mubr.bf16.mxu0 %v2280_v34 }
 0x48b   : > { %v4330_v62 = vadd.f32 %v5376_v0, %v4168_v3  ;;  %v2150_v36 = vpop.f32.mrb[51].mxu1  ;;  %4210 = vmatmul.mubr.bf16.gmra.mrb[108].mxu0 %v2281_v56  ;;  %v2260_v53 = vmax.f32 %v4326_v59, 0.0 }
 0x48c   : > { %v4332_v10 = vadd.f32 %v5376_v0, %v2150_v36  ;;  %4242 = vmatpush3.bf16.msra.mxu0 %v5365_v43  ;;  %v2258_v38 = vmax.f32 %v4328_v1, 0.0 }
 0x48d   : > { %v2261_v6 = vmax.f32 %v4330_v62, 0.0  ;;  %4243 = vmatprep.subr.bf16.mxu0 %v4453_v60 }
 0x48e   : > { %v2259_v9 = vmax.f32 %v4332_v10, 0.0 }
 0x48f   : > { %v2283_v8 = vpack.c.bf16 %v2261_v6, %v2260_v53 }
 0x490   : > { %v2282_v19 = vpack.c.bf16 %v2259_v9, %v2258_v38  ;;  %v4171_v11 = vpop.f32.mrb[52].mxu1  ;;  %4244 = vmatpush3.bf16.msra.mxu0 %v4453_v60 }
 0x491   : > { %v4334_v45 = vadd.f32 %v5376_v0, %v4171_v11  ;;  %v2163_v42 = vpop.f32.mrb[53].mxu1 }
 0x492   : > { %v4336_v63 = vadd.f32 %v5376_v0, %v2163_v42  ;;  %v4172_v27 = vpop.f32.mrb[54].mxu1  ;;  %4213 = vmatprep.mubr.bf16.mxu0 %v2282_v19 }
 0x493   : > { %v4338_v44 = vadd.f32 %v5376_v0, %v4172_v27  ;;  %v2166_v16 = vpop.f32.mrb[55].mxu1  ;;  %4214 = vmatmul.mubr.bf16.gmra.mrb[112].mxu0 %v2283_v8  ;;  %v2264_v23 = vmax.f32 %v4334_v45, 0.0 }
 0x494   : > { %v4340_v43 = vadd.f32 %v5376_v0, %v2166_v16  ;;  %v2262_v46 = vmax.f32 %v4336_v63, 0.0 }
 0x495   : > { %v2265_v15 = vmax.f32 %v4338_v44, 0.0 }
 0x496   : > { %v2263_v29 = vmax.f32 %v4340_v43, 0.0 }
 0x497   : > { %v2285_v18 = vpack.c.bf16 %v2265_v15, %v2264_v23 }
 0x498   : > { %v2284_v25 = vpack.c.bf16 %v2263_v29, %v2262_v46  ;;  %v4175_v33 = vpop.f32.mrb[56].mxu1 }
 0x499   : > { %v4342_v47 = vadd.f32 %v5376_v0, %v4175_v33  ;;  %v2179_v13 = vpop.f32.mrb[57].mxu1 }
 0x49a   : > { %v4344_v48 = vadd.f32 %v5376_v0, %v2179_v13  ;;  %v4176_v7 = vpop.f32.mrb[58].mxu1  ;;  %4217 = vmatprep.mubr.bf16.mxu0 %v2284_v25 }
 0x49b   : > { %v4346_v20 = vadd.f32 %v5376_v0, %v4176_v7  ;;  %v2182_v24 = vpop.f32.mrb[59].mxu1  ;;  %4218 = vmatmul.mubr.bf16.gmra.mrb[116].mxu0 %v2285_v18  ;;  %v2268_v55 = vmax.f32 %v4342_v47, 0.0 }
 0x49c   : > { %v4348_v50 = vadd.f32 %v5376_v0, %v2182_v24  ;;  %v2266_v35 = vmax.f32 %v4344_v48, 0.0 }
 0x49d   : > { %v2269_v52 = vmax.f32 %v4346_v20, 0.0 }
 0x49e   : > { %v2267_v22 = vmax.f32 %v4348_v50, 0.0 }
 0x49f   : > { %v2287_v26 = vpack.c.bf16 %v2269_v52, %v2268_v55 }
 0x4a0   : > { %v2286_v57 = vpack.c.bf16 %v2267_v22, %v2266_v35  ;;  %v4179_v17 = vpop.f32.mrb[60].mxu1 }
 0x4a1   : > { %v4350_v51 = vadd.f32 %v5376_v0, %v4179_v17  ;;  %v2195_v31 = vpop.f32.mrb[61].mxu1 }
 0x4a2   : > { %v4352_v54 = vadd.f32 %v5376_v0, %v2195_v31  ;;  %v4180_v41 = vpop.f32.mrb[62].mxu1  ;;  %4221 = vmatprep.mubr.bf16.mxu0 %v2286_v57 }
 0x4a3   : > { %v4354_v61 = vadd.f32 %v5376_v0, %v4180_v41  ;;  %v2198_v4 = vpop.f32.mrb[63].mxu1  ;;  %4222 = vmatmul.mubr.bf16.gmra.mrb[120].mxu0 %v2287_v26  ;;  %v2272_v14 = vmax.f32 %v4350_v51, 0.0 }
 0x4a4   : > { %v4356_v58 = vadd.f32 %v5376_v0, %v2198_v4  ;;  %v2270_v37 = vmax.f32 %v4352_v54, 0.0  ;;  %v5424_v0 = vld [vmem:[%s6540_s14] ss:$0 sm:$0xff] }
 0x4a5   : > { %v2273_v30 = vmax.f32 %v4354_v61, 0.0 }
 0x4a6   : > { %v2271_v2 = vmax.f32 %v4356_v58, 0.0 }
 0x4a7   : > { %v2289_v32 = vpack.c.bf16 %v2273_v30, %v2272_v14 }
 0x4a8   : > { %v2288_v39 = vpack.c.bf16 %v2271_v2, %v2270_v37 }
 0x4aa   : > { %4225 = vmatprep.mubr.bf16.mxu0 %v2288_v39 }
 0x4ab   : > { %4226 = vmatmul.mubr.bf16.gmra.mrb[124].mxu0 %v2289_v32 }
 0x546   : > { %v4199_v5 = vpop.f32.mrb[96].mxu0 }
 0x547   : > { %v2404_v49 = vadd.f32 %v4199_v5, %v5424_v0  ;;  %v2395_v12 = vpop.f32.mrb[97].mxu0 }
 0x548   : > { %v2396_v40 = vadd.f32 %v5424_v0, %v2395_v12  ;;  %v4200_v56 = vpop.f32.mrb[98].mxu0 }
 0x549   : > { %v2407_v34 = vadd.f32 %v4200_v56, %v5424_v0  ;;  %v2398_v28 = vpop.f32.mrb[99].mxu0  ;;  %v2524_v21 = vmax.f32 %v2404_v49, 0.0 }
 0x54a   : > { %v2399_v59 = vadd.f32 %v5424_v0, %v2398_v28  ;;  %v2522_v3 = vmax.f32 %v2396_v40, 0.0 }
 0x54b   : > { %v2525_v1 = vmax.f32 %v2407_v34, 0.0 }
 0x54c   : > { %v2523_v62 = vmax.f32 %v2399_v59, 0.0 }
 0x54d   : > { %v2555_v36 = vpack.c.bf16 %v2525_v1, %v2524_v21 }
 0x54e   : > { %v2554_v10 = vpack.c.bf16 %v2523_v62, %v2522_v3  ;;  %v4203_v53 = vpop.f32.mrb[100].mxu0 }
 0x54f   : > { %v2420_v6 = vadd.f32 %v4203_v53, %v5424_v0  ;;  %v2411_v38 = vpop.f32.mrb[101].mxu0 }
 0x550   : > { %v2412_v9 = vadd.f32 %v5424_v0, %v2411_v38  ;;  %v4204_v8 = vpop.f32.mrb[102].mxu0  ;;  %4245 = vmatprep.mubr.bf16.mxu0 %v2554_v10 }
 0x551   : > { %v2423_v19 = vadd.f32 %v4204_v8, %v5424_v0  ;;  %v2414_v11 = vpop.f32.mrb[103].mxu0  ;;  %4246 = vmatmul.mubr.bf16.vlgmr.msra.gmra.mrb[128].mxu0 %v2555_v36  ;;  %v2528_v42 = vmax.f32 %v2420_v6, 0.0 }
 0x552   : > { %v2415_v45 = vadd.f32 %v5424_v0, %v2414_v11  ;;  %v2526_v27 = vmax.f32 %v2412_v9, 0.0 }
 0x553   : > { %v2529_v63 = vmax.f32 %v2423_v19, 0.0 }
 0x554   : > { %v2527_v44 = vmax.f32 %v2415_v45, 0.0 }
 0x555   : > { %v2557_v16 = vpack.c.bf16 %v2529_v63, %v2528_v42 }
 0x556   : > { %v2556_v43 = vpack.c.bf16 %v2527_v44, %v2526_v27  ;;  %v4207_v23 = vpop.f32.mrb[104].mxu0 }
 0x557   : > { %v2436_v15 = vadd.f32 %v4207_v23, %v5424_v0  ;;  %v2427_v46 = vpop.f32.mrb[105].mxu0 }
 0x558   : > { %v2428_v29 = vadd.f32 %v5424_v0, %v2427_v46  ;;  %v4208_v18 = vpop.f32.mrb[106].mxu0  ;;  %4249 = vmatprep.mubr.bf16.mxu1 %v2556_v43 }
 0x559   : > { %v2439_v25 = vadd.f32 %v4208_v18, %v5424_v0  ;;  %v2430_v33 = vpop.f32.mrb[107].mxu0  ;;  %4250 = vmatmul.mubr.bf16.vlgmr.msra.gmra.mrb[64].mxu1 %v2557_v16  ;;  %v2532_v13 = vmax.f32 %v2436_v15, 0.0 }
 0x55a   : > { %v2431_v47 = vadd.f32 %v5424_v0, %v2430_v33  ;;  %v2530_v7 = vmax.f32 %v2428_v29, 0.0 }
 0x55b   : > { %v2533_v48 = vmax.f32 %v2439_v25, 0.0 }
 0x55c   : > { %v2531_v20 = vmax.f32 %v2431_v47, 0.0 }
 0x55d   : > { %v2559_v24 = vpack.c.bf16 %v2533_v48, %v2532_v13 }
 0x55e   : > { %v2558_v50 = vpack.c.bf16 %v2531_v20, %v2530_v7  ;;  %v4211_v55 = vpop.f32.mrb[108].mxu0 }
 0x55f   : > { %v2452_v52 = vadd.f32 %v4211_v55, %v5424_v0  ;;  %v2443_v35 = vpop.f32.mrb[109].mxu0 }
 0x560   : > { %v2444_v22 = vadd.f32 %v5424_v0, %v2443_v35  ;;  %v4212_v26 = vpop.f32.mrb[110].mxu0  ;;  %4253 = vmatprep.mubr.bf16.mxu1 %v2558_v50 }
 0x561   : > { %v2455_v57 = vadd.f32 %v4212_v26, %v5424_v0  ;;  %v2446_v17 = vpop.f32.mrb[111].mxu0  ;;  %4254 = vmatmul.mubr.bf16.gmra.mrb[68].mxu1 %v2559_v24  ;;  %v2536_v31 = vmax.f32 %v2452_v52, 0.0 }
 0x562   : > { %v2447_v51 = vadd.f32 %v5424_v0, %v2446_v17  ;;  %v2534_v41 = vmax.f32 %v2444_v22, 0.0 }
 0x563   : > { %v2537_v54 = vmax.f32 %v2455_v57, 0.0 }
 0x564   : > { %v2535_v61 = vmax.f32 %v2447_v51, 0.0  ;;  %v2802_v51 = vlaneseq }
 0x565   : > { %v2561_v4 = vpack.c.bf16 %v2537_v54, %v2536_v31  ;;  %v5463_v54 = vld [vmem:[%s6542_s16] ss:$0 sm:$0xff] }
 0x566   : > { %v2560_v58 = vpack.c.bf16 %v2535_v61, %v2534_v41  ;;  %v4215_v14 = vpop.f32.mrb[112].mxu0  ;;  %v5458_v31 = vand.u32 127, %v2802_v51 }
 0x567   : > { %v2468_v30 = vadd.f32 %v4215_v14, %v5424_v0  ;;  %v2459_v37 = vpop.f32.mrb[113].mxu0 }
 0x568   : > { %v2460_v2 = vadd.f32 %v5424_v0, %v2459_v37  ;;  %v4216_v32 = vpop.f32.mrb[114].mxu0  ;;  %4257 = vmatprep.mubr.bf16.mxu1 %v2560_v58  ;;  %vm2804_vm1 = vcmp.lt.s32.totalorder %v5458_v31, 3  ;;  %vm2805_vm2 = vcmp.eq.s32.totalorder %v5458_v31, 3 }
 0x569   : > { %v2471_v39 = vadd.f32 %v4216_v32, %v5424_v0  ;;  %v2462_v60 = vpop.f32.mrb[115].mxu0  ;;  %4258 = vmatmul.mubr.bf16.gmra.mrb[72].mxu1 %v2561_v4  ;;  %v2540_v49 = vmax.f32 %v2468_v30, 0.0 }
 0x56a   : > { %v2463_v5 = vadd.f32 %v5424_v0, %v2462_v60  ;;  %v2538_v40 = vmax.f32 %v2460_v2, 0.0 }
 0x56b   : > { %v2541_v12 = vmax.f32 %v2471_v39, 0.0 }
 0x56c   : > { %v2539_v56 = vmax.f32 %v2463_v5, 0.0 }
 0x56d   : > { %v2563_v34 = vpack.c.bf16 %v2541_v12, %v2540_v49 }
 0x56e   : > { %v2562_v28 = vpack.c.bf16 %v2539_v56, %v2538_v40  ;;  %v4219_v59 = vpop.f32.mrb[116].mxu0 }
 0x56f   : > { %v2484_v21 = vadd.f32 %v4219_v59, %v5424_v0  ;;  %v2475_v1 = vpop.f32.mrb[117].mxu0 }
 0x570   : > { %v2476_v3 = vadd.f32 %v5424_v0, %v2475_v1  ;;  %v4220_v62 = vpop.f32.mrb[118].mxu0  ;;  %4261 = vmatprep.mubr.bf16.mxu1 %v2562_v28 }
 0x571   : > { %v2487_v36 = vadd.f32 %v4220_v62, %v5424_v0  ;;  %v2478_v10 = vpop.f32.mrb[119].mxu0  ;;  %4262 = vmatmul.mubr.bf16.gmra.mrb[76].mxu1 %v2563_v34  ;;  %v2544_v6 = vmax.f32 %v2484_v21, 0.0 }
 0x572   : > { %v2479_v53 = vadd.f32 %v5424_v0, %v2478_v10  ;;  %v2542_v9 = vmax.f32 %v2476_v3, 0.0 }
 0x573   : > { %v2545_v38 = vmax.f32 %v2487_v36, 0.0 }
 0x574   : > { %v2543_v8 = vmax.f32 %v2479_v53, 0.0 }
 0x575   : > { %v2565_v19 = vpack.c.bf16 %v2545_v38, %v2544_v6 }
 0x576   : > { %v2564_v11 = vpack.c.bf16 %v2543_v8, %v2542_v9  ;;  %v4223_v45 = vpop.f32.mrb[120].mxu0 }
 0x577   : > { %v2500_v42 = vadd.f32 %v4223_v45, %v5424_v0  ;;  %v2491_v63 = vpop.f32.mrb[121].mxu0 }
 0x578   : > { %v2492_v27 = vadd.f32 %v5424_v0, %v2491_v63  ;;  %v4224_v44 = vpop.f32.mrb[122].mxu0  ;;  %4265 = vmatprep.mubr.bf16.mxu1 %v2564_v11 }
 0x579   : > { %v2503_v16 = vadd.f32 %v4224_v44, %v5424_v0  ;;  %v2494_v43 = vpop.f32.mrb[123].mxu0  ;;  %4266 = vmatmul.mubr.bf16.gmra.mrb[80].mxu1 %v2565_v19  ;;  %v2548_v15 = vmax.f32 %v2500_v42, 0.0 }
 0x57a   : > { %v2495_v23 = vadd.f32 %v5424_v0, %v2494_v43  ;;  %v2546_v29 = vmax.f32 %v2492_v27, 0.0 }
 0x57b   : > { %v2549_v46 = vmax.f32 %v2503_v16, 0.0 }
 0x57c   : > { %v2547_v18 = vmax.f32 %v2495_v23, 0.0 }
 0x57d   : > { %v2567_v25 = vpack.c.bf16 %v2549_v46, %v2548_v15 }
 0x57e   : > { %v2566_v33 = vpack.c.bf16 %v2547_v18, %v2546_v29  ;;  %v4227_v47 = vpop.f32.mrb[124].mxu0 }
 0x57f   : > { %v2516_v13 = vadd.f32 %v4227_v47, %v5424_v0  ;;  %v2507_v48 = vpop.f32.mrb[125].mxu0 }
 0x580   : > { %v2508_v7 = vadd.f32 %v5424_v0, %v2507_v48  ;;  %v4228_v20 = vpop.f32.mrb[126].mxu0  ;;  %4269 = vmatprep.mubr.bf16.mxu1 %v2566_v33 }
 0x581   : > { %v2519_v24 = vadd.f32 %v4228_v20, %v5424_v0  ;;  %v2510_v50 = vpop.f32.mrb[127].mxu0  ;;  %4270 = vmatmul.mubr.bf16.gmra.mrb[84].mxu1 %v2567_v25  ;;  %v2552_v52 = vmax.f32 %v2516_v13, 0.0 }
 0x582   : > { %v2511_v55 = vadd.f32 %v5424_v0, %v2510_v50  ;;  %v2550_v22 = vmax.f32 %v2508_v7, 0.0 }
 0x583   : > { %v2553_v35 = vmax.f32 %v2519_v24, 0.0 }
 0x584   : > { %v2551_v26 = vmax.f32 %v2511_v55, 0.0 }
 0x585   : > { %v2569_v57 = vpack.c.bf16 %v2553_v35, %v2552_v52 }
 0x586   : > { %v2568_v17 = vpack.c.bf16 %v2551_v26, %v2550_v22 }
 0x588   : > { %4273 = vmatprep.mubr.bf16.mxu1 %v2568_v17 }
 0x589   : > { %4274 = vmatmul.mubr.bf16.gmra.mrb[88].mxu1 %v2569_v57 }
 0x624   : > { %v4247_v41 = vpop.f32.mrb[128].mxu0 }
 0x625   : > { %v5467_v0 = vadd.f32 %v4247_v41, %v5463_v54  ;;  %v2675_v61 = vpop.f32.mrb[129].mxu0 }
 0x626   : > { %v5470_v4 = vadd.f32 %v5463_v54, %v2675_v61  ;;  %v4248_v58 = vpop.f32.mrb[130].mxu0 }
 0x627   : > { %v5473_v14 = vadd.f32 %v4248_v58, %v5463_v54  ;;  %v2678_v30 = vpop.f32.mrb[131].mxu0  ;;  %v2808_v37 = vsel %vm2804_vm1, %v5467_v0, -inf }
 0x628   : > { %v5479_v2 = vadd.f32 %v5463_v54, %v2678_v30  ;;  %2842 = vmax.xlane.f32.xlu1 %v2808_v37  ;;  %v2806_v32 = vsel %vm2804_vm1, %v5470_v4, -inf }
 0x629   : > { %2838 = vmax.xlane.f32.xlu0 %v2806_v32  ;;  %v2809_v39 = vsel %vm2804_vm1, %v5473_v14, -inf }
 0x62a   : > { %v2807_v5 = vsel %vm2804_vm1, %v5479_v2, -inf }
 0x62c   : > { %v4251_v60 = vpop.f32.mrb[64].mxu1  ;;  %2844 = vmax.xlane.f32.xlu1 %v2809_v39 }
 0x62d   : > { %v5491_v49 = vadd.f32 %v4251_v60, %v5463_v54  ;;  %v2691_v12 = vpop.f32.mrb[65].mxu1  ;;  %2840 = vmax.xlane.f32.xlu0 %v2807_v5 }
 0x62e   : > { %v4252_v40 = vpop.f32.mrb[66].mxu1  ;;  %v5500_v59 = vadd.f32 %v5463_v54, %v2691_v12 }
 0x62f   : > { %v5494_v56 = vadd.f32 %v4252_v40, %v5463_v54  ;;  %v2694_v34 = vpop.f32.mrb[67].mxu1  ;;  %v2812_v28 = vsel %vm2804_vm1, %v5491_v49, -inf }
 0x630   : > { %v5503_v21 = vadd.f32 %v5463_v54, %v2694_v34  ;;  %v2810_v62 = vsel %vm2804_vm1, %v5500_v59, -inf }
 0x631   : > { %2850 = vmax.xlane.f32.xlu0 %v2812_v28  ;;  %v2813_v1 = vsel %vm2804_vm1, %v5494_v56, -inf }
 0x632   : > { %2852 = vmax.xlane.f32.xlu1 %v2813_v1  ;;  %v2811_v53 = vsel %vm2804_vm1, %v5503_v21, -inf }
 0x634   : > { %v4255_v3 = vpop.f32.mrb[68].mxu1 }
 0x635   : > { %v5512_v36 = vadd.f32 %v4255_v3, %v5463_v54  ;;  %v2707_v10 = vpop.f32.mrb[69].mxu1  ;;  %2846 = vmax.xlane.f32.xlu0 %v2810_v62 }
 0x636   : > { %v4256_v6 = vpop.f32.mrb[70].mxu1  ;;  %2848 = vmax.xlane.f32.xlu1 %v2811_v53  ;;  %v5524_v19 = vadd.f32 %v5463_v54, %v2707_v10 }
 0x637   : > { %v5518_v38 = vadd.f32 %v4256_v6, %v5463_v54  ;;  %v2710_v9 = vpop.f32.mrb[71].mxu1  ;;  %v2816_v8 = vsel %vm2804_vm1, %v5512_v36, -inf }
 0x638   : > { %v5527_v11 = vadd.f32 %v5463_v54, %v2710_v9  ;;  %v2814_v63 = vsel %vm2804_vm1, %v5524_v19, -inf }
 0x639   : > { %2858 = vmax.xlane.f32.xlu0 %v2816_v8  ;;  %v2817_v45 = vsel %vm2804_vm1, %v5518_v38, -inf }
 0x63a   : > { %2860 = vmax.xlane.f32.xlu1 %v2817_v45  ;;  %v2815_v16 = vsel %vm2804_vm1, %v5527_v11, -inf }
 0x63c   : > { %v4259_v42 = vpop.f32.mrb[72].mxu1 }
 0x63d   : > { %v5536_v27 = vadd.f32 %v4259_v42, %v5463_v54  ;;  %v2723_v44 = vpop.f32.mrb[73].mxu1  ;;  %2854 = vmax.xlane.f32.xlu0 %v2814_v63 }
 0x63e   : > { %v4260_v43 = vpop.f32.mrb[74].mxu1  ;;  %2856 = vmax.xlane.f32.xlu1 %v2815_v16  ;;  %v5548_v29 = vadd.f32 %v5463_v54, %v2723_v44 }
 0x63f   : > { %v5542_v23 = vadd.f32 %v4260_v43, %v5463_v54  ;;  %v2726_v15 = vpop.f32.mrb[75].mxu1  ;;  %v2820_v46 = vsel %vm2804_vm1, %v5536_v27, -inf }
 0x640   : > { %v5551_v18 = vadd.f32 %v5463_v54, %v2726_v15  ;;  %v2818_v47 = vsel %vm2804_vm1, %v5548_v29, -inf }
 0x641   : > { %2866 = vmax.xlane.f32.xlu0 %v2820_v46  ;;  %v2821_v25 = vsel %vm2804_vm1, %v5542_v23, -inf }
 0x642   : > { %2868 = vmax.xlane.f32.xlu1 %v2821_v25  ;;  %v2819_v7 = vsel %vm2804_vm1, %v5551_v18, -inf }
 0x644   : > { %v4263_v33 = vpop.f32.mrb[76].mxu1 }
 0x645   : > { %v5560_v13 = vadd.f32 %v4263_v33, %v5463_v54  ;;  %v2739_v48 = vpop.f32.mrb[77].mxu1  ;;  %2862 = vmax.xlane.f32.xlu0 %v2818_v47 }
 0x646   : > { %v4264_v20 = vpop.f32.mrb[78].mxu1  ;;  %2864 = vmax.xlane.f32.xlu1 %v2819_v7  ;;  %v5572_v52 = vadd.f32 %v5463_v54, %v2739_v48 }
 0x647   : > { %v5566_v24 = vadd.f32 %v4264_v20, %v5463_v54  ;;  %v2742_v50 = vpop.f32.mrb[79].mxu1  ;;  %v2824_v55 = vsel %vm2804_vm1, %v5560_v13, -inf }
 0x648   : > { %v5575_v35 = vadd.f32 %v5463_v54, %v2742_v50  ;;  %v2822_v57 = vsel %vm2804_vm1, %v5572_v52, -inf  ;;  %v2936_v50 = vsub.f32 0.0, %v5467_v0 }
 0x649   : > { %2874 = vmax.xlane.f32.xlu0 %v2824_v55  ;;  %v2825_v22 = vsel %vm2804_vm1, %v5566_v24, -inf }
 0x64a   : > { %2876 = vmax.xlane.f32.xlu1 %v2825_v22  ;;  %v2823_v41 = vsel %vm2804_vm1, %v5575_v35, -inf  ;;  %v2934_v22 = vsub.f32 0.0, %v5470_v4 }
 0x64c   : > { %v4267_v26 = vpop.f32.mrb[80].mxu1 }
 0x64d   : > { %v5584_v17 = vadd.f32 %v4267_v26, %v5463_v54  ;;  %v2755_v51 = vpop.f32.mrb[81].mxu1  ;;  %2870 = vmax.xlane.f32.xlu0 %v2822_v57 }
 0x64e   : > { %v4268_v61 = vpop.f32.mrb[82].mxu1  ;;  %2872 = vmax.xlane.f32.xlu1 %v2823_v41  ;;  %v5596_v32 = vadd.f32 %v5463_v54, %v2755_v51 }
 0x64f   : > { %v5590_v58 = vadd.f32 %v4268_v61, %v5463_v54  ;;  %v2758_v30 = vpop.f32.mrb[83].mxu1  ;;  %v2828_v37 = vsel %vm2804_vm1, %v5584_v17, -inf }
 0x650   : > { %v5599_v39 = vadd.f32 %v5463_v54, %v2758_v30  ;;  %v2826_v12 = vsel %vm2804_vm1, %v5596_v32, -inf  ;;  %v2937_v30 = vsub.f32 0.0, %v5473_v14 }
 0x651   : > { %2882 = vmax.xlane.f32.xlu0 %v2828_v37  ;;  %v2829_v60 = vsel %vm2804_vm1, %v5590_v58, -inf }
 0x652   : > { %2884 = vmax.xlane.f32.xlu1 %v2829_v60  ;;  %v2827_v28 = vsel %vm2804_vm1, %v5599_v39, -inf }
 0x654   : > { %v4271_v5 = vpop.f32.mrb[84].mxu1 }
 0x655   : > { %v5608_v40 = vadd.f32 %v4271_v5, %v5463_v54  ;;  %v2771_v34 = vpop.f32.mrb[85].mxu1  ;;  %2878 = vmax.xlane.f32.xlu0 %v2826_v12 }
 0x656   : > { %v4272_v1 = vpop.f32.mrb[86].mxu1  ;;  %2880 = vmax.xlane.f32.xlu1 %v2827_v28  ;;  %v5620_v53 = vadd.f32 %v5463_v54, %v2771_v34 }
 0x657   : > { %v5614_v3 = vadd.f32 %v4272_v1, %v5463_v54  ;;  %v2774_v62 = vpop.f32.mrb[87].mxu1  ;;  %v2832_v10 = vsel %vm2804_vm1, %v5608_v40, -inf }
 0x658   : > { %v5623_v6 = vadd.f32 %v5463_v54, %v2774_v62  ;;  %v2830_v45 = vsel %vm2804_vm1, %v5620_v53, -inf }
 0x659   : > { %2890 = vmax.xlane.f32.xlu0 %v2832_v10  ;;  %v2833_v9 = vsel %vm2804_vm1, %v5614_v3, -inf  ;;  %v2940_v10 = vsub.f32 0.0, %v5491_v49 }
 0x65a   : > { %2892 = vmax.xlane.f32.xlu1 %v2833_v9  ;;  %v2831_v63 = vsel %vm2804_vm1, %v5623_v6, -inf }
 0x65c   : > { %v4275_v8 = vpop.f32.mrb[88].mxu1 }
 0x65d   : > { %2886 = vmax.xlane.f32.xlu0 %v2830_v45  ;;  %v2787_v42 = vpop.f32.mrb[89].mxu1  ;;  %v5638_v15 = vadd.f32 %v4275_v8, %v5463_v54  ;;  %v2941_v8 = vsub.f32 0.0, %v5494_v56 }
 0x65e   : > { %v5635_v44 = vadd.f32 %v5463_v54, %v2787_v42  ;;  %2888 = vmax.xlane.f32.xlu1 %v2831_v63  ;;  %v4276_v16 = vpop.f32.mrb[90].mxu1 }
 0x65f   : > { %v2790_v43 = vpop.f32.mrb[91].mxu1  ;;  %v5647_v33 = vadd.f32 %v4276_v16, %v5463_v54  ;;  %v2836_v48 = vsel %vm2804_vm1, %v5638_v15, -inf }
 0x660   : > { %v5641_v46 = vadd.f32 %v5463_v54, %v2790_v43  ;;  %v2834_v25 = vsel %vm2804_vm1, %v5635_v44, -inf  ;;  %v2938_v43 = vsub.f32 0.0, %v5500_v59 }
 0x661   : > { %2894 = vmax.xlane.f32.xlu0 %v2834_v25  ;;  %v2837_v7 = vsel %vm2804_vm1, %v5647_v33, -inf }
 0x662   : > { %v2835_v47 = vsel %vm2804_vm1, %v5641_v46, -inf }
 0x663   : > { %2896 = vmax.xlane.f32.xlu1 %v2835_v47 }
 0x665   : > { %2898 = vmax.xlane.f32.xlu0 %v2836_v48  ;;  %v2939_v48 = vsub.f32 0.0, %v5503_v21 }
 0x667   : > { %2900 = vmax.xlane.f32.xlu1 %v2837_v7 }
 0x6b5   : > { %v2843_v20 = vpop.xlane.xlu1 %2842 }
 0x6b6   : > { %v2904_v54 = vsub.f32 %v5467_v0, %v2843_v20  ;;  %v2839_v55 = vpop.xlane.xlu0 %2838  ;;  %v2935_v0 = vsub.f32 0.0, %v5479_v2 }
 0x6b7   : > { %v2902_v26 = vsub.f32 %v5470_v4, %v2839_v55 }
 0x6b8   : > { %v2968_v57 = vsel %vm2804_vm1, %v2904_v54, %v2936_v50 }
 0x6b9   : > { %v3002_v51 = vmul.f32 1.442695, %v2968_v57  ;;  %v2966_v41 = vsel %vm2804_vm1, %v2902_v26, %v2934_v22  ;;  %v2845_v61 = vpop.xlane.xlu1 %2844  ;;  %v2944_v26 = vsub.f32 0.0, %v5512_v36 }
 0x6ba   : > { %v2998_v37 = vmul.f32 1.442695, %v2966_v41  ;;  %v2905_v60 = vsub.f32 %v5473_v14, %v2845_v61  ;;  %v2841_v5 = vpop.xlane.xlu0 %2840  ;;  %v2945_v41 = vsub.f32 0.0, %v5518_v38 }
 0x6bb   : > { %4454 = vpow2.f32 %v3002_v51  ;;  %v2903_v12 = vsub.f32 %v5479_v2, %v2841_v5 }
 0x6bc   : > { %v2969_v4 = vsel %vm2804_vm1, %v2905_v60, %v2937_v30  ;;  %4456 = vpow2.f32 %v2998_v37 }
 0x6bd   : > { %v3004_v34 = vmul.f32 1.442695, %v2969_v4  ;;  %v2967_v28 = vsel %vm2804_vm1, %v2903_v12, %v2935_v0  ;;  %v2942_v4 = vsub.f32 0.0, %v5524_v19 }
 0x6be   : > { %v3000_v1 = vmul.f32 1.442695, %v2967_v28  ;;  %v2851_v62 = vpop.xlane.xlu0 %2850 }
 0x6bf   : > { %4458 = vpow2.f32 %v3004_v34  ;;  %v2908_v14 = vsub.f32 %v5491_v49, %v2851_v62  ;;  %v2853_v9 = vpop.xlane.xlu1 %2852  ;;  %v2943_v62 = vsub.f32 0.0, %v5527_v11 }
 0x6c0   : > { %v2909_v2 = vsub.f32 %v5494_v56, %v2853_v9  ;;  %4460 = vpow2.f32 %v3000_v1 }
 0x6c1   : > { %v2972_v45 = vsel %vm2804_vm1, %v2908_v14, %v2940_v10 }
 0x6c2   : > { %v3010_v42 = vmul.f32 1.442695, %v2972_v45  ;;  %v2973_v63 = vsel %vm2804_vm1, %v2909_v2, %v2941_v8  ;;  %v2847_v16 = vpop.xlane.xlu0 %2846 }
 0x6c3   : > { %v3012_v25 = vmul.f32 1.442695, %v2973_v63  ;;  %v2906_v47 = vsub.f32 %v5500_v59, %v2847_v16  ;;  %v2849_v49 = vpop.xlane.xlu1 %2848  ;;  %v2948_v63 = vsub.f32 0.0, %v5536_v27 }
 0x6c4   : > { %4462 = vpow2.f32 %v3010_v42  ;;  %v2907_v56 = vsub.f32 %v5503_v21, %v2849_v49 }
 0x6c5   : > { %v5686_v7 = vpop.eup %4454  ;;  %4464 = vpow2.f32 %v3012_v25  ;;  %v2970_v20 = vsel %vm2804_vm1, %v2906_v47, %v2938_v43  ;;  %v2949_v47 = vsub.f32 0.0, %v5542_v23 }
 0x6c6   : > { %v3006_v50 = vmul.f32 1.442695, %v2970_v20  ;;  %v2971_v54 = vsel %vm2804_vm1, %v2907_v56, %v2939_v48  ;;  %v2859_v55 = vpop.xlane.xlu0 %2858  ;;  %v3064_v59 = vsel %vm2804_vm1, %v5686_v7, 0.0  ;;  %v5695_v22 = vpop.eup %4456 }
 0x6c7   : > { %v3008_v21 = vmul.f32 1.442695, %v2971_v54  ;;  %v2912_v57 = vsub.f32 %v5512_v36, %v2859_v55  ;;  %v2861_v51 = vpop.xlane.xlu1 %2860  ;;  %3098 = vadd.xlane.f32.xlu0 %v3064_v59  ;;  %v3062_v12 = vsel %vm2804_vm1, %v5695_v22, 0.0 }
 0x6c8   : > { %4466 = vpow2.f32 %v3006_v50  ;;  %v2913_v61 = vsub.f32 %v5518_v38, %v2861_v51  ;;  %v2947_v51 = vsub.f32 0.0, %v5551_v18 }
 0x6c9   : > { %v5701_v30 = vpop.eup %4458  ;;  %4468 = vpow2.f32 %v3008_v21  ;;  %v2976_v37 = vsel %vm2804_vm1, %v2912_v57, %v2944_v26 }
 0x6ca   : > { %v3018_v60 = vmul.f32 1.442695, %v2976_v37  ;;  %v2977_v5 = vsel %vm2804_vm1, %v2913_v61, %v2945_v41  ;;  %v2855_v0 = vpop.xlane.xlu0 %2854  ;;  %v3065_v36 = vsel %vm2804_vm1, %v5701_v30, 0.0  ;;  %v5713_v38 = vpop.eup %4460 }
 0x6cb   : > { %v3020_v34 = vmul.f32 1.442695, %v2977_v5  ;;  %v2910_v28 = vsub.f32 %v5524_v19, %v2855_v0  ;;  %v2857_v1 = vpop.xlane.xlu1 %2856  ;;  %3100 = vadd.xlane.f32.xlu1 %v3065_v36  ;;  %3094 = vadd.xlane.f32.xlu0 %v3062_v12  ;;  %v3063_v19 = vsel %vm2804_vm1, %v5713_v38, 0.0 }
 0x6cc   : > { %4470 = vpow2.f32 %v3018_v60  ;;  %v2911_v10 = vsub.f32 %v5527_v11, %v2857_v1  ;;  %v2953_v1 = vsub.f32 0.0, %v5566_v24 }
 0x6cd   : > { %4472 = vpow2.f32 %v3020_v34  ;;  %v2974_v14 = vsel %vm2804_vm1, %v2910_v28, %v2942_v4 }
 0x6ce   : > { %v5721_v9 = vpop.eup %4462  ;;  %v3014_v8 = vmul.f32 1.442695, %v2974_v14  ;;  %v2975_v2 = vsel %vm2804_vm1, %v2911_v10, %v2943_v62  ;;  %v2867_v45 = vpop.xlane.xlu0 %2866 }
 0x6cf   : > { %v5728_v42 = vpop.eup %4464  ;;  %v3016_v11 = vmul.f32 1.442695, %v2975_v2  ;;  %v2916_v16 = vsub.f32 %v5536_v27, %v2867_v45  ;;  %v2869_v43 = vpop.xlane.xlu1 %2868  ;;  %3096 = vadd.xlane.f32.xlu1 %v3063_v19  ;;  %v3068_v25 = vsel %vm2804_vm1, %v5721_v9, 0.0 }
 0x6d0   : > { %4474 = vpow2.f32 %v3014_v8  ;;  %v2917_v49 = vsub.f32 %v5542_v23, %v2869_v43  ;;  %3106 = vadd.xlane.f32.xlu0 %v3068_v25  ;;  %v3069_v54 = vsel %vm2804_vm1, %v5728_v42, 0.0  ;;  %v2946_v23 = vsub.f32 0.0, %v5548_v29 }
 0x6d1   : > { %4476 = vpow2.f32 %v3016_v11  ;;  %v2980_v48 = vsel %vm2804_vm1, %v2916_v16, %v2948_v63  ;;  %v2951_v25 = vsub.f32 0.0, %v5575_v35 }
 0x6d2   : > { %v5739_v56 = vpop.eup %4466  ;;  %v3026_v20 = vmul.f32 1.442695, %v2980_v48  ;;  %v2981_v27 = vsel %vm2804_vm1, %v2917_v49, %v2949_v47  ;;  %v2863_v50 = vpop.xlane.xlu0 %2862 }
 0x6d3   : > { %v5746_v55 = vpop.eup %4468  ;;  %v3028_v59 = vmul.f32 1.442695, %v2981_v27  ;;  %v2914_v26 = vsub.f32 %v5548_v29, %v2863_v50  ;;  %v2865_v21 = vpop.xlane.xlu1 %2864  ;;  %3108 = vadd.xlane.f32.xlu1 %v3069_v54  ;;  %v3066_v57 = vsel %vm2804_vm1, %v5739_v56, 0.0 }
 0x6d4   : > { %4478 = vpow2.f32 %v3026_v20  ;;  %v2915_v41 = vsub.f32 %v5551_v18, %v2865_v21  ;;  %3102 = vadd.xlane.f32.xlu0 %v3066_v57  ;;  %v3067_v0 = vsel %vm2804_vm1, %v5746_v55, 0.0  ;;  %v2952_v18 = vsub.f32 0.0, %v5560_v13 }
 0x6d5   : > { %4480 = vpow2.f32 %v3028_v59  ;;  %v2978_v61 = vsel %vm2804_vm1, %v2914_v26, %v2946_v23  ;;  %v2957_v57 = vsub.f32 0.0, %v5590_v58 }
 0x6d6   : > { %v5757_v37 = vpop.eup %4470  ;;  %v3022_v60 = vmul.f32 1.442695, %v2978_v61  ;;  %v2979_v29 = vsel %vm2804_vm1, %v2915_v41, %v2947_v51  ;;  %v2875_v5 = vpop.xlane.xlu0 %2874 }
 0x6d7   : > { %6616 = vst [vmem:[#allocation2_spill] sm:$0xff] %v5757_v37  ;;  %v5764_v36 = vpop.eup %4472  ;;  %v3024_v12 = vmul.f32 1.442695, %v2979_v29  ;;  %v2920_v4 = vsub.f32 %v5560_v13, %v2875_v5  ;;  %v2877_v34 = vpop.xlane.xlu1 %2876  ;;  %3104 = vadd.xlane.f32.xlu1 %v3067_v0  ;;  %v3072_v28 = vsel %vm2804_vm1, %v5757_v37, 0.0 }
 0x6d8   : > { %6617 = vst [vmem:[#allocation3_spill] sm:$0xff] %v5764_v36  ;;  %4482 = vpow2.f32 %v3022_v60  ;;  %v2921_v62 = vsub.f32 %v5566_v24, %v2877_v34  ;;  %3114 = vadd.xlane.f32.xlu0 %v3072_v28  ;;  %v3073_v45 = vsel %vm2804_vm1, %v5764_v36, 0.0  ;;  %v2950_v24 = vsub.f32 0.0, %v5572_v52 }
 0x6d9   : > { %4484 = vpow2.f32 %v3024_v12  ;;  %v2984_v10 = vsel %vm2804_vm1, %v2920_v4, %v2952_v18  ;;  %v2955_v28 = vsub.f32 0.0, %v5599_v39 }
 0x6da   : > { %v5775_v14 = vpop.eup %4474  ;;  %v3034_v8 = vmul.f32 1.442695, %v2984_v10  ;;  %v2985_v13 = vsel %vm2804_vm1, %v2921_v62, %v2953_v1  ;;  %v2871_v2 = vpop.xlane.xlu0 %2870 }
 0x6db   : > { %6618 = vst [vmem:[#allocation4_spill] sm:$0xff] %v5775_v14  ;;  %v5782_v19 = vpop.eup %4476  ;;  %v3036_v63 = vmul.f32 1.442695, %v2985_v13  ;;  %v2918_v11 = vsub.f32 %v5572_v52, %v2871_v2  ;;  %v2873_v16 = vpop.xlane.xlu1 %2872  ;;  %3116 = vadd.xlane.f32.xlu1 %v3073_v45  ;;  %v3070_v43 = vsel %vm2804_vm1, %v5775_v14, 0.0 }
 0x6dc   : > { %6619 = vst [vmem:[#allocation5_spill] sm:$0xff] %v5782_v19  ;;  %4486 = vpow2.f32 %v3034_v8  ;;  %v2919_v47 = vsub.f32 %v5575_v35, %v2873_v16  ;;  %3110 = vadd.xlane.f32.xlu0 %v3070_v43  ;;  %v3071_v50 = vsel %vm2804_vm1, %v5782_v19, 0.0  ;;  %v2956_v35 = vsub.f32 0.0, %v5584_v17 }
 0x6dd   : > { %4488 = vpow2.f32 %v3036_v63  ;;  %v2982_v49 = vsel %vm2804_vm1, %v2918_v11, %v2950_v24  ;;  %v2961_v43 = vsub.f32 0.0, %v5614_v3 }
 0x6de   : > { %v5793_v48 = vpop.eup %4478  ;;  %v3030_v20 = vmul.f32 1.442695, %v2982_v49  ;;  %v2983_v52 = vsel %vm2804_vm1, %v2919_v47, %v2951_v25  ;;  %v2883_v27 = vpop.xlane.xlu0 %2882 }
 0x6df   : > { %6620 = vst [vmem:[#allocation6_spill] sm:$0xff] %v5793_v48  ;;  %v5800_v54 = vpop.eup %4480  ;;  %v3032_v23 = vmul.f32 1.442695, %v2983_v52  ;;  %v2924_v59 = vsub.f32 %v5584_v17, %v2883_v27  ;;  %v2885_v26 = vpop.xlane.xlu1 %2884  ;;  %3112 = vadd.xlane.f32.xlu1 %v3071_v50  ;;  %v3076_v21 = vsel %vm2804_vm1, %v5793_v48, 0.0 }
 0x6e0   : > { %6621 = vst [vmem:[#allocation7_spill] sm:$0xff] %v5800_v54  ;;  %4490 = vpow2.f32 %v3030_v20  ;;  %v2925_v51 = vsub.f32 %v5590_v58, %v2885_v26  ;;  %3122 = vadd.xlane.f32.xlu0 %v3076_v21  ;;  %v3077_v5 = vsel %vm2804_vm1, %v5800_v54, 0.0  ;;  %v2954_v58 = vsub.f32 0.0, %v5596_v32 }
 0x6e1   : > { %4492 = vpow2.f32 %v3032_v23  ;;  %v2988_v41 = vsel %vm2804_vm1, %v2924_v59, %v2956_v35  ;;  %v2959_v21 = vsub.f32 0.0, %v5623_v6 }
 0x6e2   : > { %v5811_v61 = vpop.eup %4482  ;;  %v3042_v60 = vmul.f32 1.442695, %v2988_v41  ;;  %v2989_v17 = vsel %vm2804_vm1, %v2925_v51, %v2957_v57  ;;  %v2879_v29 = vpop.xlane.xlu0 %2878 }
 0x6e3   : > { %6622 = vst [vmem:[#allocation8_spill] sm:$0xff] %v5811_v61  ;;  %v5818_v0 = vpop.eup %4484  ;;  %v3044_v18 = vmul.f32 1.442695, %v2989_v17  ;;  %v2922_v12 = vsub.f32 %v5596_v32, %v2879_v29  ;;  %v2881_v4 = vpop.xlane.xlu1 %2880  ;;  %3124 = vadd.xlane.f32.xlu1 %v3077_v5  ;;  %v3074_v34 = vsel %vm2804_vm1, %v5811_v61, 0.0 }
 0x6e4   : > { %6623 = vst [vmem:[#allocation9_spill] sm:$0xff] %v5818_v0  ;;  %4494 = vpow2.f32 %v3042_v60  ;;  %v2923_v1 = vsub.f32 %v5599_v39, %v2881_v4  ;;  %3118 = vadd.xlane.f32.xlu0 %v3074_v34  ;;  %v3075_v2 = vsel %vm2804_vm1, %v5818_v0, 0.0  ;;  %v2960_v39 = vsub.f32 0.0, %v5608_v40 }
 0x6e5   : > { %4496 = vpow2.f32 %v3044_v18  ;;  %v2986_v62 = vsel %vm2804_vm1, %v2922_v12, %v2954_v58  ;;  %v2963_v34 = vsub.f32 0.0, %v5641_v46 }
 0x6e6   : > { %v5829_v10 = vpop.eup %4486  ;;  %v3038_v8 = vmul.f32 1.442695, %v2986_v62  ;;  %v2987_v32 = vsel %vm2804_vm1, %v2923_v1, %v2955_v28  ;;  %v2891_v13 = vpop.xlane.xlu0 %2890 }
 0x6e7   : > { %6624 = vst [vmem:[#allocation10_spill] sm:$0xff] %v5829_v10  ;;  %v5836_v45 = vpop.eup %4488  ;;  %v3040_v24 = vmul.f32 1.442695, %v2987_v32  ;;  %v2928_v63 = vsub.f32 %v5608_v40, %v2891_v13  ;;  %v2893_v11 = vpop.xlane.xlu1 %2892  ;;  %3120 = vadd.xlane.f32.xlu1 %v3075_v2  ;;  %v3080_v16 = vsel %vm2804_vm1, %v5829_v10, 0.0  ;;  %v2964_v2 = vsub.f32 0.0, %v5638_v15 }
 0x6e8   : > { %6625 = vst [vmem:[#allocation11_spill] sm:$0xff] %v5836_v45  ;;  %4498 = vpow2.f32 %v3038_v8  ;;  %v2929_v25 = vsub.f32 %v5614_v3, %v2893_v11  ;;  %3130 = vadd.xlane.f32.xlu0 %v3080_v16  ;;  %v3081_v27 = vsel %vm2804_vm1, %v5836_v45, 0.0  ;;  %v2958_v3 = vsub.f32 0.0, %v5620_v53 }
 0x6e9   : > { %4500 = vpow2.f32 %v3040_v24  ;;  %v2992_v47 = vsel %vm2804_vm1, %v2928_v63, %v2960_v39  ;;  %v2965_v16 = vsub.f32 0.0, %v5647_v33 }
 0x6ea   : > { %v5847_v49 = vpop.eup %4490  ;;  %v3050_v20 = vmul.f32 1.442695, %v2992_v47  ;;  %v2993_v40 = vsel %vm2804_vm1, %v2929_v25, %v2961_v43  ;;  %v2887_v52 = vpop.xlane.xlu0 %2886 }
 0x6eb   : > { %6626 = vst [vmem:[#allocation12_spill] sm:$0xff] %v5847_v49  ;;  %v5854_v50 = vpop.eup %4492  ;;  %v3052_v35 = vmul.f32 1.442695, %v2993_v40  ;;  %v2926_v23 = vsub.f32 %v5620_v53, %v2887_v52  ;;  %v2889_v59 = vpop.xlane.xlu1 %2888  ;;  %3132 = vadd.xlane.f32.xlu1 %v3081_v27  ;;  %v3078_v26 = vsel %vm2804_vm1, %v5847_v49, 0.0 }
 0x6ec   : > { %6627 = vst [vmem:[#allocation13_spill] sm:$0xff] %v5854_v50  ;;  %4502 = vpow2.f32 %v3050_v20  ;;  %v2927_v57 = vsub.f32 %v5623_v6, %v2889_v59  ;;  %3126 = vadd.xlane.f32.xlu0 %v3078_v26  ;;  %v3079_v29 = vsel %vm2804_vm1, %v5854_v50, 0.0  ;;  %v2962_v6 = vsub.f32 0.0, %v5635_v44 }
 0x6ed   : > { %4504 = vpow2.f32 %v3052_v35  ;;  %v2990_v51 = vsel %vm2804_vm1, %v2926_v23, %v2958_v3 }
 0x6ee   : > { %v5865_v41 = vpop.eup %4494  ;;  %v3046_v60 = vmul.f32 1.442695, %v2990_v51  ;;  %v2991_v53 = vsel %vm2804_vm1, %v2927_v57, %v2959_v21  ;;  %v2895_v17 = vpop.xlane.xlu0 %2894 }
 0x6ef   : > { %6628 = vst [vmem:[#allocation14_spill] sm:$0xff] %v5865_v41  ;;  %v5872_v5 = vpop.eup %4496  ;;  %v3048_v58 = vmul.f32 1.442695, %v2991_v53  ;;  %v2930_v18 = vsub.f32 %v5635_v44, %v2895_v17  ;;  %3128 = vadd.xlane.f32.xlu1 %v3079_v29  ;;  %v3084_v12 = vsel %vm2804_vm1, %v5865_v41, 0.0 }
 0x6f0   : > { %6629 = vst [vmem:[#allocation15_spill] sm:$0xff] %v5872_v5  ;;  %4506 = vpow2.f32 %v3046_v60  ;;  %v2897_v4 = vpop.xlane.xlu1 %2896  ;;  %3138 = vadd.xlane.f32.xlu0 %v3084_v12  ;;  %v3085_v32 = vsel %vm2804_vm1, %v5872_v5, 0.0  ;;  %v3286_v12 = vadd.f32 1.0, %v5695_v22 }
 0x6f1   : > { %4508 = vpow2.f32 %v3048_v58  ;;  %v2994_v28 = vsel %vm2804_vm1, %v2930_v18, %v2962_v6  ;;  %v2931_v1 = vsub.f32 %v5641_v46, %v2897_v4  ;;  %v3288_v58 = vadd.f32 1.0, %v5686_v7 }
 0x6f2   : > { %v5883_v62 = vpop.eup %4498  ;;  %v3054_v8 = vmul.f32 1.442695, %v2994_v28  ;;  %v2899_v44 = vpop.xlane.xlu0 %2898  ;;  %v3289_v18 = vadd.f32 1.0, %v5701_v30  ;;  %v3287_v4 = vadd.f32 1.0, %v5713_v38  ;;  %v3293_v28 = vadd.f32 1.0, %v5728_v42 }
 0x6f3   : > { %6630 = vst [vmem:[#allocation16_spill] sm:$0xff] %v5883_v62  ;;  %v5888_v13 = vpop.eup %4500  ;;  %v2995_v39 = vsel %vm2804_vm1, %v2931_v1, %v2963_v34  ;;  %v2932_v24 = vsub.f32 %v5638_v15, %v2899_v44  ;;  %3140 = vadd.xlane.f32.xlu1 %v3085_v32  ;;  %v3082_v46 = vsel %vm2804_vm1, %v5883_v62, 0.0  ;;  %v3292_v34 = vadd.f32 1.0, %v5721_v9 }
 0x6f4   : > { %6631 = vst [vmem:[#allocation17_spill] sm:$0xff] %v5888_v13  ;;  %4510 = vpow2.f32 %v3054_v8  ;;  %v3056_v63 = vmul.f32 1.442695, %v2995_v39  ;;  %v2901_v11 = vpop.xlane.xlu1 %2900  ;;  %3134 = vadd.xlane.f32.xlu0 %v3082_v46  ;;  %v3083_v20 = vsel %vm2804_vm1, %v5888_v13, 0.0  ;;  %v3290_v1 = vadd.f32 1.0, %v5739_v56 }
 0x6f5   : > { %v2996_v43 = vsel %vm2804_vm1, %v2932_v24, %v2964_v2  ;;  %v2933_v25 = vsub.f32 %v5647_v33, %v2901_v11  ;;  %v3291_v44 = vadd.f32 1.0, %v5746_v55  ;;  %v3296_v2 = vadd.f32 1.0, %v5757_v37 }
 0x6f6   : > { %v5901_v47 = vpop.eup %4502  ;;  %4512 = vpow2.f32 %v3056_v63  ;;  %v3058_v15 = vmul.f32 1.442695, %v2996_v43  ;;  %v3297_v24 = vadd.f32 1.0, %v5764_v36  ;;  %v3294_v46 = vadd.f32 1.0, %v5775_v14 }
 0x6f7   : > { %6632 = vst [vmem:[#allocation18_spill] sm:$0xff] %v5901_v47  ;;  %v5906_v40 = vpop.eup %4504  ;;  %v2997_v52 = vsel %vm2804_vm1, %v2933_v25, %v2965_v16  ;;  %3136 = vadd.xlane.f32.xlu1 %v3083_v20  ;;  %v3088_v27 = vsel %vm2804_vm1, %v5901_v47, 0.0  ;;  %v3295_v16 = vadd.f32 1.0, %v5782_v19 }
 0x6f8   : > { %6633 = vst [vmem:[#allocation19_spill] sm:$0xff] %v5906_v40  ;;  %4514 = vpow2.f32 %v3058_v15  ;;  %v3060_v33 = vmul.f32 1.442695, %v2997_v52  ;;  %3146 = vadd.xlane.f32.xlu0 %v3088_v27  ;;  %v3089_v35 = vsel %vm2804_vm1, %v5906_v40, 0.0  ;;  %v3300_v15 = vadd.f32 1.0, %v5793_v48 }
 0x6f9   : > { %v3301_v52 = vadd.f32 1.0, %v5800_v54  ;;  %v6042_v37 = vadd.f32 1.0, %v5906_v40 }
 0x6fa   : > { %v5913_v3 = vpop.eup %4506  ;;  %4516 = vpow2.f32 %v3060_v33 }
 0x6fb   : > { %6634 = vst [vmem:[#allocation20_spill] sm:$0xff] %v5913_v3  ;;  %v5918_v23 = vpop.eup %4508  ;;  %3148 = vadd.xlane.f32.xlu1 %v3089_v35  ;;  %v3086_v59 = vsel %vm2804_vm1, %v5913_v3, 0.0  ;;  %4518 = vrcp.f32 %v3288_v58  ;;  %v5961_v35 = vadd.f32 1.0, %v5811_v61  ;;  %6640 = vst [vmem:[#allocation26_spill] sm:$0xff] %v6042_v37 }
 0x6fc   : > { %6635 = vst [vmem:[#allocation21_spill] sm:$0xff] %v5918_v23  ;;  %3142 = vadd.xlane.f32.xlu0 %v3086_v59  ;;  %v3087_v21 = vsel %vm2804_vm1, %v5918_v23, 0.0  ;;  %4520 = vrcp.f32 %v3289_v18 }
 0x6fd   : > { %4522 = vrcp.f32 %v3286_v12 }
 0x6fe   : > { %v5923_v26 = vpop.eup %4510  ;;  %4524 = vrcp.f32 %v3287_v4 }
 0x6ff   : > { %6636 = vst [vmem:[#allocation22_spill] sm:$0xff] %v5923_v26  ;;  %3144 = vadd.xlane.f32.xlu1 %v3087_v21  ;;  %v3090_v57 = vsel %vm2804_vm1, %v5923_v26, 0.0  ;;  %4526 = vrcp.f32 %v3292_v34 }
 0x700   : > { %v5931_v51 = vpop.eup %4512  ;;  %3150 = vadd.xlane.f32.xlu0 %v3090_v57  ;;  %4528 = vrcp.f32 %v3293_v28 }
 0x701   : > { %6637 = vst [vmem:[#allocation23_spill] sm:$0xff] %v5931_v51  ;;  %v3091_v60 = vsel %vm2804_vm1, %v5931_v51, 0.0  ;;  %4530 = vrcp.f32 %v3290_v1 }
 0x702   : > { %v5936_v53 = vpop.eup %4514  ;;  %4532 = vrcp.f32 %v3291_v44 }
 0x703   : > { %6638 = vst [vmem:[#allocation24_spill] sm:$0xff] %v5936_v53  ;;  %3152 = vadd.xlane.f32.xlu1 %v3091_v60  ;;  %v3092_v17 = vsel %vm2804_vm1, %v5936_v53, 0.0  ;;  %4534 = vrcp.f32 %v3296_v2 }
 0x704   : > { %v5941_v29 = vpop.eup %4516  ;;  %3154 = vadd.xlane.f32.xlu0 %v3092_v17  ;;  %4536 = vrcp.f32 %v3297_v24 }
 0x705   : > { %6639 = vst [vmem:[#allocation25_spill] sm:$0xff] %v5941_v29  ;;  %v3093_v6 = vsel %vm2804_vm1, %v5941_v29, 0.0  ;;  %v4519_v8 = vpop.eup %4518  ;;  %4538 = vrcp.f32 %v3294_v46 }
 0x706   : > { %v4521_v32 = vpop.eup %4520  ;;  %v3352_v11 = vmul.f32 %v4519_v8, %v3288_v58  ;;  %4540 = vrcp.f32 %v3295_v16  ;;  %v5966_v58 = vadd.f32 1.0, %v5818_v0 }
 0x707   : > { %3156 = vadd.xlane.f32.xlu1 %v3093_v6  ;;  %v4523_v39 = vpop.eup %4522  ;;  %v3353_v43 = vmul.f32 %v4521_v32, %v3289_v18  ;;  %4542 = vrcp.f32 %v3300_v15 }
 0x708   : > { %v4525_v63 = vpop.eup %4524  ;;  %v3350_v25 = vmul.f32 %v4523_v39, %v3286_v12  ;;  %v3384_v33 = vsub.f32 2.0, %v3352_v11  ;;  %4544 = vrcp.f32 %v3301_v52 }
 0x709   : > { %v4527_v20 = vpop.eup %4526  ;;  %v3351_v27 = vmul.f32 %v4525_v63, %v3287_v4  ;;  %v3385_v59 = vsub.f32 2.0, %v3353_v43  ;;  %4546 = vrcp.f32 %v5961_v35 }
 0x70a   : > { %v3382_v21 = vsub.f32 2.0, %v3350_v25  ;;  %v3356_v57 = vmul.f32 %v4527_v20, %v3292_v34  ;;  %v4529_v60 = vpop.eup %4528  ;;  %v3416_v6 = vmul.f32 %v4519_v8, %v3384_v33  ;;  %v5969_v34 = vadd.f32 1.0, %v5829_v10 }
 0x70b   : > { %v3383_v17 = vsub.f32 2.0, %v3351_v27  ;;  %v4531_v18 = vpop.eup %4530  ;;  %v3417_v12 = vmul.f32 %v4521_v32, %v3385_v59  ;;  %v3357_v29 = vmul.f32 %v4529_v60, %v3293_v28  ;;  %v5972_v27 = vadd.f32 1.0, %v5836_v45 }
 0x70c   : > { %v3414_v4 = vmul.f32 %v4523_v39, %v3382_v21  ;;  %v3388_v11 = vsub.f32 2.0, %v3356_v57  ;;  %v4533_v43 = vpop.eup %4532  ;;  %v5976_v33 = vsel %vm2805_vm2, %v3416_v6, 0.0  ;;  %4548 = vrcp.f32 %v5966_v58 }
 0x70d   : > { %v4535_v25 = vpop.eup %4534  ;;  %v3415_v61 = vmul.f32 %v4525_v63, %v3383_v17  ;;  %v5980_v32 = vadd.f32 1.0, %v5847_v49  ;;  %v5984_v39 = vsel %vm2805_vm2, %v3417_v12, 0.0  ;;  %v3389_v21 = vsub.f32 2.0, %v3357_v29 }
 0x70e   : > { %v4537_v8 = vpop.eup %4536  ;;  %v5988_v63 = vsel %vm2805_vm2, %v3414_v4, 0.0  ;;  %v3420_v59 = vmul.f32 %v4527_v20, %v3388_v11  ;;  %v3354_v17 = vmul.f32 %v4531_v18, %v3290_v1  ;;  %v3355_v6 = vmul.f32 %v4533_v43, %v3291_v44 }
 0x70f   : > { %v4539_v28 = vpop.eup %4538  ;;  %4550 = vrcp.f32 %v5969_v34  ;;  %v5992_v45 = vadd.f32 1.0, %v5854_v50  ;;  %v5996_v10 = vsel %vm2805_vm2, %v3415_v61, 0.0  ;;  %v3360_v12 = vmul.f32 %v4535_v25, %v3296_v2 }
 0x710   : > { %v4541_v57 = vpop.eup %4540  ;;  %4552 = vrcp.f32 %v5972_v27  ;;  %v6000_v4 = vadd.f32 1.0, %v5865_v41  ;;  %v3361_v1 = vmul.f32 %v4537_v8, %v3297_v24  ;;  %v3358_v44 = vmul.f32 %v4539_v28, %v3294_v46 }
 0x711   : > { %v4543_v49 = vpop.eup %4542  ;;  %4554 = vrcp.f32 %v5980_v32  ;;  %v6004_v11 = vadd.f32 1.0, %v5872_v5  ;;  %v6008_v61 = vsel %vm2805_vm2, %v3420_v59, 0.0  ;;  %v3421_v2 = vmul.f32 %v4529_v60, %v3389_v21 }
 0x712   : > { %v4545_v29 = vpop.eup %4544  ;;  %v3359_v50 = vmul.f32 %v4541_v57, %v3295_v16  ;;  %v3386_v54 = vsub.f32 2.0, %v3354_v17  ;;  %v3387_v41 = vsub.f32 2.0, %v3355_v6  ;;  %v3364_v48 = vmul.f32 %v4543_v49, %v3300_v15 }
 0x713   : > { %v4547_v0 = vpop.eup %4546  ;;  %v3392_v24 = vsub.f32 2.0, %v3360_v12  ;;  %v3365_v46 = vmul.f32 %v4545_v29, %v3301_v52  ;;  %v6013_v5 = vadd.f32 1.0, %v5883_v62  ;;  %v3393_v59 = vsub.f32 2.0, %v3361_v1 }
 0x714   : > { %v3390_v60 = vsub.f32 2.0, %v3358_v44  ;;  %v6021_v16 = vadd.f32 1.0, %v5888_v13  ;;  %v6026_v15 = vsel %vm2805_vm2, %v3421_v2, 0.0  ;;  %v3391_v52 = vsub.f32 2.0, %v3359_v50 }
 0x715   : > { %v3362_v21 = vmul.f32 %v4547_v0, %v5961_v35  ;;  %v3418_v6 = vmul.f32 %v4531_v18, %v3386_v54  ;;  %v3419_v12 = vmul.f32 %v4533_v43, %v3387_v41  ;;  %v3396_v1 = vsub.f32 2.0, %v3364_v48 }
 0x716   : > { %v6029_v17 = vpop.eup %4548  ;;  %v3424_v44 = vmul.f32 %v4535_v25, %v3392_v24  ;;  %v3397_v62 = vsub.f32 2.0, %v3365_v46  ;;  %v6034_v13 = vadd.f32 1.0, %v5901_v47  ;;  %v3425_v50 = vmul.f32 %v4537_v8, %v3393_v59 }
 0x717   : > { %v3422_v35 = vmul.f32 %v4539_v28, %v3390_v60  ;;  %v3423_v41 = vmul.f32 %v4541_v57, %v3391_v52  ;;  %v3394_v18 = vsub.f32 2.0, %v3362_v21  ;;  %v3363_v43 = vmul.f32 %v6029_v17, %v5966_v58 }
 0x718   : > { %v6056_v8 = vsel %vm2805_vm2, %v3418_v6, 0.0  ;;  %v6060_v28 = vsel %vm2805_vm2, %v3419_v12, 0.0  ;;  %v3428_v24 = vmul.f32 %v4543_v49, %v3396_v1  ;;  %v6064_v57 = vsel %vm2805_vm2, %v3424_v44, 0.0 }
 0x719   : > { %v6036_v36 = vpop.eup %4550  ;;  %v3429_v59 = vmul.f32 %v4545_v29, %v3397_v62  ;;  %v6068_v58 = vadd.f32 1.0, %v5913_v3  ;;  %v6076_v6 = vsel %vm2805_vm2, %v3425_v50, 0.0  ;;  %v6080_v49 = vsel %vm2805_vm2, %v3422_v35, 0.0 }
 0x71a   : > { %v6044_v54 = vpop.eup %4552  ;;  %v3426_v12 = vmul.f32 %v4547_v0, %v3394_v18  ;;  %v3395_v1 = vsub.f32 2.0, %v3363_v43  ;;  %v6097_v35 = vsel %vm2805_vm2, %v3428_v24, 0.0  ;;  %v3368_v3 = vmul.f32 %v6036_v36, %v5969_v34 }
 0x71b   : > { %v6051_v25 = vpop.eup %4554  ;;  %6641 = vst [vmem:[#allocation27_spill] sm:$0xff] %v6068_v58  ;;  %6642 = vst [vmem:[#allocation28_spill] sm:$0xff] %v6097_v35  ;;  %v6103_v47 = vsel %vm2805_vm2, %v3429_v59, 0.0  ;;  %v6107_v0 = vmul.f32 %v6044_v54, %v5972_v27  ;;  %v6120_v59 = vadd.f32 1.0, %v5931_v51  ;;  %v6168_v35 = vadd.f32 1.0, %v5936_v53 }
 0x71c   : > { %6643 = vst [vmem:[#allocation29_spill] sm:$0xff] %v6103_v47 }
 0x754   : > { %v3099_v20 = vpop.xlane.xlu0 %3098 }
 0x755   : > { %4556 = vrcp.f32 %v3099_v20 }
 0x756   : > { %4558 = vrcp.f32 %v5992_v45 }
 0x757   : > { %4560 = vrcp.f32 %v6000_v4 }
 0x758   : > { %v6015_v19 = vpop.xlane.xlu1 %3100  ;;  %v6017_v14 = vpop.xlane.xlu0 %3094  ;;  %4562 = vrcp.f32 %v6004_v11 }
 0x759   : > { %4564 = vrcp.f32 %v6015_v19 }
 0x75a   : > { %4566 = vrcp.f32 %v6017_v14 }
 0x75b   : > { %4568 = vrcp.f32 %v6013_v5 }
 0x75c   : > { %v6038_v2 = vpop.xlane.xlu1 %3096  ;;  %4570 = vrcp.f32 %v6021_v16 }
 0x75d   : > { %4572 = vrcp.f32 %v6038_v2  ;;  %v6047_v48 = vpop.xlane.xlu0 %3106 }
 0x75e   : > { %4574 = vrcp.f32 %v6047_v48 }
 0x75f   : > { %v4557_v46 = vpop.eup %4556  ;;  %4576 = vrcp.f32 %v6034_v13 }
 0x760   : > { %v6070_v60 = vpop.eup %4558  ;;  %v3192_v52 = vmul.f32 %v4557_v46, %v3099_v20  ;;  %v6072_v21 = vpop.xlane.xlu1 %3108  ;;  %4578 = vrcp.f32 %v6042_v37  ;;  %v6090_v20 = vsel %vm2805_vm2, %v3423_v41, 0.0  ;;  %v6111_v41 = vadd.f32 1.0, %v5918_v23 }
 0x761   : > { %v6083_v62 = vpop.eup %4560  ;;  %4580 = vrcp.f32 %v6072_v21  ;;  %v6086_v29 = vpop.xlane.xlu0 %3102 }
 0x762   : > { %v6092_v44 = vpop.eup %4562  ;;  %v3224_v50 = vsub.f32 2.0, %v3192_v52  ;;  %4582 = vrcp.f32 %v6086_v29  ;;  %6644 = vst [vmem:[#allocation30_spill] sm:$0xff] %v6111_v41  ;;  %v6117_v52 = vadd.f32 1.0, %v5923_v26  ;;  %v3400_v26 = vsub.f32 2.0, %v3368_v3 }
 0x763   : > { %v4565_v40 = vpop.eup %4564  ;;  %4584 = vrcp.f32 %v6068_v58 }
 0x764   : > { %v4567_v18 = vpop.eup %4566  ;;  %v3256_v43 = vmul.f32 %v4557_v46, %v3224_v50  ;;  %v3193_v24 = vmul.f32 %v4565_v40, %v6015_v19  ;;  %v6114_v34 = vpop.xlane.xlu1 %3104  ;;  %v6130_v46 = vsel %vm2805_vm2, %v3426_v12, 0.0  ;;  %v3427_v19 = vmul.f32 %v6029_v17, %v3395_v1 }
 0x765   : > { %v6122_v27 = vpop.eup %4568  ;;  %v3190_v37 = vmul.f32 %v4567_v18, %v6017_v14  ;;  %4586 = vrcp.f32 %v6114_v34  ;;  %v6126_v23 = vpop.xlane.xlu0 %3114  ;;  %6645 = vst [vmem:[#allocation31_spill] sm:$0xff] %v6130_v46  ;;  %v3401_v46 = vsub.f32 2.0, %v6107_v0  ;;  %v6147_v17 = vmul.f32 %v6051_v25, %v5980_v32 }
 0x766   : > { %v6133_v50 = vpop.eup %4570  ;;  %v3448_v14 = vmul.f32 %v5686_v7, %v3256_v43  ;;  %v3225_v51 = vsub.f32 2.0, %v3193_v24  ;;  %4588 = vrcp.f32 %v6126_v23  ;;  %v6151_v1 = vmul.f32 %v6070_v60, %v5992_v45 }
 0x767   : > { %v4573_v58 = vpop.eup %4572  ;;  %v3222_v12 = vsub.f32 2.0, %v3190_v37  ;;  %4590 = vrcp.f32 %v6111_v41 }
 0x768   : > { %v4575_v47 = vpop.eup %4574  ;;  %v3512_v7 = vsel %vm2804_vm1, %v3448_v14, %v5976_v33  ;;  %v3257_v43 = vmul.f32 %v4565_v40, %v3225_v51  ;;  %v3191_v3 = vmul.f32 %v4573_v58, %v6038_v2  ;;  %v6157_v24 = vpop.xlane.xlu1 %3116  ;;  %v6176_v2 = vsel %vm2805_vm2, %v3427_v19, 0.0 }
 0x769   : > { %v6160_v37 = vpop.eup %4576  ;;  %3544 = vst [vmem:[%s6140_s18 + $0x10] sm:$0xff] %v3512_v7  ;;  %v3254_v32 = vmul.f32 %v4567_v18, %v3222_v12  ;;  %v3196_v0 = vmul.f32 %v4575_v47, %v6047_v48  ;;  %4592 = vrcp.f32 %v6157_v24  ;;  %v6165_v45 = vpop.xlane.xlu0 %3110  ;;  %v3432_v12 = vmul.f32 %v6036_v36, %v3400_v26 }
 0x76a   : > { %v6170_v40 = vpop.eup %4578  ;;  %v3449_v51 = vmul.f32 %v5701_v30, %v3257_v43  ;;  %v3223_v33 = vsub.f32 2.0, %v3191_v3  ;;  %4594 = vrcp.f32 %v6165_v45  ;;  %v3398_v7 = vsub.f32 2.0, %v6147_v17 }
 0x76b   : > { %v4581_v48 = vpop.eup %4580  ;;  %v3446_v18 = vmul.f32 %v5695_v22, %v3254_v32  ;;  %v3228_v14 = vsub.f32 2.0, %v3196_v0  ;;  %v6189_v19 = vmul.f32 %v6083_v62, %v6000_v4 }
 0x76c   : > { %v4583_v53 = vpop.eup %4582  ;;  %v3513_v30 = vsel %vm2804_vm1, %v3449_v51, %v5984_v39  ;;  %v3255_v43 = vmul.f32 %v4573_v58, %v3223_v33  ;;  %v3197_v3 = vmul.f32 %v4581_v48, %v6072_v21  ;;  %v6185_v41 = vpop.xlane.xlu1 %3112  ;;  %v3433_v21 = vmul.f32 %v6044_v54, %v3401_v46 }
 0x76d   : > { %v6191_v22 = vpop.eup %4584  ;;  %3545 = vst [vmem:[%s6140_s18 + $0x18] sm:$0xff] %v3513_v30  ;;  %v3510_v36 = vsel %vm2804_vm1, %v3446_v18, %v5988_v63  ;;  %v3260_v26 = vmul.f32 %v4575_v47, %v3228_v14  ;;  %v3194_v17 = vmul.f32 %v4583_v53, %v6086_v29  ;;  %4596 = vrcp.f32 %v6185_v41  ;;  %v6199_v39 = vpop.xlane.xlu0 %3122 }
 0x76e   : > { %3542 = vst [vmem:[%s6140_s18] sm:$0xff] %v3510_v36  ;;  %v3447_v58 = vmul.f32 %v5713_v38, %v3255_v43  ;;  %v3229_v4 = vsub.f32 2.0, %v3197_v3  ;;  %4598 = vrcp.f32 %v6199_v39  ;;  %v3399_v47 = vsub.f32 2.0, %v6151_v1 }
 0x76f   : > { %v4587_v32 = vpop.eup %4586  ;;  %v3452_v0 = vmul.f32 %v5721_v9, %v3260_v26  ;;  %v3226_v63 = vsub.f32 2.0, %v3194_v17  ;;  %v6209_v29 = vmul.f32 %v6092_v44, %v6004_v11  ;;  %4600 = vrcp.f32 %v6117_v52 }
 0x770   : > { %v4589_v51 = vpop.eup %4588  ;;  %v3511_v38 = vsel %vm2804_vm1, %v3447_v58, %v5996_v10  ;;  %v3261_v33 = vmul.f32 %v4581_v48, %v3229_v4  ;;  %v3195_v18 = vmul.f32 %v4587_v32, %v6114_v34  ;;  %v6215_v54 = vpop.xlane.xlu1 %3124  ;;  %v6233_v14 = vsel %vm2805_vm2, %v3432_v12, 0.0 }
 0x771   : > { %3543 = vst [vmem:[%s6140_s18 + $0x8] sm:$0xff] %v3511_v38  ;;  %v3516_v9 = vsel %vm2804_vm1, %v3452_v0, %v6008_v61  ;;  %v3258_v46 = vmul.f32 %v4583_v53, %v3226_v63  ;;  %v3200_v11 = vmul.f32 %v4589_v51, %v6126_v23  ;;  %4602 = vrcp.f32 %v6215_v54  ;;  %v6224_v1 = vpop.xlane.xlu0 %3118  ;;  %v6226_v10 = vpop.eup %4590 }
 0x772   : > { %3548 = vst [vmem:[%s6140_s18 + $0x30] sm:$0xff] %v3516_v9  ;;  %v3453_v34 = vmul.f32 %v5728_v42, %v3261_v33  ;;  %v3227_v48 = vsub.f32 2.0, %v3195_v18  ;;  %4604 = vrcp.f32 %v6224_v1  ;;  %v3430_v30 = vmul.f32 %v6051_v25, %v3398_v7 }
 0x773   : > { %v4593_v53 = vpop.eup %4592  ;;  %v3450_v23 = vmul.f32 %v5739_v56, %v3258_v46  ;;  %v3232_v61 = vsub.f32 2.0, %v3200_v11  ;;  %v3404_v43 = vsub.f32 2.0, %v6189_v19  ;;  %v6246_v12 = vmul.f32 %v6122_v27, %v6013_v5  ;;  %v6648_v11 = vld [vmem:[#allocation4_spill] sm:$0xff] }
 0x774   : > { %v4595_v3 = vpop.eup %4594  ;;  %v3517_v42 = vsel %vm2804_vm1, %v3453_v34, %v6026_v15  ;;  %v3259_v36 = vmul.f32 %v4587_v32, %v3227_v48  ;;  %v3201_v26 = vmul.f32 %v4593_v53, %v6157_v24  ;;  %v6242_v17 = vpop.xlane.xlu1 %3120  ;;  %v6261_v5 = vsel %vm2805_vm2, %v3433_v21, 0.0 }
 0x775   : > { %3549 = vst [vmem:[%s6140_s18 + $0x38] sm:$0xff] %v3517_v42  ;;  %v3514_v56 = vsel %vm2804_vm1, %v3450_v23, %v6056_v8  ;;  %v3264_v25 = vmul.f32 %v4589_v51, %v3232_v61  ;;  %v3198_v7 = vmul.f32 %v4595_v3, %v6165_v45  ;;  %4606 = vrcp.f32 %v6242_v17  ;;  %v6254_v15 = vpop.xlane.xlu0 %3130  ;;  %v6646_v8 = vld [vmem:[#allocation2_spill] sm:$0xff] }
 0x776   : > { %3546 = vst [vmem:[%s6140_s18 + $0x20] sm:$0xff] %v3514_v56  ;;  %v3451_v24 = vmul.f32 %v5746_v55, %v3259_v36  ;;  %v3233_v19 = vsub.f32 2.0, %v3201_v26  ;;  %4608 = vrcp.f32 %v6254_v15  ;;  %v3431_v45 = vmul.f32 %v6070_v60, %v3399_v47 }
 0x777   : > { %v4597_v58 = vpop.eup %4596  ;;  %v3456_v4 = vmul.f32 %v6646_v8, %v3264_v25  ;;  %v3230_v32 = vsub.f32 2.0, %v3198_v7  ;;  %v3405_v0 = vsub.f32 2.0, %v6209_v29  ;;  %v6274_v21 = vmul.f32 %v6133_v50, %v6021_v16 }
 0x778   : > { %v4599_v63 = vpop.eup %4598  ;;  %v3515_v55 = vsel %vm2804_vm1, %v3451_v24, %v6060_v28  ;;  %v3265_v51 = vmul.f32 %v4593_v53, %v3233_v19  ;;  %v3199_v38 = vmul.f32 %v4597_v58, %v6185_v41  ;;  %v6270_v33 = vpop.xlane.xlu1 %3132  ;;  %v6647_v41 = vld [vmem:[#allocation3_spill] sm:$0xff]  ;;  %v6290_v46 = vsel %vm2805_vm2, %v3430_v30, 0.0 }
 0x779   : > { %3547 = vst [vmem:[%s6140_s18 + $0x28] sm:$0xff] %v3515_v55  ;;  %v3520_v60 = vsel %vm2804_vm1, %v3456_v4, %v6064_v57  ;;  %v3262_v47 = vmul.f32 %v4595_v3, %v3230_v32  ;;  %v3204_v29 = vmul.f32 %v4599_v63, %v6199_v39  ;;  %4610 = vrcp.f32 %v6270_v33  ;;  %v6282_v28 = vpop.xlane.xlu0 %3126  ;;  %v6284_v18 = vpop.eup %4600 }
 0x77a   : > { %3552 = vst [vmem:[%s6140_s18 + $0x50] sm:$0xff] %v3520_v60  ;;  %v3457_v9 = vmul.f32 %v6647_v41, %v3265_v51  ;;  %v3231_v16 = vsub.f32 2.0, %v3199_v38  ;;  %4612 = vrcp.f32 %v6282_v28  ;;  %v3436_v48 = vmul.f32 %v6083_v62, %v3404_v43 }
 0x77b   : > { %v4603_v57 = vpop.eup %4602  ;;  %v3454_v39 = vmul.f32 %v6648_v11, %v3262_v47  ;;  %v3236_v34 = vsub.f32 2.0, %v3204_v29  ;;  %v3402_v53 = vsub.f32 2.0, %v6246_v12  ;;  %v6304_v36 = vmul.f32 %v6160_v37, %v6034_v13  ;;  %v6653_v47 = vld [vmem:[#allocation8_spill] sm:$0xff] }
 0x77c   : > { %v4605_v23 = vpop.eup %4604  ;;  %v3521_v61 = vsel %vm2804_vm1, %v3457_v9, %v6076_v6  ;;  %v3263_v3 = vmul.f32 %v4597_v58, %v3231_v16  ;;  %v3205_v30 = vmul.f32 %v4603_v57, %v6215_v54  ;;  %v6300_v42 = vpop.xlane.xlu1 %3128  ;;  %v6649_v54 = vld [vmem:[#allocation5_spill] sm:$0xff]  ;;  %v6318_v13 = vsel %vm2805_vm2, %v3431_v45, 0.0 }
 0x77d   : > { %3553 = vst [vmem:[%s6140_s18 + $0x58] sm:$0xff] %v3521_v61  ;;  %v3518_v62 = vsel %vm2804_vm1, %v3454_v39, %v6080_v49  ;;  %v3268_v43 = vmul.f32 %v4599_v63, %v3236_v34  ;;  %v3202_v26 = vmul.f32 %v4605_v23, %v6224_v1  ;;  %4614 = vrcp.f32 %v6300_v42  ;;  %v6312_v6 = vpop.xlane.xlu0 %3138  ;;  %v6650_v49 = vld [vmem:[#allocation6_spill] sm:$0xff]  ;;  %v6651_v63 = vld [vmem:[#allocation28_spill] sm:$0xff] }
 0x77e   : > { %3550 = vst [vmem:[%s6140_s18 + $0x40] sm:$0xff] %v3518_v62  ;;  %v3455_v12 = vmul.f32 %v6649_v54, %v3263_v3  ;;  %v3237_v56 = vsub.f32 2.0, %v3205_v30  ;;  %4616 = vrcp.f32 %v6312_v6  ;;  %v3437_v24 = vmul.f32 %v6092_v44, %v3405_v0  ;;  %v6656_v3 = vld [vmem:[#allocation31_spill] sm:$0xff] }
 0x77f   : > { %v4607_v25 = vpop.eup %4606  ;;  %v3460_v7 = vmul.f32 %v6650_v49, %v3268_v43  ;;  %v3234_v1 = vsub.f32 2.0, %v3202_v26  ;;  %v3403_v19 = vsub.f32 2.0, %v6274_v21  ;;  %4618 = vrcp.f32 %v6120_v59 }
 0x780   : > { %v4609_v58 = vpop.eup %4608  ;;  %v3519_v8 = vsel %vm2804_vm1, %v3455_v12, %v6090_v20  ;;  %v3269_v4 = vmul.f32 %v4603_v57, %v3237_v56  ;;  %v3203_v32 = vmul.f32 %v4607_v25, %v6242_v17  ;;  %v6328_v45 = vpop.xlane.xlu1 %3140  ;;  %v6652_v20 = vld [vmem:[#allocation7_spill] sm:$0xff]  ;;  %v6343_v21 = vsel %vm2805_vm2, %v3436_v48, 0.0  ;;  %v6654_v57 = vld [vmem:[#allocation29_spill] sm:$0xff]  ;;  %v6658_v12 = vld [vmem:[#allocation10_spill] sm:$0xff] }
 0x781   : > { %3551 = vst [vmem:[%s6140_s18 + $0x48] sm:$0xff] %v3519_v8  ;;  %v3524_v55 = vsel %vm2804_vm1, %v3460_v7, %v6651_v63  ;;  %v3266_v44 = vmul.f32 %v4605_v23, %v3234_v1  ;;  %v3208_v0 = vmul.f32 %v4609_v58, %v6254_v15  ;;  %4620 = vrcp.f32 %v6328_v45  ;;  %v6337_v51 = vpop.xlane.xlu0 %3134  ;;  %v6655_v23 = vld [vmem:[#allocation26_spill] sm:$0xff]  ;;  %v6659_v8 = vld [vmem:[#allocation25_spill] sm:$0xff] }
 0x782   : > { %3556 = vst [vmem:[%s6140_s18 + $0x70] sm:$0xff] %v3524_v55  ;;  %v3461_v17 = vmul.f32 %v6652_v20, %v3269_v4  ;;  %v3235_v38 = vsub.f32 2.0, %v3203_v32  ;;  %4622 = vrcp.f32 %v6337_v51  ;;  %v3434_v41 = vmul.f32 %v6122_v27, %v3402_v53  ;;  %v6661_v20 = vld [vmem:[#allocation12_spill] sm:$0xff] }
 0x783   : > { %v4611_v60 = vpop.eup %4610  ;;  %v3458_v29 = vmul.f32 %v6653_v47, %v3266_v44  ;;  %v3240_v15 = vsub.f32 2.0, %v3208_v0  ;;  %v3408_v9 = vsub.f32 2.0, %v6304_v36  ;;  %v6357_v61 = vmul.f32 %v6170_v40, %v6655_v23 }
 0x784   : > { %v4613_v16 = vpop.eup %4612  ;;  %v3525_v11 = vsel %vm2804_vm1, %v3461_v17, %v6654_v57  ;;  %v3267_v39 = vmul.f32 %v4607_v25, %v3235_v38  ;;  %v3209_v34 = vmul.f32 %v4611_v60, %v6270_v33  ;;  %v6353_v48 = vpop.xlane.xlu1 %3136  ;;  %v6657_v33 = vld [vmem:[#allocation9_spill] sm:$0xff]  ;;  %v6371_v26 = vsel %vm2805_vm2, %v3437_v24, 0.0 }
 0x785   : > { %3557 = vst [vmem:[%s6140_s18 + $0x78] sm:$0xff] %v3525_v11  ;;  %v3522_v27 = vsel %vm2804_vm1, %v3458_v29, %v6656_v3  ;;  %v3272_v53 = vmul.f32 %v4609_v58, %v3240_v15  ;;  %v3206_v30 = vmul.f32 %v4613_v16, %v6282_v28  ;;  %4624 = vrcp.f32 %v6353_v48  ;;  %v6365_v36 = vpop.xlane.xlu0 %3146 }
 0x786   : > { %3554 = vst [vmem:[%s6140_s18 + $0x60] sm:$0xff] %v3522_v27  ;;  %v3459_v62 = vmul.f32 %v6657_v33, %v3267_v39  ;;  %v3241_v43 = vsub.f32 2.0, %v3209_v34  ;;  %4626 = vrcp.f32 %v6365_v36  ;;  %v3435_v28 = vmul.f32 %v6133_v50, %v3403_v19  ;;  %v6664_v27 = vld [vmem:[#allocation14_spill] sm:$0xff] }
 0x787   : > { %v4615_v54 = vpop.eup %4614  ;;  %v3464_v56 = vmul.f32 %v6658_v12, %v3272_v53  ;;  %v3238_v25 = vsub.f32 2.0, %v3206_v30  ;;  %4628 = vrcp.f32 %v6168_v35  ;;  %v6384_v4 = vadd.f32 1.0, %v6659_v8 }
 0x788   : > { %v4617_v49 = vpop.eup %4616  ;;  %v3523_v7 = vsel %vm2804_vm1, %v3459_v62, %v6176_v2  ;;  %v3273_v1 = vmul.f32 %v4611_v60, %v3241_v43  ;;  %v3207_v24 = vmul.f32 %v4615_v54, %v6300_v42  ;;  %v6381_v58 = vpop.xlane.xlu1 %3148  ;;  %v6660_v42 = vld [vmem:[#allocation11_spill] sm:$0xff]  ;;  %v3498_v0 = vsel %vm2805_vm2, %v3434_v41, 0.0 }
 0x789   : > { %3555 = vst [vmem:[%s6140_s18 + $0x68] sm:$0xff] %v3523_v7  ;;  %v3528_v50 = vsel %vm2804_vm1, %v3464_v56, %v6233_v14  ;;  %v3270_v19 = vmul.f32 %v4613_v16, %v3238_v25  ;;  %v3212_v32 = vmul.f32 %v4617_v49, %v6312_v6  ;;  %4630 = vrcp.f32 %v6381_v58  ;;  %v6392_v63 = vpop.xlane.xlu0 %3142  ;;  %v6394_v2 = vpop.eup %4618  ;;  %v6662_v60 = vld [vmem:[#allocation27_spill] sm:$0xff] }
 0x78a   : > { %3560 = vst [vmem:[%s6140_s18 + $0x90] sm:$0xff] %v3528_v50  ;;  %v3465_v55 = vmul.f32 %v6660_v42, %v3273_v1  ;;  %v3239_v44 = vsub.f32 2.0, %v3207_v24  ;;  %4632 = vrcp.f32 %v6392_v63  ;;  %v3440_v38 = vmul.f32 %v6160_v37, %v3408_v9 }
 0x78b   : > { %v4621_v14 = vpop.eup %4620  ;;  %v3462_v17 = vmul.f32 %v6661_v20, %v3270_v19  ;;  %v3244_v6 = vsub.f32 2.0, %v3212_v32  ;;  %v3374_v47 = vmul.f32 %v6191_v22, %v6662_v60  ;;  %4634 = vrcp.f32 %v6384_v4  ;;  %v6667_v32 = vld [vmem:[#allocation16_spill] sm:$0xff] }
 0x78c   : > { %v4623_v29 = vpop.eup %4622  ;;  %v3529_v15 = vsel %vm2804_vm1, %v3465_v55, %v6261_v5  ;;  %v3271_v16 = vmul.f32 %v4615_v54, %v3239_v44  ;;  %v3213_v41 = vmul.f32 %v4621_v14, %v6328_v45  ;;  %v6409_v57 = vpop.xlane.xlu1 %3144  ;;  %v6663_v5 = vld [vmem:[#allocation13_spill] sm:$0xff]  ;;  %v3409_v23 = vsub.f32 2.0, %v6357_v61  ;;  %v6665_v61 = vld [vmem:[#allocation30_spill] sm:$0xff] }
 0x78d   : > { %3561 = vst [vmem:[%s6140_s18 + $0x98] sm:$0xff] %v3529_v15  ;;  %v3526_v37 = vsel %vm2804_vm1, %v3462_v17, %v6290_v46  ;;  %v3276_v9 = vmul.f32 %v4617_v49, %v3244_v6  ;;  %v3210_v11 = vmul.f32 %v4623_v29, %v6337_v51  ;;  %4636 = vrcp.f32 %v6409_v57  ;;  %v6418_v39 = vpop.xlane.xlu0 %3150 }
 0x78e   : > { %3558 = vst [vmem:[%s6140_s18 + $0x80] sm:$0xff] %v3526_v37  ;;  %v3463_v34 = vmul.f32 %v6663_v5, %v3271_v16  ;;  %v3245_v45 = vsub.f32 2.0, %v3213_v41  ;;  %4638 = vrcp.f32 %v6418_v39  ;;  %v3499_v51 = vsel %vm2805_vm2, %v3435_v28, 0.0 }
 0x78f   : > { %v4625_v3 = vpop.eup %4624  ;;  %v3468_v53 = vmul.f32 %v6664_v27, %v3276_v9  ;;  %v3242_v46 = vsub.f32 2.0, %v3210_v11  ;;  %v3406_v30 = vsub.f32 2.0, %v3374_v47  ;;  %v3375_v12 = vmul.f32 %v6226_v10, %v6665_v61 }
 0x790   : > { %v4627_v33 = vpop.eup %4626  ;;  %v3527_v62 = vsel %vm2804_vm1, %v3463_v34, %v6318_v13  ;;  %v3277_v43 = vmul.f32 %v4621_v14, %v3245_v45  ;;  %v3211_v54 = vmul.f32 %v4625_v3, %v6353_v48  ;;  %v6433_v56 = vpop.xlane.xlu1 %3152  ;;  %v6666_v48 = vld [vmem:[#allocation15_spill] sm:$0xff]  ;;  %v3378_v50 = vmul.f32 %v6284_v18, %v6117_v52 }
 0x791   : > { %v6435_v25 = vpop.eup %4628  ;;  %3559 = vst [vmem:[%s6140_s18 + $0x88] sm:$0xff] %v3527_v62  ;;  %v3532_v28 = vsel %vm2804_vm1, %v3468_v53, %v6343_v21  ;;  %v3274_v49 = vmul.f32 %v4623_v29, %v3242_v46  ;;  %v3216_v7 = vmul.f32 %v4627_v33, %v6365_v36  ;;  %4640 = vrcp.f32 %v6433_v56  ;;  %v3155_v13 = vpop.xlane.xlu0 %3154  ;;  %v6668_v29 = vld [vmem:[#allocation17_spill] sm:$0xff]  ;;  %v6670_v46 = vld [vmem:[#allocation19_spill] sm:$0xff]  ;;  %v6671_v62 = vld [vmem:[#allocation20_spill] sm:$0xff] }
 0x792   : > { %3564 = vst [vmem:[%s6140_s18 + $0xb0] sm:$0xff] %v3532_v28  ;;  %v3469_v1 = vmul.f32 %v6666_v48, %v3277_v43  ;;  %v3243_v24 = vsub.f32 2.0, %v3211_v54  ;;  %4642 = vrcp.f32 %v3155_v13  ;;  %v3504_v21 = vsel %vm2805_vm2, %v3440_v38, 0.0 }
 0x793   : > { %v4631_v19 = vpop.eup %4630  ;;  %v3466_v42 = vmul.f32 %v6667_v32, %v3274_v49  ;;  %v3248_v36 = vsub.f32 2.0, %v3216_v7  ;;  %v3441_v55 = vmul.f32 %v6170_v40, %v3409_v23  ;;  %v3438_v52 = vmul.f32 %v6191_v22, %v3406_v30  ;;  %v6669_v22 = vld [vmem:[#allocation18_spill] sm:$0xff] }
 0x794   : > { %v4633_v44 = vpop.eup %4632  ;;  %v3533_v14 = vsel %vm2804_vm1, %v3469_v1, %v6371_v26  ;;  %v3275_v20 = vmul.f32 %v4625_v3, %v3243_v24  ;;  %v3217_v17 = vmul.f32 %v4631_v19, %v6381_v58  ;;  %v3157_v6 = vpop.xlane.xlu1 %3156  ;;  %v3407_v16 = vsub.f32 2.0, %v3375_v12 }
 0x795   : > { %3565 = vst [vmem:[%s6140_s18 + $0xb8] sm:$0xff] %v3533_v14  ;;  %v3530_v60 = vsel %vm2804_vm1, %v3466_v42, %v3498_v0  ;;  %v3280_v47 = vmul.f32 %v4627_v33, %v3248_v36  ;;  %v3214_v38 = vmul.f32 %v4633_v44, %v6392_v63  ;;  %4644 = vrcp.f32 %v3157_v6  ;;  %v4635_v40 = vpop.eup %4634  ;;  %v6673_v42 = vld [vmem:[#allocation22_spill] sm:$0xff] }
 0x796   : > { %3562 = vst [vmem:[%s6140_s18 + $0xa0] sm:$0xff] %v3530_v60  ;;  %v3467_v15 = vmul.f32 %v6668_v29, %v3275_v20  ;;  %v3249_v26 = vsub.f32 2.0, %v3217_v17  ;;  %v3410_v41 = vsub.f32 2.0, %v3378_v50  ;;  %v3505_v9 = vsel %vm2805_vm2, %v3441_v55, 0.0 }
 0x797   : > { %v4637_v58 = vpop.eup %4636  ;;  %v3472_v37 = vmul.f32 %v6669_v22, %v3280_v47  ;;  %v3246_v0 = vsub.f32 2.0, %v3214_v38  ;;  %v3379_v63 = vmul.f32 %v6394_v2, %v6120_v59  ;;  %v3380_v23 = vmul.f32 %v6435_v25, %v6168_v35  ;;  %v6674_v47 = vld [vmem:[#allocation23_spill] sm:$0xff] }
 0x798   : > { %v4639_v11 = vpop.eup %4638  ;;  %v3531_v5 = vsel %vm2804_vm1, %v3467_v15, %v3499_v51  ;;  %v3281_v34 = vmul.f32 %v4631_v19, %v3249_v26  ;;  %v3215_v45 = vmul.f32 %v4637_v58, %v6409_v57  ;;  %v3502_v27 = vsel %vm2805_vm2, %v3438_v52, 0.0  ;;  %v6675_v15 = vld [vmem:[#allocation24_spill] sm:$0xff] }
 0x799   : > { %3563 = vst [vmem:[%s6140_s18 + $0xa8] sm:$0xff] %v3531_v5  ;;  %v3536_v3 = vsel %vm2804_vm1, %v3472_v37, %v3504_v21  ;;  %v3278_v53 = vmul.f32 %v4633_v44, %v3246_v0  ;;  %v3218_v59 = vmul.f32 %v4639_v11, %v6418_v39  ;;  %v3439_v30 = vmul.f32 %v6226_v10, %v3407_v16 }
 0x79a   : > { %3568 = vst [vmem:[%s6140_s18 + $0xd0] sm:$0xff] %v3536_v3  ;;  %v3473_v51 = vmul.f32 %v6670_v46, %v3281_v34  ;;  %v3247_v57 = vsub.f32 2.0, %v3215_v45  ;;  %v3442_v35 = vmul.f32 %v6284_v18, %v3410_v41  ;;  %v3411_v61 = vsub.f32 2.0, %v3379_v63 }
 0x79b   : > { %v4641_v33 = vpop.eup %4640  ;;  %v3470_v43 = vmul.f32 %v6671_v62, %v3278_v53  ;;  %v3250_v54 = vsub.f32 2.0, %v3218_v59  ;;  %v3381_v12 = vmul.f32 %v4635_v40, %v6384_v4  ;;  %v3412_v48 = vsub.f32 2.0, %v3380_v23  ;;  %v6672_v4 = vld [vmem:[#allocation21_spill] sm:$0xff] }
 0x79c   : > { %v4643_v28 = vpop.eup %4642  ;;  %v3537_v39 = vsel %vm2804_vm1, %v3473_v51, %v3505_v9  ;;  %v3279_v49 = vmul.f32 %v4637_v58, %v3247_v57  ;;  %v3219_v7 = vmul.f32 %v4641_v33, %v6433_v56  ;;  %v3503_v24 = vsel %vm2805_vm2, %v3439_v30, 0.0 }
 0x79d   : > { %3569 = vst [vmem:[%s6140_s18 + $0xd8] sm:$0xff] %v3537_v39  ;;  %v3534_v10 = vsel %vm2804_vm1, %v3470_v43, %v3502_v27  ;;  %v3282_v18 = vmul.f32 %v4639_v11, %v3250_v54  ;;  %v3220_v1 = vmul.f32 %v4643_v28, %v3155_v13  ;;  %v3506_v19 = vsel %vm2805_vm2, %v3442_v35, 0.0 }
 0x79e   : > { %3566 = vst [vmem:[%s6140_s18 + $0xc0] sm:$0xff] %v3534_v10  ;;  %v3471_v50 = vmul.f32 %v6672_v4, %v3279_v49  ;;  %v3251_v32 = vsub.f32 2.0, %v3219_v7  ;;  %v3443_v36 = vmul.f32 %v6394_v2, %v3411_v61  ;;  %v3413_v44 = vsub.f32 2.0, %v3381_v12 }
 0x79f   : > { %v4645_v56 = vpop.eup %4644  ;;  %v3474_v21 = vmul.f32 %v6673_v42, %v3282_v18  ;;  %v3252_v55 = vsub.f32 2.0, %v3220_v1  ;;  %v3444_v20 = vmul.f32 %v6435_v25, %v3412_v48 }
 0x7a0   : > { %v3535_v13 = vsel %vm2804_vm1, %v3471_v50, %v3503_v24  ;;  %v3283_v14 = vmul.f32 %v4641_v33, %v3251_v32  ;;  %v3221_v17 = vmul.f32 %v4645_v56, %v3157_v6  ;;  %v3507_v29 = vsel %vm2805_vm2, %v3443_v36, 0.0 }
 0x7a1   : > { %3567 = vst [vmem:[%s6140_s18 + $0xc8] sm:$0xff] %v3535_v13  ;;  %v3538_v52 = vsel %vm2804_vm1, %v3474_v21, %v3506_v19  ;;  %v3284_v60 = vmul.f32 %v4643_v28, %v3252_v55  ;;  %v3445_v16 = vmul.f32 %v4635_v40, %v3413_v44  ;;  %v3508_v6 = vsel %vm2805_vm2, %v3444_v20, 0.0 }
 0x7a2   : > { %3570 = vst [vmem:[%s6140_s18 + $0xe0] sm:$0xff] %v3538_v52  ;;  %v3475_v2 = vmul.f32 %v6674_v47, %v3283_v14  ;;  %v3253_v38 = vsub.f32 2.0, %v3221_v17 }
 0x7a3   : > { %v3476_v26 = vmul.f32 %v6675_v15, %v3284_v60  ;;  %v3509_v37 = vsel %vm2805_vm2, %v3445_v16, 0.0 }
 0x7a4   : > { %v3539_v25 = vsel %vm2804_vm1, %v3475_v2, %v3507_v29  ;;  %v3285_v41 = vmul.f32 %v4645_v56, %v3253_v38 }
 0x7a5   : > { %3571 = vst [vmem:[%s6140_s18 + $0xe8] sm:$0xff] %v3539_v25  ;;  %v3540_v58 = vsel %vm2804_vm1, %v3476_v26, %v3508_v6 }
 0x7a6   : > { %3572 = vst [vmem:[%s6140_s18 + $0xf0] sm:$0xff] %v3540_v58  ;;  %v3477_v22 = vmul.f32 %v6659_v8, %v3285_v41 }
 0x7a8   : > { %v3541_v40 = vsel %vm2804_vm1, %v3477_v22, %v3509_v37 }
 0x7a9   : > { %3573 = vst [vmem:[%s6140_s18 + $0xf8] sm:$0xff] %v3541_v40 }
 0x7aa PF: > { %s27_s24 = sadd.s32 1, %s4652_s24  }
 0x7ab   : > { %p24_p4 = scmp.ge.s32.totalorder %s27_s24, 4  }
 0x7ad   :  { %26 = sbr.rel (!%p24_p4) target bundleno = 3 (0x3), region = 118 }

</bundles_post_ra>
